<compile_context>
chip_gen: v7x
topology: tpu7x:2x2x1
jax: 0.10.0
libtpu: 0.0.40
codegen_flags: <defaults>
</compile_context>

<pallas_src>
import functools

import jax
import jax.numpy as jnp
from jax.experimental import pallas as pl
from jax.experimental.pallas import tpu as pltpu


# ----------------------------------------------------------------------------
# Helpers
# ----------------------------------------------------------------------------
def _round_up(x, m):
    return ((x + m - 1) // m) * m


def _cdiv(a, b):
    return (a + b - 1) // b


def _vmem_capacity_bytes():
    try:
        return int(pltpu.get_tpu_info().vmem_capacity_bytes)
    except Exception:
        return 64 * 1024 * 1024  # conservative (v7x per-core VMEM)


def _num_tensorcores():
    """Best-effort TensorCore count per device (v7x: 2, v5e/v6e: 1)."""
    try:
        dev = jax.devices()[0]
        for attr in ("num_cores", "core_count", "num_tensorcores"):
            v = getattr(dev, attr, None)
            if isinstance(v, int) and v > 0:
                return v
        kind = str(getattr(dev, "device_kind", "")).lower()
        if any(s in kind for s in ("v5 lite", "v5e", "v5lite", "v6 lite", "v6e")):
            return 1
    except Exception:
        pass
    return 2  # default to multi-core: costs ~nothing if wrong, avoids a 2x loss if right


# ----------------------------------------------------------------------------
# Kernel 1: conv (KH*KW shifted matmuls, bf16 in / f32 acc) + per-core channel stats
# ----------------------------------------------------------------------------
def conv_stats_kernel(w_ref, x_ref, mask_ref, conv_ref, sum_ref, sq_ref, *, offsets, tm):
    i = pl.program_id(1)  # inner ("arbitrary") axis; stats blocks are per-core resident

    xw = x_ref[0]  # [C_in, tm + halo] bf16 window (flat padded-image coordinates)

    acc = None
    for t, d in enumerate(offsets):           # static KH*KW tap loop
        wt = w_ref[t]                         # [C_out, C_in]  (weight[:, :, kh, kw])
        xs = xw[:, d:d + tm]                  # [C_in, tm]     static lane-offset slice
        p = jnp.dot(wt, xs, preferred_element_type=jnp.float32)
        acc = p if acc is None else acc + p   # f32 accumulation on the MXU outputs

    # bf16 intermediate store (stats below are taken from the f32 accumulator)
    conv_ref[...] = acc.astype(conv_ref.dtype)

    # mask out padded / non-stride-aligned positions for the batch statistics
    m = mask_ref[...]                         # [1, tm] f32 (0/1)
    cm = jnp.where(m > 0, acc, 0.0)           # [C_out, tm]

    @pl.when(i == 0)
    def _():
        sum_ref[...] = jnp.zeros_like(sum_ref)
        sq_ref[...] = jnp.zeros_like(sq_ref)

    sum_ref[...] += jnp.sum(cm, axis=1, keepdims=True)       # [C_out, 1]
    sq_ref[...] += jnp.sum(cm * cm, axis=1, keepdims=True)   # [C_out, 1]


# ----------------------------------------------------------------------------
# Kernel 2: folded batch-norm (scale/shift) + LeakyReLU(0.1), written straight to NCHW
# ----------------------------------------------------------------------------
def bn_lrelu_nchw_kernel(x_ref, scale_ref, shift_ref, out_ref, *, Ho, Wo, stride, slope):
    x = x_ref[:, 0]                                  # [tco, Hp2, Wp2] bf16
    if stride == 1:
        x = x[:, :Ho, :Wo]
    else:
        # TODO(synk): strided extraction path is not exercised by the test below.
        x = x[:, 0:(Ho - 1) * stride + 1:stride, 0:(Wo - 1) * stride + 1:stride]
    x = x.astype(jnp.float32)                        # promote: f32 math (v5e-friendly)
    y = x * scale_ref[...] + shift_ref[...]          # scale/shift: [tco, 1, 1] f32
    out_ref[...] = jnp.where(y > 0, y, slope * y)[None]   # [1, tco, Ho, Wo] f32


# ----------------------------------------------------------------------------
# Wrapper
# ----------------------------------------------------------------------------
def cnn_block(x, weight, gamma, beta, *, stride=1, padding=1, eps=1e-5, slope=0.1):
    """x: [N, C_in, H, W] f32 (NCHW); weight: [C_out, C_in, KH, KW]; gamma/beta: [C_out].
    Returns [N, C_out, Ho, Wo] f32 (training-mode BatchNorm, i.e. batch statistics)."""
    N, C_in, H, W = x.shape
    C_out, c_in2, KH, KW = weight.shape
    assert c_in2 == C_in
    Hp, Wp = H + 2 * padding, W + 2 * padding
    Ho = (Hp - KH) // stride + 1
    Wo = (Wp - KW) // stride + 1

    # ---- hardware-derived tiling ----
    vmem_cap = _vmem_capacity_bytes()
    vmem_limit = min(int(vmem_cap * 3 // 4), 96 * 1024 * 1024)
    budget = vmem_limit * 3 // 5                      # picker budget consistent with limit

    Wp2 = _round_up(Wp, 128)                          # lane-padded row width
    halo = max(128, _round_up((KH - 1) * Wp2 + (KW - 1), 128))

    # rows of the padded image per pass-1 tile (tile width tm = r * Wp2 lanes)
    def _p1_bytes(rr):
        tm_ = rr * Wp2
        return (2 * C_in * (tm_ + halo) * 2       # input window, double buffered, bf16
                + 2 * C_out * tm_ * 2              # bf16 conv out block, double buffered
                + C_out * tm_ * 4                  # f32 accumulator value
                + 2 * tm_ * 4                      # mask row
                + KH * KW * C_out * C_in * 2)      # weights

    r = max(8, _round_up(_cdiv(8192, Wp2), 8))        # target ~8192-lane tiles
    while r > 8 and _p1_bytes(r) > budget:
        r -= 8
    # TODO(synk): for very large C_in even r=8 can exceed the budget; add a C_in-chunk
    # grid axis with a VMEM f32 accumulator (P3) to decouple the tile from C_in.
    tm = r * Wp2
    assert halo <= tm

    ncores = _num_tensorcores()
    NSPLIT = 2 if (ncores >= 2 and C_out % 8 == 0) else 1
    Hp2 = _round_up(max(Hp, r), r)                    # sublane/row-padded image height
    if NSPLIT == 2 and (N * (Hp2 // r)) % 2 == 1:
        Hp2 += r                                      # force an even tile count (both cores busy)
    TPI = Hp2 // r                                    # pass-1 tiles per image
    NT = N * TPI                                      # total pass-1 tiles
    INNER = NT // NSPLIT
    SLOT = Hp2 * Wp2                                  # per-image flat slot size
    L = N * SLOT

    # ---- input restructuring (plain JAX glue, ~1-2 input-sized copies, no 9x im2col) ----
    xb16 = x.astype(jnp.bfloat16)
    xp = jnp.pad(xb16, ((0, 0), (0, 0),
                        (padding, Hp2 - H - padding),
                        (padding, Wp2 - W - padding)))          # [N, C_in, Hp2, Wp2]
    x_flat = jnp.transpose(xp, (1, 0, 2, 3)).reshape(C_in, L)    # [C_in, N*Hp2*Wp2]
    xe = jnp.pad(x_flat, ((0, 0), (0, tm)))                      # tail slack for the last halo
    wins_a = xe[:, :L].reshape(C_in, NT, tm)
    wins_b = xe[:, tm:tm + L].reshape(C_in, NT, tm)[:, :, :halo]
    x_wins = jnp.transpose(jnp.concatenate([wins_a, wins_b], axis=-1), (1, 0, 2))
    # x_wins: [NT, C_in, tm + halo]; window j = flat columns [j*tm, j*tm + tm + halo)
    # TODO(synk): this halo'd-window materialisation (~1.1x the padded input) could be
    # removed entirely with a manual double-buffered DMA fetch (memory_space=pl.ANY).

    # taps: weight[:, :, kh, kw] and its flat offset kh*Wp2 + kw inside the padded image
    w_taps = (jnp.transpose(weight, (2, 3, 0, 1))
              .reshape(KH * KW, C_out, C_in).astype(jnp.bfloat16))
    offsets = tuple(kh * Wp2 + kw for kh in range(KH) for kw in range(KW))
    # NOTE: w_taps / scale / shift are tiny here; at production C_out/C_in mark them
    # pipeline_mode=pl.Buffered(1) to single-buffer the grid-invariant inputs.

    # validity mask over the padded per-image grid (real, stride-aligned output positions)
    hp = jnp.arange(Hp2)
    wp = jnp.arange(Wp2)
    hok = (hp % stride == 0) & (hp // stride < Ho)
    wok = (wp % stride == 0) & (wp // stride < Wo)
    mask = (hok[:, None] & wok[None, :]).astype(jnp.float32).reshape(1, SLOT)

    # ---- Pallas pass 1: conv matmuls + per-core channel sum / sumsq (bf16 intermediate) ----
    conv_flat, ch_sum, ch_sq = pl.pallas_call(
        functools.partial(conv_stats_kernel, offsets=offsets, tm=tm),
        out_shape=(
            jax.ShapeDtypeStruct((C_out, L), jnp.bfloat16),
            jax.ShapeDtypeStruct((NSPLIT * C_out, 1), jnp.float32),
            jax.ShapeDtypeStruct((NSPLIT * C_out, 1), jnp.float32),
        ),
        grid_spec=pltpu.PrefetchScalarGridSpec(
            num_scalar_prefetch=0,
            grid=(NSPLIT, INNER),
            in_specs=[
                pl.BlockSpec((KH * KW, C_out, C_in), lambda c, i: (0, 0, 0)),
                pl.BlockSpec((1, C_in, tm + halo), lambda c, i: (c * INNER + i, 0, 0)),
                pl.BlockSpec((1, tm), lambda c, i: (0, (c * INNER + i) % TPI)),
            ],
            out_specs=[
                pl.BlockSpec((C_out, tm), lambda c, i: (0, c * INNER + i)),
                pl.BlockSpec((C_out, 1), lambda c, i: (c, 0)),   # per-core partial stats
                pl.BlockSpec((C_out, 1), lambda c, i: (c, 0)),
            ],
        ),
        compiler_params=pltpu.CompilerParams(
            dimension_semantics=("parallel", "arbitrary"),
            vmem_limit_bytes=vmem_limit),
    )(w_taps, x_wins, mask)

    # ---- fold BN batch stats + affine into per-channel scale/shift (tiny, plain JAX) ----
    count = jnp.float32(N * Ho * Wo)
    s = ch_sum.reshape(NSPLIT, C_out).sum(axis=0)
    ss = ch_sq.reshape(NSPLIT, C_out).sum(axis=0)
    mean = s / count
    # E[x^2] - E[x]^2 in f32, clamped against tiny negative variance from cancellation.
    # TODO(synk): switch to a shifted / two-pass centred variance for very large batches.
    var = jnp.maximum(ss / count - mean * mean, 0.0)
    inv = jax.lax.rsqrt(var + eps)
    g = gamma.astype(jnp.float32)
    b = beta.astype(jnp.float32)
    scale = (g * inv).reshape(C_out, 1, 1)
    shift = (b - mean * g * inv).reshape(C_out, 1, 1)

    # ---- Pallas pass 2: y = x*scale + shift, LeakyReLU, written straight to NCHW f32 ----
    conv4d = conv_flat.reshape(C_out, N, Hp2, Wp2)     # free reshape (L == N*Hp2*Wp2)

    tco = 1
    for d in range(1, C_out + 1):
        if C_out % d == 0 and (2 * d * Hp2 * Wp2 * 2 + 2 * d * Ho * Wo * 4 + 1024) <= budget:
            tco = d

    out = pl.pallas_call(
        functools.partial(bn_lrelu_nchw_kernel, Ho=Ho, Wo=Wo, stride=stride, slope=slope),
        out_shape=jax.ShapeDtypeStruct((N, C_out, Ho, Wo), jnp.float32),
        grid_spec=pltpu.PrefetchScalarGridSpec(
            num_scalar_prefetch=0,
            grid=(N, C_out // tco),
            in_specs=[
                pl.BlockSpec((tco, 1, Hp2, Wp2), lambda n, c: (c, n, 0, 0)),
                pl.BlockSpec((tco, 1, 1), lambda n, c: (c, 0, 0)),
                pl.BlockSpec((tco, 1, 1), lambda n, c: (c, 0, 0)),
            ],
            out_specs=pl.BlockSpec((1, tco, Ho, Wo), lambda n, c: (n, c, 0, 0)),
        ),
        compiler_params=pltpu.CompilerParams(
            dimension_semantics=("parallel", "parallel"),
            vmem_limit_bytes=vmem_limit),
    )(conv4d, scale, shift)

    return out


# ----------------------------------------------------------------------------
# Pure-JAX reference (bf16 conv inputs / f32 accumulation, like the kernel)
# ----------------------------------------------------------------------------
def cnn_block_ref(x, weight, gamma, beta, *, stride=1, padding=1, eps=1e-5, slope=0.1):
    conv = jax.lax.conv_general_dilated(
        x.astype(jnp.bfloat16), weight.astype(jnp.bfloat16),
        window_strides=(stride, stride),
        padding=[(padding, padding), (padding, padding)],
        dimension_numbers=("NCHW", "OIHW", "NCHW"),
        preferred_element_type=jnp.float32)
    mean = jnp.mean(conv, axis=(0, 2, 3), keepdims=True)
    var = jnp.mean((conv - mean) ** 2, axis=(0, 2, 3), keepdims=True)  # biased (PyTorch BN fwd)
    y = (conv - mean) / jnp.sqrt(var + eps)
    y = y * gamma.reshape(1, -1, 1, 1) + beta.reshape(1, -1, 1, 1)
    return jnp.where(y > 0, y, slope * y)


if __name__ == "__main__":
    key = jax.random.PRNGKey(0)
    k_x, k_w, k_g, k_b = jax.random.split(key, 4)

    # CNNBlock(in_channels=4, out_channels=8, kernel_size=3, stride=1, padding=1)
    N, C_in, H, W = 2, 4, 16, 16
    C_out, KH, KW = 8, 3, 3

    x = jax.random.normal(k_x, (N, C_in, H, W), dtype=jnp.float32)
    weight = jax.random.normal(k_w, (C_out, C_in, KH, KW), dtype=jnp.float32) * 0.1
    gamma = 1.0 + 0.1 * jax.random.normal(k_g, (C_out,), dtype=jnp.float32)
    beta = 0.1 * jax.random.normal(k_b, (C_out,), dtype=jnp.float32)

    fn = jax.jit(functools.partial(cnn_block, stride=1, padding=1))
    out = jax.block_until_ready(fn(x, weight, gamma, beta))

    ref = cnn_block_ref(x, weight, gamma, beta, stride=1, padding=1)
    assert out.shape == (N, C_out, H, W), out.shape
    max_err = float(jnp.max(jnp.abs(out - ref)))
    assert jnp.allclose(out, ref, atol=3e-3, rtol=3e-3), f"mismatch vs reference (max abs err {max_err})"

    print("KERNEL_OK")
</pallas_src>

<mosaic_0001>
module attributes {stable_mosaic.version = 11 : i64} {
  func.func @conv_stats_kernel(%arg0: i32, %arg1: i32, %arg2: memref<9x8x4xbf16, #tpu.memory_space<vmem>>, %arg3: memref<1x4x8576xbf16, #tpu.memory_space<vmem>>, %arg4: memref<1x8192xf32, #tpu.memory_space<vmem>>, %arg5: memref<8x8192xbf16, #tpu.memory_space<vmem>>, %arg6: memref<8x1xf32, #tpu.memory_space<vmem>>, %arg7: memref<8x1xf32, #tpu.memory_space<vmem>>) attributes {dimension_semantics = [#tpu.dimension_semantics<parallel>, #tpu.dimension_semantics<arbitrary>], iteration_bounds = array<i64: 2, 1>, scalar_prefetch = 0 : i64, scratch_operands = 0 : i64, tpu.core_type = #tpu.core_type<tc>, window_params = [{pipeline_mode = #tpu.pipeline_mode<synchronous>, transform_indices = @transform_0, window_bounds = array<i64: 9, 8, 4>}, {transform_indices = @transform_1, window_bounds = array<i64: 1, 4, 8576>}, {transform_indices = @transform_2, window_bounds = array<i64: 1, 8192>}, {transform_indices = @transform_3, window_bounds = array<i64: 8, 8192>}, {transform_indices = @transform_4, window_bounds = array<i64: 8, 1>}, {transform_indices = @transform_5, window_bounds = array<i64: 8, 1>}]} {
    %c0 = arith.constant 0 : index
    %c0_0 = arith.constant 0 : index
    %c0_1 = arith.constant 0 : index
    %0 = vector.load %arg3[%c0, %c0_0, %c0_1] : memref<1x4x8576xbf16, #tpu.memory_space<vmem>>, vector<1x4x8576xbf16>
    %1 = vector.shape_cast %0 : vector<1x4x8576xbf16> to vector<4x8576xbf16>
    %c0_2 = arith.constant 0 : index
    %c0_3 = arith.constant 0 : index
    %c0_4 = arith.constant 0 : index
    %2 = vector.load %arg2[%c0_2, %c0_3, %c0_4] : memref<9x8x4xbf16, #tpu.memory_space<vmem>>, vector<1x8x4xbf16>
    %3 = vector.shape_cast %2 : vector<1x8x4xbf16> to vector<8x4xbf16>
    %4 = vector.extract_strided_slice %1 {offsets = [0, 0], sizes = [4, 8192], strides = [1, 1]} : vector<4x8576xbf16> to vector<4x8192xbf16>
    %cst = arith.constant dense<0.000000e+00> : vector<8x8192xf32>
    %5 = tpu.matmul %3, %4, %cst {dimension_numbers = #tpu.dot_dimension_numbers<[1], [0], [0], [1], [0, 0, 1, 1], [], []>} : vector<8x4xbf16>, vector<4x8192xbf16>, vector<8x8192xf32> -> vector<8x8192xf32>
    %c1 = arith.constant 1 : index
    %c0_5 = arith.constant 0 : index
    %c0_6 = arith.constant 0 : index
    %6 = vector.load %arg2[%c1, %c0_5, %c0_6] : memref<9x8x4xbf16, #tpu.memory_space<vmem>>, vector<1x8x4xbf16>
    %7 = vector.shape_cast %6 : vector<1x8x4xbf16> to vector<8x4xbf16>
    %8 = vector.extract_strided_slice %1 {offsets = [0, 1], sizes = [4, 8192], strides = [1, 1]} : vector<4x8576xbf16> to vector<4x8192xbf16>
    %cst_7 = arith.constant dense<0.000000e+00> : vector<8x8192xf32>
    %9 = tpu.matmul %7, %8, %cst_7 {dimension_numbers = #tpu.dot_dimension_numbers<[1], [0], [0], [1], [0, 0, 1, 1], [], []>} : vector<8x4xbf16>, vector<4x8192xbf16>, vector<8x8192xf32> -> vector<8x8192xf32>
    %10 = arith.addf %5, %9 : vector<8x8192xf32>
    %c2 = arith.constant 2 : index
    %c0_8 = arith.constant 0 : index
    %c0_9 = arith.constant 0 : index
    %11 = vector.load %arg2[%c2, %c0_8, %c0_9] : memref<9x8x4xbf16, #tpu.memory_space<vmem>>, vector<1x8x4xbf16>
    %12 = vector.shape_cast %11 : vector<1x8x4xbf16> to vector<8x4xbf16>
    %13 = vector.extract_strided_slice %1 {offsets = [0, 2], sizes = [4, 8192], strides = [1, 1]} : vector<4x8576xbf16> to vector<4x8192xbf16>
    %cst_10 = arith.constant dense<0.000000e+00> : vector<8x8192xf32>
    %14 = tpu.matmul %12, %13, %cst_10 {dimension_numbers = #tpu.dot_dimension_numbers<[1], [0], [0], [1], [0, 0, 1, 1], [], []>} : vector<8x4xbf16>, vector<4x8192xbf16>, vector<8x8192xf32> -> vector<8x8192xf32>
    %15 = arith.addf %10, %14 : vector<8x8192xf32>
    %c3 = arith.constant 3 : index
    %c0_11 = arith.constant 0 : index
    %c0_12 = arith.constant 0 : index
    %16 = vector.load %arg2[%c3, %c0_11, %c0_12] : memref<9x8x4xbf16, #tpu.memory_space<vmem>>, vector<1x8x4xbf16>
    %17 = vector.shape_cast %16 : vector<1x8x4xbf16> to vector<8x4xbf16>
    %18 = vector.extract_strided_slice %1 {offsets = [0, 128], sizes = [4, 8192], strides = [1, 1]} : vector<4x8576xbf16> to vector<4x8192xbf16>
    %cst_13 = arith.constant dense<0.000000e+00> : vector<8x8192xf32>
    %19 = tpu.matmul %17, %18, %cst_13 {dimension_numbers = #tpu.dot_dimension_numbers<[1], [0], [0], [1], [0, 0, 1, 1], [], []>} : vector<8x4xbf16>, vector<4x8192xbf16>, vector<8x8192xf32> -> vector<8x8192xf32>
    %20 = arith.addf %15, %19 : vector<8x8192xf32>
    %c4 = arith.constant 4 : index
    %c0_14 = arith.constant 0 : index
    %c0_15 = arith.constant 0 : index
    %21 = vector.load %arg2[%c4, %c0_14, %c0_15] : memref<9x8x4xbf16, #tpu.memory_space<vmem>>, vector<1x8x4xbf16>
    %22 = vector.shape_cast %21 : vector<1x8x4xbf16> to vector<8x4xbf16>
    %23 = vector.extract_strided_slice %1 {offsets = [0, 129], sizes = [4, 8192], strides = [1, 1]} : vector<4x8576xbf16> to vector<4x8192xbf16>
    %cst_16 = arith.constant dense<0.000000e+00> : vector<8x8192xf32>
    %24 = tpu.matmul %22, %23, %cst_16 {dimension_numbers = #tpu.dot_dimension_numbers<[1], [0], [0], [1], [0, 0, 1, 1], [], []>} : vector<8x4xbf16>, vector<4x8192xbf16>, vector<8x8192xf32> -> vector<8x8192xf32>
    %25 = arith.addf %20, %24 : vector<8x8192xf32>
    %c5 = arith.constant 5 : index
    %c0_17 = arith.constant 0 : index
    %c0_18 = arith.constant 0 : index
    %26 = vector.load %arg2[%c5, %c0_17, %c0_18] : memref<9x8x4xbf16, #tpu.memory_space<vmem>>, vector<1x8x4xbf16>
    %27 = vector.shape_cast %26 : vector<1x8x4xbf16> to vector<8x4xbf16>
    %28 = vector.extract_strided_slice %1 {offsets = [0, 130], sizes = [4, 8192], strides = [1, 1]} : vector<4x8576xbf16> to vector<4x8192xbf16>
    %cst_19 = arith.constant dense<0.000000e+00> : vector<8x8192xf32>
    %29 = tpu.matmul %27, %28, %cst_19 {dimension_numbers = #tpu.dot_dimension_numbers<[1], [0], [0], [1], [0, 0, 1, 1], [], []>} : vector<8x4xbf16>, vector<4x8192xbf16>, vector<8x8192xf32> -> vector<8x8192xf32>
    %30 = arith.addf %25, %29 : vector<8x8192xf32>
    %c6 = arith.constant 6 : index
    %c0_20 = arith.constant 0 : index
    %c0_21 = arith.constant 0 : index
    %31 = vector.load %arg2[%c6, %c0_20, %c0_21] : memref<9x8x4xbf16, #tpu.memory_space<vmem>>, vector<1x8x4xbf16>
    %32 = vector.shape_cast %31 : vector<1x8x4xbf16> to vector<8x4xbf16>
    %33 = vector.extract_strided_slice %1 {offsets = [0, 256], sizes = [4, 8192], strides = [1, 1]} : vector<4x8576xbf16> to vector<4x8192xbf16>
    %cst_22 = arith.constant dense<0.000000e+00> : vector<8x8192xf32>
    %34 = tpu.matmul %32, %33, %cst_22 {dimension_numbers = #tpu.dot_dimension_numbers<[1], [0], [0], [1], [0, 0, 1, 1], [], []>} : vector<8x4xbf16>, vector<4x8192xbf16>, vector<8x8192xf32> -> vector<8x8192xf32>
    %35 = arith.addf %30, %34 : vector<8x8192xf32>
    %c7 = arith.constant 7 : index
    %c0_23 = arith.constant 0 : index
    %c0_24 = arith.constant 0 : index
    %36 = vector.load %arg2[%c7, %c0_23, %c0_24] : memref<9x8x4xbf16, #tpu.memory_space<vmem>>, vector<1x8x4xbf16>
    %37 = vector.shape_cast %36 : vector<1x8x4xbf16> to vector<8x4xbf16>
    %38 = vector.extract_strided_slice %1 {offsets = [0, 257], sizes = [4, 8192], strides = [1, 1]} : vector<4x8576xbf16> to vector<4x8192xbf16>
    %cst_25 = arith.constant dense<0.000000e+00> : vector<8x8192xf32>
    %39 = tpu.matmul %37, %38, %cst_25 {dimension_numbers = #tpu.dot_dimension_numbers<[1], [0], [0], [1], [0, 0, 1, 1], [], []>} : vector<8x4xbf16>, vector<4x8192xbf16>, vector<8x8192xf32> -> vector<8x8192xf32>
    %40 = arith.addf %35, %39 : vector<8x8192xf32>
    %c8 = arith.constant 8 : index
    %c0_26 = arith.constant 0 : index
    %c0_27 = arith.constant 0 : index
    %41 = vector.load %arg2[%c8, %c0_26, %c0_27] : memref<9x8x4xbf16, #tpu.memory_space<vmem>>, vector<1x8x4xbf16>
    %42 = vector.shape_cast %41 : vector<1x8x4xbf16> to vector<8x4xbf16>
    %43 = vector.extract_strided_slice %1 {offsets = [0, 258], sizes = [4, 8192], strides = [1, 1]} : vector<4x8576xbf16> to vector<4x8192xbf16>
    %cst_28 = arith.constant dense<0.000000e+00> : vector<8x8192xf32>
    %44 = tpu.matmul %42, %43, %cst_28 {dimension_numbers = #tpu.dot_dimension_numbers<[1], [0], [0], [1], [0, 0, 1, 1], [], []>} : vector<8x4xbf16>, vector<4x8192xbf16>, vector<8x8192xf32> -> vector<8x8192xf32>
    %45 = arith.addf %40, %44 : vector<8x8192xf32>
    %46 = arith.truncf %45 : vector<8x8192xf32> to vector<8x8192xbf16>
    %c0_29 = arith.constant 0 : index
    %c0_30 = arith.constant 0 : index
    %47 = vector.load %arg5[%c0_29, %c0_30] : memref<8x8192xbf16, #tpu.memory_space<vmem>>, vector<8x8192xbf16>
    tpu.vector_store %arg5[%c0_29, %c0_30], %46 {strides = array<i32>} : memref<8x8192xbf16, #tpu.memory_space<vmem>>, vector<8x8192xbf16>,
    %c0_31 = arith.constant 0 : index
    %c0_32 = arith.constant 0 : index
    %48 = vector.load %arg4[%c0_31, %c0_32] : memref<1x8192xf32, #tpu.memory_space<vmem>>, vector<1x8192xf32>
    %cst_33 = arith.constant 0.000000e+00 : f32
    %49 = vector.broadcast %cst_33 : f32 to vector<1x8192xf32>
    %50 = arith.cmpf ogt, %48, %49 : vector<1x8192xf32>
    %cst_34 = arith.constant 0.000000e+00 : f32
    %51 = vector.shape_cast %50 : vector<1x8192xi1> to vector<1x8192xi1>
    %52 = vector.broadcast %51 : vector<1x8192xi1> to vector<8x8192xi1>
    %53 = vector.broadcast %cst_34 : f32 to vector<8x8192xf32>
    %54 = arith.select %52, %45, %53 : vector<8x8192xi1>, vector<8x8192xf32>
    %c0_i32 = arith.constant 0 : i32
    %55 = arith.cmpi eq, %arg1, %c0_i32 : i32
    %56 = arith.extui %55 : i1 to i32
    %c0_i32_35 = arith.constant 0 : i32
    %57 = arith.cmpi ne, %56, %c0_i32_35 : i32
    scf.if %57 {
      %cst_46 = arith.constant 0.000000e+00 : f32
      %69 = vector.broadcast %cst_46 : f32 to vector<8x1xf32>
      %c0_47 = arith.constant 0 : index
      %c0_48 = arith.constant 0 : index
      %70 = vector.load %arg6[%c0_47, %c0_48] : memref<8x1xf32, #tpu.memory_space<vmem>>, vector<8x1xf32>
      tpu.vector_store %arg6[%c0_47, %c0_48], %69 {strides = array<i32>} : memref<8x1xf32, #tpu.memory_space<vmem>>, vector<8x1xf32>,
      %cst_49 = arith.constant 0.000000e+00 : f32
      %71 = vector.broadcast %cst_49 : f32 to vector<8x1xf32>
      %c0_50 = arith.constant 0 : index
      %c0_51 = arith.constant 0 : index
      %72 = vector.load %arg7[%c0_50, %c0_51] : memref<8x1xf32, #tpu.memory_space<vmem>>, vector<8x1xf32>
      tpu.vector_store %arg7[%c0_50, %c0_51], %71 {strides = array<i32>} : memref<8x1xf32, #tpu.memory_space<vmem>>, vector<8x1xf32>,
    } else {
    }
    %c0_36 = arith.constant 0 : index
    %c0_37 = arith.constant 0 : index
    %58 = vector.load %arg6[%c0_36, %c0_37] : memref<8x1xf32, #tpu.memory_space<vmem>>, vector<8x1xf32>
    %cst_38 = arith.constant dense<0.000000e+00> : vector<8xf32>
    %59 = vector.multi_reduction <add>, %54, %cst_38 [1] : vector<8x8192xf32> to vector<8xf32>
    %60 = vector.shape_cast %59 : vector<8xf32> to vector<8x1xf32>
    %61 = arith.addf %58, %60 : vector<8x1xf32>
    %c0_39 = arith.constant 0 : index
    %c0_40 = arith.constant 0 : index
    %62 = vector.load %arg6[%c0_39, %c0_40] : memref<8x1xf32, #tpu.memory_space<vmem>>, vector<8x1xf32>
    tpu.vector_store %arg6[%c0_39, %c0_40], %61 {strides = array<i32>} : memref<8x1xf32, #tpu.memory_space<vmem>>, vector<8x1xf32>,
    %c0_41 = arith.constant 0 : index
    %c0_42 = arith.constant 0 : index
    %63 = vector.load %arg7[%c0_41, %c0_42] : memref<8x1xf32, #tpu.memory_space<vmem>>, vector<8x1xf32>
    %64 = arith.mulf %54, %54 : vector<8x8192xf32>
    %cst_43 = arith.constant dense<0.000000e+00> : vector<8xf32>
    %65 = vector.multi_reduction <add>, %64, %cst_43 [1] : vector<8x8192xf32> to vector<8xf32>
    %66 = vector.shape_cast %65 : vector<8xf32> to vector<8x1xf32>
    %67 = arith.addf %63, %66 : vector<8x1xf32>
    %c0_44 = arith.constant 0 : index
    %c0_45 = arith.constant 0 : index
    %68 = vector.load %arg7[%c0_44, %c0_45] : memref<8x1xf32, #tpu.memory_space<vmem>>, vector<8x1xf32>
    tpu.vector_store %arg7[%c0_44, %c0_45], %67 {strides = array<i32>} : memref<8x1xf32, #tpu.memory_space<vmem>>, vector<8x1xf32>,
    return
  }
  func.func @transform_0(%arg0: i32, %arg1: i32) -> (i32, i32, i32) {
    %c0_i32 = arith.constant 0 : i32
    %c0_i32_0 = arith.constant 0 : i32
    %c0_i32_1 = arith.constant 0 : i32
    %c0_i32_2 = arith.constant 0 : i32
    return %c0_i32, %c0_i32_0, %c0_i32_1 : i32, i32, i32
  }
  func.func @transform_1(%arg0: i32, %arg1: i32) -> (i32, i32, i32) {
    %c1_i32 = arith.constant 1 : i32
    %0 = arith.muli %arg0, %c1_i32 : i32
    %1 = arith.addi %0, %arg1 : i32
    %c0_i32 = arith.constant 0 : i32
    %c0_i32_0 = arith.constant 0 : i32
    %c0_i32_1 = arith.constant 0 : i32
    return %1, %c0_i32, %c0_i32_0 : i32, i32, i32
  }
  func.func @transform_2(%arg0: i32, %arg1: i32) -> (i32, i32) {
    %c1_i32 = arith.constant 1 : i32
    %0 = arith.muli %arg0, %c1_i32 : i32
    %1 = arith.addi %0, %arg1 : i32
    %c1_i32_0 = arith.constant 1 : i32
    %c0_i32 = arith.constant 0 : i32
    %2 = arith.cmpi eq, %c1_i32_0, %c0_i32 : i32
    %c1_i32_1 = arith.constant 1 : i32
    %3 = arith.select %2, %c1_i32_1, %c1_i32_0 : i32
    %4 = arith.remsi %1, %3 : i32
    %c0_i32_2 = arith.constant 0 : i32
    %5 = arith.cmpi ne, %4, %c0_i32_2 : i32
    %c0_i32_3 = arith.constant 0 : i32
    %6 = arith.cmpi slt, %4, %c0_i32_3 : i32
    %c0_i32_4 = arith.constant 0 : i32
    %7 = arith.cmpi slt, %3, %c0_i32_4 : i32
    %8 = arith.xori %6, %7 : i1
    %9 = arith.andi %8, %5 : i1
    %10 = arith.addi %4, %3 : i32
    %11 = arith.select %9, %10, %4 : i32
    %c0_i32_5 = arith.constant 0 : i32
    %c0_i32_6 = arith.constant 0 : i32
    return %c0_i32_5, %11 : i32, i32
  }
  func.func @transform_3(%arg0: i32, %arg1: i32) -> (i32, i32) {
    %c1_i32 = arith.constant 1 : i32
    %0 = arith.muli %arg0, %c1_i32 : i32
    %1 = arith.addi %0, %arg1 : i32
    %c0_i32 = arith.constant 0 : i32
    %c0_i32_0 = arith.constant 0 : i32
    return %c0_i32, %1 : i32, i32
  }
  func.func @transform_4(%arg0: i32, %arg1: i32) -> (i32, i32) {
    %c0_i32 = arith.constant 0 : i32
    %c0_i32_0 = arith.constant 0 : i32
    return %arg0, %c0_i32 : i32, i32
  }
  func.func @transform_5(%arg0: i32, %arg1: i32) -> (i32, i32) {
    %c0_i32 = arith.constant 0 : i32
    %c0_i32_0 = arith.constant 0 : i32
    return %arg0, %c0_i32 : i32, i32
  }
}

module attributes {stable_mosaic.version = 11 : i64} {
  func.func @bn_lrelu_nchw_kernel(%arg0: i32, %arg1: i32, %arg2: memref<8x1x64x128xbf16, #tpu.memory_space<vmem>>, %arg3: memref<8x1x1xf32, #tpu.memory_space<vmem>>, %arg4: memref<8x1x1xf32, #tpu.memory_space<vmem>>, %arg5: memref<1x8x16x16xf32, #tpu.memory_space<vmem>>) attributes {dimension_semantics = [#tpu.dimension_semantics<parallel>, #tpu.dimension_semantics<parallel>], iteration_bounds = array<i64: 2, 1>, scalar_prefetch = 0 : i64, scratch_operands = 0 : i64, tpu.core_type = #tpu.core_type<tc>, window_params = [{transform_indices = @transform_0, window_bounds = array<i64: 8, 1, 64, 128>}, {transform_indices = @transform_1, window_bounds = array<i64: 8, 1, 1>}, {transform_indices = @transform_2, window_bounds = array<i64: 8, 1, 1>}, {transform_indices = @transform_3, window_bounds = array<i64: 1, 8, 16, 16>}]} {
    %c0 = arith.constant 0 : index
    %c0_0 = arith.constant 0 : index
    %c0_1 = arith.constant 0 : index
    %c0_2 = arith.constant 0 : index
    %0 = vector.load %arg2[%c0, %c0_0, %c0_1, %c0_2] : memref<8x1x64x128xbf16, #tpu.memory_space<vmem>>, vector<8x1x64x128xbf16>
    %1 = vector.shape_cast %0 : vector<8x1x64x128xbf16> to vector<8x64x128xbf16>
    %2 = vector.extract_strided_slice %1 {offsets = [0, 0, 0], sizes = [8, 16, 16], strides = [1, 1, 1]} : vector<8x64x128xbf16> to vector<8x16x16xbf16>
    %3 = arith.extf %2 : vector<8x16x16xbf16> to vector<8x16x16xf32>
    %c0_3 = arith.constant 0 : index
    %c0_4 = arith.constant 0 : index
    %c0_5 = arith.constant 0 : index
    %4 = vector.load %arg3[%c0_3, %c0_4, %c0_5] : memref<8x1x1xf32, #tpu.memory_space<vmem>>, vector<8x1x1xf32>
    %5 = vector.broadcast %4 : vector<8x1x1xf32> to vector<8x16x16xf32>
    %6 = arith.mulf %3, %5 : vector<8x16x16xf32>
    %c0_6 = arith.constant 0 : index
    %c0_7 = arith.constant 0 : index
    %c0_8 = arith.constant 0 : index
    %7 = vector.load %arg4[%c0_6, %c0_7, %c0_8] : memref<8x1x1xf32, #tpu.memory_space<vmem>>, vector<8x1x1xf32>
    %8 = vector.broadcast %7 : vector<8x1x1xf32> to vector<8x16x16xf32>
    %9 = arith.addf %6, %8 : vector<8x16x16xf32>
    %cst = arith.constant 0.000000e+00 : f32
    %10 = vector.broadcast %cst : f32 to vector<8x16x16xf32>
    %11 = arith.cmpf ogt, %9, %10 : vector<8x16x16xf32>
    %cst_9 = arith.constant 1.000000e-01 : f32
    %12 = vector.broadcast %cst_9 : f32 to vector<8x16x16xf32>
    %13 = arith.mulf %12, %9 : vector<8x16x16xf32>
    %14 = arith.select %11, %9, %13 : vector<8x16x16xi1>, vector<8x16x16xf32>
    %15 = vector.shape_cast %14 : vector<8x16x16xf32> to vector<1x8x16x16xf32>
    %c0_10 = arith.constant 0 : index
    %c0_11 = arith.constant 0 : index
    %c0_12 = arith.constant 0 : index
    %c0_13 = arith.constant 0 : index
    %16 = vector.load %arg5[%c0_10, %c0_11, %c0_12, %c0_13] : memref<1x8x16x16xf32, #tpu.memory_space<vmem>>, vector<1x8x16x16xf32>
    tpu.vector_store %arg5[%c0_10, %c0_11, %c0_12, %c0_13], %15 {strides = array<i32>} : memref<1x8x16x16xf32, #tpu.memory_space<vmem>>, vector<1x8x16x16xf32>,
    return
  }
  func.func @transform_0(%arg0: i32, %arg1: i32) -> (i32, i32, i32, i32) {
    %c0_i32 = arith.constant 0 : i32
    %c0_i32_0 = arith.constant 0 : i32
    %c0_i32_1 = arith.constant 0 : i32
    return %arg1, %arg0, %c0_i32, %c0_i32_0 : i32, i32, i32, i32
  }
  func.func @transform_1(%arg0: i32, %arg1: i32) -> (i32, i32, i32) {
    %c0_i32 = arith.constant 0 : i32
    %c0_i32_0 = arith.constant 0 : i32
    %c0_i32_1 = arith.constant 0 : i32
    return %arg1, %c0_i32, %c0_i32_0 : i32, i32, i32
  }
  func.func @transform_2(%arg0: i32, %arg1: i32) -> (i32, i32, i32) {
    %c0_i32 = arith.constant 0 : i32
    %c0_i32_0 = arith.constant 0 : i32
    %c0_i32_1 = arith.constant 0 : i32
    return %arg1, %c0_i32, %c0_i32_0 : i32, i32, i32
  }
  func.func @transform_3(%arg0: i32, %arg1: i32) -> (i32, i32, i32, i32) {
    %c0_i32 = arith.constant 0 : i32
    %c0_i32_0 = arith.constant 0 : i32
    %c0_i32_1 = arith.constant 0 : i32
    return %arg0, %arg1, %c0_i32, %c0_i32_0 : i32, i32, i32, i32
  }
}

</mosaic_0001>

<bundles_post_ra>
// kernel: cnn_block.3
= control target key start
LH: loop header
LB: loop body
LE: loop exit
PB: predicated region body
PF: predicated region fallthrough
CT: control target
= control target key end

     0   :  { %8 = vsyncpa [#allocation4], 0  ;;  %s1455_s0 = inlined_call_operand.vmem [shape: bf16[8,2,64,128], index: 0, kind: input, shape index: {}]   ;;  %s1456_s1 = inlined_call_operand.vmem [shape: f32[8,1,1], index: 1, kind: input, shape index: {}]   ;;  %s1457_s2 = inlined_call_operand.vmem [shape: f32[8,1,1], index: 2, kind: input, shape index: {}]   ;;  %s1458_s3 = inlined_call_operand.hbm [shape: f32[2,8,16,16], index: 3, kind: output, shape index: {}]  }
   0x1   :  { %10 = vsyncpa [#allocation4 + $0x1], 0  ;;  %s1172_s12 = smov 0   ;;  %s1174_s13 = smov 0  }
   0x2   :  { %s1176_s14 = smov 0   ;;  %s1178_s15 = smov 0  }
   0x3   :  { %s1180_s16 = smov 0   ;;  %s1182_s17 = smov 0  }
   0x4 LB: > { %s934_s18 = sadd.s32 4294967295, %s1146_s17   ;;  %s935_s19 = sadd.s32 4294967294, %s1146_s17   ;;  %s1146_s17 = sphi %s1182_s17, %s16_s17   ;;  %s1142_s16 = sphi %s1180_s16, %s1465_s16   ;;  %s1138_s15 = sphi %s1178_s15, %s1464_s15   ;;  %s1134_s14 = sphi %s1176_s14, %s1463_s14   ;;  %s1130_s13 = sphi %s1174_s13, %s1462_s13   ;;  %s1126_s12 = sphi %s1172_s12, %s1461_s12  }
   0x5   : > { %s28_s20 = sadd.s32 1, %s1142_s16  ;;  %s37_s21 = sadd.s32 1, %s1134_s14 }
   0x6   : > { %p30_p0 = scmp.ge.s32.totalorder %s28_s20, 2  ;;  %p44_p1 = scmp.ne.s32.totalorder %s1134_s14, %s1130_s13 }
   0x7   : > { %p45_p2 = scmp.eq.s32.totalorder %s1146_s17, 0  ;;  %p128_p3 = scmp.eq.s32.totalorder %s934_s18, 1 }
   0x8   : > { %s1467_s20 = smov (%p30_p0, %s28_s20), 0  ;;  %p133_p6 = scmp.ne.s32.totalorder %s1130_s13, %s1126_s12 }
   0x9   : > { %p46_p4 = por %p45_p2, %p44_p1  ;;  %p1211_p5 = por %p128_p3, %p44_p1 }
   0xa   : > { %s33_s23 = ssub.s32 %s1142_s16, %s1467_s20  ;;  %p134_p8 = scmp.eq.s32.totalorder %s935_s19, 1 }
   0xb   : > { %p35_p7 = scmp.eq.s32.totalorder %s33_s23, 0  ;;  %p939_p10 = scmp.ge.s32.totalorder %s1146_s17, 2 }
   0xc   : > { %p1222_p9 = por %p134_p8, %p133_p6 }
   0xd   : > { %s1220_s24 = scalar_select %p35_p7, %s1134_s14, %s37_s21  }
   0xe   : > { %166 = sbr.rel (%p939_p10) target bundleno = 41 (0x29), region = 24 }
  0x15   : > { %169 = sbr.rel (!%p46_p4) target bundleno = 41 (0x29), region = 28  ;;  %s171_s26 = sand.u32 (%p46_p4), 1, %s1134_s14  }
  0x16   : > { %s967_s27 = sshll.u32 (%p46_p4), %s1142_s16, 5  ;;  %s940_s28 = sshll.u32 (%p46_p4), %s171_s26, 8 }
  0x17   : > { %s1234_s4 = scalar_lea.vmem (%p46_p4), %s1455_s0, %s967_s27  ;;  %s1239_s5 = scalar_lea.vmem (%p46_p4), [#allocation2], %s940_s28 }
  0x18   : > { %v195_v0 = vld [vmem:[%s1234_s4] sm:$0xff] (%p46_p4)   ;;  %v199_v1 = vld [vmem:[%s1234_s4 + $0x8] sm:$0xff] (%p46_p4)   ;;  %v203_v2 = vld [vmem:[%s1234_s4 + $0x10] sm:$0xff] (%p46_p4)  }
  0x19   : > { %196 = vst [vmem:[%s1239_s5] sm:$0xff] (%p46_p4), %v195_v0   ;;  %200 = vst [vmem:[%s1239_s5 + $0x8] sm:$0xff] (%p46_p4), %v199_v1   ;;  %v207_v3 = vld [vmem:[%s1234_s4 + $0x18] sm:$0xff] (%p46_p4)   ;;  %v211_v4 = vld [vmem:[%s1234_s4 + $0x40] sm:$0xff] (%p46_p4)  }
  0x1a   : > { %204 = vst [vmem:[%s1239_s5 + $0x10] sm:$0xff] (%p46_p4), %v203_v2   ;;  %v215_v5 = vld [vmem:[%s1234_s4 + $0x48] sm:$0xff] (%p46_p4)   ;;  %208 = vst [vmem:[%s1239_s5 + $0x18] sm:$0xff] (%p46_p4), %v207_v3   ;;  %v219_v6 = vld [vmem:[%s1234_s4 + $0x50] sm:$0xff] (%p46_p4)  }
  0x1b   : > { %212 = vst [vmem:[%s1239_s5 + $0x20] sm:$0xff] (%p46_p4), %v211_v4   ;;  %216 = vst [vmem:[%s1239_s5 + $0x28] sm:$0xff] (%p46_p4), %v215_v5   ;;  %v223_v7 = vld [vmem:[%s1234_s4 + $0x58] sm:$0xff] (%p46_p4)   ;;  %v227_v8 = vld [vmem:[%s1234_s4 + $0x80] sm:$0xff] (%p46_p4)  }
  0x1c   : > { %220 = vst [vmem:[%s1239_s5 + $0x30] sm:$0xff] %v219_v6   ;;  %224 = vst [vmem:[%s1239_s5 + $0x38] sm:$0xff] %v223_v7   ;;  %v231_v9 = vld [vmem:[%s1234_s4 + $0x88] sm:$0xff]   ;;  %v235_v10 = vld [vmem:[%s1234_s4 + $0x90] sm:$0xff]  }
  0x1d   : > { %228 = vst [vmem:[%s1239_s5 + $0x40] sm:$0xff] %v227_v8   ;;  %v239_v11 = vld [vmem:[%s1234_s4 + $0x98] sm:$0xff]   ;;  %232 = vst [vmem:[%s1239_s5 + $0x48] sm:$0xff] %v231_v9   ;;  %v243_v12 = vld [vmem:[%s1234_s4 + $0xc0] sm:$0xff]  }
  0x1e   : > { %236 = vst [vmem:[%s1239_s5 + $0x50] sm:$0xff] %v235_v10   ;;  %240 = vst [vmem:[%s1239_s5 + $0x58] sm:$0xff] %v239_v11   ;;  %v247_v13 = vld [vmem:[%s1234_s4 + $0xc8] sm:$0xff]   ;;  %v251_v14 = vld [vmem:[%s1234_s4 + $0xd0] sm:$0xff]  }
  0x1f   : > { %244 = vst [vmem:[%s1239_s5 + $0x60] sm:$0xff] %v243_v12   ;;  %248 = vst [vmem:[%s1239_s5 + $0x68] sm:$0xff] %v247_v13   ;;  %v255_v15 = vld [vmem:[%s1234_s4 + $0xd8] sm:$0xff]   ;;  %v259_v16 = vld [vmem:[%s1234_s4 + $0x100] sm:$0xff]  }
  0x20   : > { %252 = vst [vmem:[%s1239_s5 + $0x70] sm:$0xff] %v251_v14   ;;  %v263_v17 = vld [vmem:[%s1234_s4 + $0x108] sm:$0xff]   ;;  %256 = vst [vmem:[%s1239_s5 + $0x78] sm:$0xff] %v255_v15   ;;  %v267_v18 = vld [vmem:[%s1234_s4 + $0x110] sm:$0xff]  }
  0x21   : > { %260 = vst [vmem:[%s1239_s5 + $0x80] sm:$0xff] %v259_v16   ;;  %264 = vst [vmem:[%s1239_s5 + $0x88] sm:$0xff] %v263_v17   ;;  %v271_v19 = vld [vmem:[%s1234_s4 + $0x118] sm:$0xff]   ;;  %v275_v20 = vld [vmem:[%s1234_s4 + $0x140] sm:$0xff]  }
  0x22   : > { %268 = vst [vmem:[%s1239_s5 + $0x90] sm:$0xff] %v267_v18   ;;  %272 = vst [vmem:[%s1239_s5 + $0x98] sm:$0xff] %v271_v19   ;;  %v279_v21 = vld [vmem:[%s1234_s4 + $0x148] sm:$0xff]   ;;  %v283_v22 = vld [vmem:[%s1234_s4 + $0x150] sm:$0xff]  }
  0x23   : > { %276 = vst [vmem:[%s1239_s5 + $0xa0] sm:$0xff] %v275_v20   ;;  %v287_v23 = vld [vmem:[%s1234_s4 + $0x158] sm:$0xff]   ;;  %280 = vst [vmem:[%s1239_s5 + $0xa8] sm:$0xff] %v279_v21   ;;  %v291_v24 = vld [vmem:[%s1234_s4 + $0x180] sm:$0xff]  }
  0x24   : > { %284 = vst [vmem:[%s1239_s5 + $0xb0] sm:$0xff] %v283_v22   ;;  %288 = vst [vmem:[%s1239_s5 + $0xb8] sm:$0xff] %v287_v23   ;;  %v295_v25 = vld [vmem:[%s1234_s4 + $0x188] sm:$0xff]   ;;  %v299_v26 = vld [vmem:[%s1234_s4 + $0x190] sm:$0xff]  }
  0x25   : > { %292 = vst [vmem:[%s1239_s5 + $0xc0] sm:$0xff] %v291_v24   ;;  %296 = vst [vmem:[%s1239_s5 + $0xc8] sm:$0xff] %v295_v25   ;;  %v303_v27 = vld [vmem:[%s1234_s4 + $0x198] sm:$0xff]   ;;  %v307_v28 = vld [vmem:[%s1234_s4 + $0x1c0] sm:$0xff]  }
  0x26   : > { %300 = vst [vmem:[%s1239_s5 + $0xd0] sm:$0xff] %v299_v26   ;;  %v311_v29 = vld [vmem:[%s1234_s4 + $0x1c8] sm:$0xff]   ;;  %304 = vst [vmem:[%s1239_s5 + $0xd8] sm:$0xff] %v303_v27   ;;  %v315_v30 = vld [vmem:[%s1234_s4 + $0x1d0] sm:$0xff]  }
  0x27   : > { %308 = vst [vmem:[%s1239_s5 + $0xe0] sm:$0xff] %v307_v28   ;;  %312 = vst [vmem:[%s1239_s5 + $0xe8] sm:$0xff] %v311_v29   ;;  %v319_v31 = vld [vmem:[%s1234_s4 + $0x1d8] sm:$0xff]  }
  0x28   : > { %316 = vst [vmem:[%s1239_s5 + $0xf0] sm:$0xff] %v315_v30   ;;  %320 = vst [vmem:[%s1239_s5 + $0xf8] sm:$0xff] %v319_v31  }
  0x29 PF: > { %p943_p11 = scmp.ge.s32.totalorder %s1146_s17, 1  ;;  %p472_p12 = scmp.lt.s32.totalorder %s1146_s17, 3 }
  0x2b   : > { %p473_p13 = pnand %p943_p11, %p472_p12 }
  0x2c   : > { %v948_v32 = vld [vmem:[%s1456_s1 + $0x2] ss:$0 sm:$0xff] (!%p473_p13)  ;;  %v946_v33 = vld [vmem:[%s1456_s1] ss:$0 sm:$0xff] (!%p473_p13)  ;;  %v1148_v34 = vmov (!%p473_p13), 0   ;;  %s1353_s4 = sand.u32 (!%p473_p13), 1, %s1130_s13  }
  0x2d   : > { %476 = sbr.rel (%p473_p13) target bundleno = 225 (0xe1), region = 69  ;;  %1067 = vset.pattern.permute.xlu1 (!%p473_p13), %v1148_v34  ;;  %1066 = vset.pattern.permute.xlu0 (!%p473_p13), %v1148_v34  ;;  %v949_v35 = vld [vmem:[%s1456_s1 + $0x3] ss:$0 sm:$0xff] (!%p473_p13)  ;;  %v947_v36 = vld [vmem:[%s1456_s1 + $0x1] ss:$0 sm:$0xff] (!%p473_p13)  ;;  %s944_s5 = sshll.u32 (!%p473_p13), %s1353_s4, 8 }
  0x2e   : > { %611 = vperm.xlu1 (!%p473_p13), %1067, %v948_v32   ;;  %603 = vperm.xlu0 (!%p473_p13), %1066, %v946_v33   ;;  %v951_v37 = vld [vmem:[%s1456_s1 + $0x5] ss:$0 sm:$0xff] (!%p473_p13)  ;;  %v950_v38 = vld [vmem:[%s1456_s1 + $0x4] ss:$0 sm:$0xff] (!%p473_p13)  ;;  %v953_v39 = vld [vmem:[%s1456_s1 + $0x7] ss:$0 sm:$0xff] (!%p473_p13) }
  0x2f   : > { %v952_v40 = vld [vmem:[%s1456_s1 + $0x6] ss:$0 sm:$0xff] (!%p473_p13)  ;;  %v955_v41 = vld [vmem:[%s1457_s2 + $0x1] ss:$0 sm:$0xff] (!%p473_p13)  ;;  %v954_v42 = vld [vmem:[%s1457_s2] ss:$0 sm:$0xff] (!%p473_p13) }
  0x30   : > { %v957_v43 = vld [vmem:[%s1457_s2 + $0x3] ss:$0 sm:$0xff] (!%p473_p13)  ;;  %v956_v44 = vld [vmem:[%s1457_s2 + $0x2] ss:$0 sm:$0xff] (!%p473_p13)  ;;  %v959_v45 = vld [vmem:[%s1457_s2 + $0x5] ss:$0 sm:$0xff] (!%p473_p13) }
  0x31   : > { %v958_v46 = vld [vmem:[%s1457_s2 + $0x4] ss:$0 sm:$0xff] (!%p473_p13)  ;;  %v961_v47 = vld [vmem:[%s1457_s2 + $0x7] ss:$0 sm:$0xff] (!%p473_p13)  ;;  %v960_v48 = vld [vmem:[%s1457_s2 + $0x6] ss:$0 sm:$0xff] (!%p473_p13) }
  0x32   : > { %615 = vperm.xlu1 (!%p473_p13), %1067, %v949_v35   ;;  %607 = vperm.xlu0 (!%p473_p13), %1066, %v947_v36   ;;  %s481_s6 = scalar_lea.vmem (!%p473_p13), [#allocation2], %s944_s5  ;;  %vm794_vm0 = vcmask (!%p473_p13), 130048   ;;  %s945_s7 = sshll.u32 (!%p473_p13), %s1353_s4, 7 }
  0x33   : > { %v1002_v53 = vld [vmem:[%s481_s6 + $0x40] sm:$0xff] (!%p473_p13)   ;;  %s1363_s8 = scalar_lea.vmem (!%p473_p13), [#allocation3], %s945_s7  ;;  %s968_s9 = sshll.u32 (!%p473_p13), %s1138_s15, 11 }
  0x34   : > { %v970_v54 = vld [vmem:[%s481_s6] sm:$0xff]   ;;  %v979_v60 = vunpack.c.l.bf16 %v1002_v53  ;;  %v980_v63 = vunpack.c.h.bf16 %v1002_v53  ;;  %s828_s10 = sshll.u32 %s1363_s8, 4  ;;  %s1396_s18 = scalar_lea.hbm %s1458_s3, %s968_s9  ;;  %s1398_s10 = int_to_ptr.vmem [resolvable:$true] %s828_s10 }
  0x35   : > { %v1003_v55 = vld [vmem:[%s481_s6 + $0x60] sm:$0xff]   ;;  %v971_v0 = vunpack.c.l.bf16 %v970_v54  ;;  %v972_v1 = vunpack.c.h.bf16 %v970_v54  ;;  %s812_s19 = scalar_lea.sflag [#allocation4], %s1353_s4  ;;  %s1068_s21 = scalar_lea.vmem %s1398_s10, 2048 }
  0x36   : > { %623 = vperm.xlu1 %1067, %v951_v37   ;;  %619 = vperm.xlu0 %1066, %v950_v38   ;;  %v1001_v56 = vld [vmem:[%s481_s6 + $0x20] sm:$0xff]   ;;  %v983_v2 = vunpack.c.l.bf16 %v1003_v55  ;;  %v984_v4 = vunpack.c.h.bf16 %v1003_v55  ;;  %p1069_p0 = scmp.ne.s32.totalorder %s1398_s10, %s1068_s21  ;;  %s1149_s23 = smov [#allocation3]  }
  0x37   : > { %v1005_v58 = vld [vmem:[%s481_s6 + $0xa0] sm:$0xff]   ;;  %v975_v5 = vunpack.c.l.bf16 %v1001_v56  ;;  %v976_v6 = vunpack.c.h.bf16 %v1001_v56  ;;  %s1072_s26 = sshll.u32 %s1149_s23, 4  ;;  %s1073_s26 = int_to_ptr.vmem [resolvable:$false] %s1072_s26 }
  0x38   : > { %v1004_v61 = vld [vmem:[%s481_s6 + $0x80] sm:$0xff]   ;;  %v991_v7 = vunpack.c.l.bf16 %v1005_v58  ;;  %v992_v8 = vunpack.c.h.bf16 %v1005_v58  ;;  %p1070_p1 = pnand %p1069_p0, %p1211_p5  ;;  %s1074_s27 = scalar_lea.vmem %s1073_s26, 4096 }
  0x39   : > { %v1007_v62 = vld [vmem:[%s481_s6 + $0xe0] sm:$0xff]   ;;  %v987_v9 = vunpack.c.l.bf16 %v1004_v61  ;;  %v988_v10 = vunpack.c.h.bf16 %v1004_v61  ;;  %p1075_p3 = scmp.lt.s32.totalorder %s1398_s10, %s1073_s26  ;;  %p1076_p4 = scmp.lt.s32.totalorder %s1074_s27, %s1068_s21 }
  0x3a   : > { %631 = vperm.xlu1 %1067, %v953_v39   ;;  %627 = vperm.xlu0 %1066, %v952_v40   ;;  %v1006_v3 = vld [vmem:[%s481_s6 + $0xc0] sm:$0xff]   ;;  %v999_v12 = vunpack.c.l.bf16 %v1007_v62  ;;  %v1000_v14 = vunpack.c.h.bf16 %v1007_v62  ;;  %p1071_p2 = pneg %p1070_p1 }
  0x3b   : > { %v995_v15 = vunpack.c.l.bf16 %v1006_v3  ;;  %v996_v16 = vunpack.c.h.bf16 %v1006_v3  ;;  %p1077_p6 = por %p1076_p4, %p1075_p3 }
  0x3d   : > { %p1078_p7 = pnand %p1077_p6, %p1071_p2 }
  0x3e   : > { %703 = vperm.xlu1 %1067, %v955_v41   ;;  %699 = vperm.xlu0 %1066, %v954_v42  }
  0x42   : > { %711 = vperm.xlu1 %1067, %v957_v43   ;;  %707 = vperm.xlu0 %1066, %v956_v44  }
  0x46   : > { %719 = vperm.xlu1 %1067, %v959_v45   ;;  %715 = vperm.xlu0 %1066, %v958_v46  }
  0x4a   : > { %727 = vperm.xlu1 %1067, %v961_v47   ;;  %723 = vperm.xlu0 %1066, %v960_v48  }
  0xad   : > { %v612_v49 = vpop.permute.xlu1 %611  ;;  %v604_v50 = vpop.permute.xlu0 %603 }
  0xae   : > { %v638_v17 = vmul.f32 %v979_v60, %v612_v49  ;;  %v639_v18 = vmul.f32 %v980_v63, %v612_v49  ;;  %v634_v19 = vmul.f32 %v971_v0, %v604_v50  ;;  %v635_v20 = vmul.f32 %v972_v1, %v604_v50 }
  0xb1   : > { %v616_v51 = vpop.permute.xlu1 %615  ;;  %v608_v52 = vpop.permute.xlu0 %607 }
  0xb2   : > { %v640_v21 = vmul.f32 %v983_v2, %v616_v51  ;;  %v641_v22 = vmul.f32 %v984_v4, %v616_v51  ;;  %v636_v23 = vmul.f32 %v975_v5, %v608_v52  ;;  %v637_v24 = vmul.f32 %v976_v6, %v608_v52 }
  0xb5   : > { %v624_v57 = vpop.permute.xlu1 %623  ;;  %v620_v59 = vpop.permute.xlu0 %619 }
  0xb6   : > { %v644_v25 = vmul.f32 %v991_v7, %v624_v57  ;;  %v645_v26 = vmul.f32 %v992_v8, %v624_v57  ;;  %v642_v27 = vmul.f32 %v987_v9, %v620_v59  ;;  %v643_v28 = vmul.f32 %v988_v10, %v620_v59 }
  0xb9   : > { %v632_v11 = vpop.permute.xlu1 %631  ;;  %v628_v13 = vpop.permute.xlu0 %627 }
  0xba   : > { %v648_v35 = vmul.f32 %v999_v12, %v632_v11  ;;  %v649_v36 = vmul.f32 %v1000_v14, %v632_v11  ;;  %v1357_v37 = vmul.f32 %v995_v15, %v628_v13  ;;  %v1359_v38 = vmul.f32 %v996_v16, %v628_v13 }
  0xbd   : > { %v704_v29 = vpop.permute.xlu1 %703  ;;  %v700_v30 = vpop.permute.xlu0 %699 }
  0xbe   : > { %v732_v31 = vadd.f32 %v704_v29, %v636_v23  ;;  %v733_v32 = vadd.f32 %v704_v29, %v637_v24  ;;  %v730_v33 = vadd.f32 %v700_v30, %v634_v19  ;;  %v731_v34 = vadd.f32 %v700_v30, %v635_v20 }
  0xc0   : > { %vm748_vm1 = vcmp.gt.f32.partialorder %v732_v31, 0.0  ;;  %vm749_vm2 = vcmp.gt.f32.partialorder %v733_v32, 0.0  ;;  %v764_v39 = vmul.f32 0.1, %v732_v31  ;;  %v765_v40 = vmul.f32 0.1, %v733_v32 }
  0xc1   : > { %vm746_vm3 = vcmp.gt.f32.partialorder %v730_v33, 0.0  ;;  %vm747_vm4 = vcmp.gt.f32.partialorder %v731_v34, 0.0  ;;  %v762_v41 = vmul.f32 0.1, %v730_v33  ;;  %v763_v42 = vmul.f32 0.1, %v731_v34  ;;  %v712_v43 = vpop.permute.xlu1 %711  ;;  %v708_v44 = vpop.permute.xlu0 %707 }
  0xc2   : > { %v780_v45 = vsel %vm748_vm1, %v732_v31, %v764_v39  ;;  %v781_v46 = vsel %vm749_vm2, %v733_v32, %v765_v40  ;;  %v736_v47 = vadd.f32 %v712_v43, %v640_v21  ;;  %v737_v48 = vadd.f32 %v712_v43, %v641_v22 }
  0xc3   : > { %797 = vst.msk [vmem:[%s1363_s8 + $0x10] sm:$0xff] %vm794_vm0, %v780_v45  ;;  %798 = vst.msk [vmem:[%s1363_s8 + $0x18] sm:$0xff] %vm794_vm0, %v781_v46  ;;  %v778_v49 = vsel %vm746_vm3, %v730_v33, %v762_v41  ;;  %v779_v50 = vsel %vm747_vm4, %v731_v34, %v763_v42  ;;  %v734_v51 = vadd.f32 %v708_v44, %v638_v17 }
  0xc4   : > { %v735_v52 = vadd.f32 %v708_v44, %v639_v18  ;;  %795 = vst.msk [vmem:[%s1363_s8] sm:$0xff] %vm794_vm0, %v778_v49  ;;  %796 = vst.msk [vmem:[%s1363_s8 + $0x8] sm:$0xff] %vm794_vm0, %v779_v50  ;;  %vm752_vm5 = vcmp.gt.f32.partialorder %v736_v47, 0.0  ;;  %vm753_vm6 = vcmp.gt.f32.partialorder %v737_v48, 0.0  ;;  %v768_v53 = vmul.f32 0.1, %v736_v47 }
  0xc5   : > { %v769_v54 = vmul.f32 0.1, %v737_v48  ;;  %vm750_vm7 = vcmp.gt.f32.partialorder %v734_v51, 0.0  ;;  %v766_v55 = vmul.f32 0.1, %v734_v51  ;;  %v720_v57 = vpop.permute.xlu1 %719  ;;  %v716_v58 = vpop.permute.xlu0 %715 }
  0xc6   : > { %vm751_vm8 = vcmp.gt.f32.partialorder %v735_v52, 0.0  ;;  %v767_v56 = vmul.f32 0.1, %v735_v52  ;;  %v784_v59 = vsel %vm752_vm5, %v736_v47, %v768_v53  ;;  %v740_v61 = vadd.f32 %v720_v57, %v644_v25 }
  0xc7   : > { %v785_v60 = vsel %vm753_vm6, %v737_v48, %v769_v54  ;;  %v741_v62 = vadd.f32 %v720_v57, %v645_v26  ;;  %801 = vst.msk [vmem:[%s1363_s8 + $0x30] sm:$0xff] %vm794_vm0, %v784_v59  ;;  %v782_v63 = vsel %vm750_vm7, %v734_v51, %v766_v55  ;;  %v738_v1 = vadd.f32 %v716_v58, %v642_v27 }
  0xc8   : > { %802 = vst.msk [vmem:[%s1363_s8 + $0x38] sm:$0xff] %vm794_vm0, %v785_v60  ;;  %v783_v0 = vsel %vm751_vm8, %v735_v52, %v767_v56  ;;  %v739_v2 = vadd.f32 %v716_v58, %v643_v28  ;;  %799 = vst.msk [vmem:[%s1363_s8 + $0x20] sm:$0xff] %vm794_vm0, %v782_v63  ;;  %vm756_vm9 = vcmp.gt.f32.partialorder %v740_v61, 0.0  ;;  %v772_v3 = vmul.f32 0.1, %v740_v61 }
  0xc9   : > { %800 = vst.msk [vmem:[%s1363_s8 + $0x28] sm:$0xff] %vm794_vm0, %v783_v0  ;;  %vm757_vm10 = vcmp.gt.f32.partialorder %v741_v62, 0.0  ;;  %v773_v4 = vmul.f32 0.1, %v741_v62  ;;  %vm754_vm11 = vcmp.gt.f32.partialorder %v738_v1, 0.0  ;;  %v728_v7 = vpop.permute.xlu1 %727  ;;  %v724_v8 = vpop.permute.xlu0 %723 }
  0xca   : > { %vm755_vm12 = vcmp.gt.f32.partialorder %v739_v2, 0.0  ;;  %v770_v5 = vmul.f32 0.1, %v738_v1  ;;  %v771_v6 = vmul.f32 0.1, %v739_v2  ;;  %v788_v9 = vsel %vm756_vm9, %v740_v61, %v772_v3 }
  0xcb   : > { %v789_v10 = vsel %vm757_vm10, %v741_v62, %v773_v4  ;;  %v744_v11 = vadd.f32 %v728_v7, %v648_v35  ;;  %v745_v12 = vadd.f32 %v728_v7, %v649_v36  ;;  %805 = vst.msk [vmem:[%s1363_s8 + $0x50] sm:$0xff] %vm794_vm0, %v788_v9  ;;  %v742_v15 = vadd.f32 %v724_v8, %v1357_v37 }
  0xcc   : > { %806 = vst.msk [vmem:[%s1363_s8 + $0x58] sm:$0xff] %vm794_vm0, %v789_v10  ;;  %v786_v13 = vsel %vm754_vm11, %v738_v1, %v770_v5  ;;  %v787_v14 = vsel %vm755_vm12, %v739_v2, %v771_v6  ;;  %v743_v16 = vadd.f32 %v724_v8, %v1359_v38 }
  0xcd   : > { %803 = vst.msk [vmem:[%s1363_s8 + $0x40] sm:$0xff] %vm794_vm0, %v786_v13  ;;  %804 = vst.msk [vmem:[%s1363_s8 + $0x48] sm:$0xff] %vm794_vm0, %v787_v14  ;;  %vm760_vm13 = vcmp.gt.f32.partialorder %v744_v11, 0.0  ;;  %vm761_vm14 = vcmp.gt.f32.partialorder %v745_v12, 0.0  ;;  %v776_v17 = vmul.f32 0.1, %v744_v11 }
  0xce   : > { %v777_v18 = vmul.f32 0.1, %v745_v12  ;;  %vm758_vm15 = vcmp.gt.f32.partialorder %v742_v15, 0.0  ;;  %vm759_vm1 = vcmp.gt.f32.partialorder %v743_v16, 0.0  ;;  %v774_v19 = vmul.f32 0.1, %v742_v15 }
  0xcf   : > { %v775_v20 = vmul.f32 0.1, %v743_v16  ;;  %v792_v21 = vsel %vm760_vm13, %v744_v11, %v776_v17 }
  0xd0   : > { %v793_v22 = vsel %vm761_vm14, %v745_v12, %v777_v18  ;;  %809 = vst.msk [vmem:[%s1363_s8 + $0x70] sm:$0xff] %vm794_vm0, %v792_v21  ;;  %v790_v23 = vsel %vm758_vm15, %v742_v15, %v774_v19 }
  0xd1   : > { %810 = vst.msk [vmem:[%s1363_s8 + $0x78] sm:$0xff] %vm794_vm0, %v793_v22  ;;  %v791_v24 = vsel %vm759_vm1, %v743_v16, %v775_v20  ;;  %807 = vst.msk [vmem:[%s1363_s8 + $0x60] sm:$0xff] %vm794_vm0, %v790_v23 }
  0xd2   : > { %808 = vst.msk [vmem:[%s1363_s8 + $0x68] sm:$0xff] %vm794_vm0, %v791_v24 }
  0xd3   : > { %1081 = shalt.err (!%p1078_p7)
}
  0xd4   : > { %s1082_s28 = scalar_lea.hbm %s1396_s18, 2048  ;;  %s1086_s5 = scalar_lea.hbm %s1458_s3, 4096 }
  0xd5   : > { %p1083_p8 = scmp.ne.s32.totalorder %s1396_s18, %s1082_s28  ;;  %p1087_p13 = scmp.lt.u32.totalorder %s1396_s18, %s1458_s3 }
  0xd6   : > { %p1088_p0 = scmp.lt.u32.totalorder %s1086_s5, %s1082_s28  ;;  %p1090_p2 = scmp.lt.u32.totalorder %s1082_s28, %s1396_s18 }
  0xd7   : > { %p1084_p11 = pnand %p1083_p8, %p1211_p5 }
  0xd8   : > { %p1089_p1 = por %p1088_p0, %p1087_p13 }
  0xd9   : > { %p1085_p12 = pneg %p1084_p11 }
  0xda   : > { %p1091_p3 = por %p1090_p2, %p1089_p1 }
  0xdc   : > { %p1092_p4 = pnand %p1091_p3, %p1085_p12 }
  0xde   : > { %1095 = shalt.err (!%p1092_p4)
}
  0xdf   : > { %s1150_s8 = smov 128   ;;  %s1151_s9 = smov 8  }
  0xe0   : > { %1008 = dma.vmem_to_hbm [thread:$0]  (%p1211_p5), %s1398_s10, 2048, %s1396_s18, %s812_s19, %s1150_s8, %s1150_s8, %s1151_s9  }
  0xe1 PF: > { %s843_s15 = sand.u32 1, %s1126_s12   ;;  %p1011_p6 = pnand %p939_p10, %p1222_p9 }
  0xe2   : > { %s844_s11 = scalar_lea.sflag [#allocation4], %s843_s15 }
  0xe3   : > { %1121 = dma.done.wait (!%p1011_p6), %s844_s11, 2048  }
  0xe4   : > { %1123 = vsyncadd (!%p1011_p6), %s844_s11, 4294965248  ;;  %s16_s17 = sadd.s32 1, %s1146_s17   ;;  %s1461_s12 = smov %s1130_s13 }
  0xe5   : > { %p13_p7 = scmp.ge.s32.totalorder %s16_s17, 4   ;;  %s1462_s13 = smov %s1134_s14 }
  0xe6   : > { %s1463_s14 = smov %s1220_s24  ;;  %s1464_s15 = smov %s1142_s16 }
  0xe7   : > { %s1465_s16 = smov %s1467_s20  ;;  %15 = sbr.rel (!%p13_p7) target bundleno = 4 (0x4), region = 119 }
  0xee   :  { %849 = vsyncpa [#allocation4], 1 }
  0xef   :  { %851 = vsyncpa [#allocation4 + $0x1], 1 }

// kernel: cnn_block.2
= control target key start
LH: loop header
LB: loop body
LE: loop exit
PB: predicated region body
PF: predicated region fallthrough
CT: control target
= control target key end

     0   :  { %s16718_s18 = smov 0   ;;  %s16720_s19 = smov 0   ;;  %s20537_s0 = inlined_call_operand.vmem [shape: bf16[9,8,4], index: 0, kind: input, shape index: {}]   ;;  %s20538_s1 = inlined_call_operand.vmem [shape: bf16[2,4,8576], index: 1, kind: input, shape index: {}]   ;;  %s20539_s2 = inlined_call_operand.vmem [shape: f32[1,8192], index: 2, kind: input, shape index: {}]   ;;  %s20540_s3 = inlined_call_operand.vmem [shape: bf16[8,16384], index: 3, kind: output, shape index: {0}]   ;;  %s20541_s4 = inlined_call_operand.vmem [shape: f32[16,1], index: 4, kind: output, shape index: {1}]   ;;  %s20542_s5 = inlined_call_operand.vmem [shape: f32[16,1], index: 5, kind: output, shape index: {2}]  }
   0x1   :  { %s16722_s20 = smov 0  }
   0x2 LB: > { %s28_s21 = sadd.s32 1, %s16677_s19  ;;  %p14930_p0 = scmp.ge.s32.totalorder %s16681_s20, 1  ;;  %s16681_s20 = sphi %s16722_s20, %s16_s20   ;;  %s16677_s19 = sphi %s16720_s19, %s21458_s19   ;;  %s16673_s18 = sphi %s16718_s18, %s21457_s18  }
   0x3   : > { %p30_p1 = scmp.ge.s32.totalorder %s28_s21, 2  ;;  %p210_p2 = scmp.lt.s32.totalorder %s16681_s20, 3 }
   0x5   : > { %s21460_s21 = smov (%p30_p1, %s28_s21), 0  ;;  %p211_p3 = pnand %p14930_p0, %p210_p2 }
   0x7   : > { %214 = sbr.rel (%p211_p3) target bundleno = 1661 (0x67d), region = 32 }
   0xe   : > { %p249_p4 = scmp.lt.s32.totalorder %s16673_s18, 1  ;;  %v313_v0 = vlaneseq  ;;  %v16683_v1 = vmov 1983009808   ;;  %v20543_v6 = vmov 0   ;;  %s16685_s27 = smov 127   ;;  %vm718_vm0 = vcmask 1039360  }
   0xf   : > { %v311_v2 = vunpack.c.l.s4 %v16683_v1  ;;  %1012 = vmatprep.mubr.bf16.mxu0 %v20543_v6  ;;  %1053 = vmatprep.mubr.bf16.mxu1 %v20543_v6  ;;  %vm787_vm1 = vcmask 1041408   ;;  %vm783_vm2 = vcmask 31744   ;;  %s16686_s30 = smov 126   ;;  %vm3931_vm3 = vcmask 1031168   ;;  %s14932_s29 = sshll.u32 %s16673_s18, 6 }
  0x10   : > { %s16740_s22 = scalar_select %p249_p4, %s16673_s18, 1  ;;  %v16742_v3 = vshrl.u32 %v313_v0, 7  ;;  %vm14592_vm11 = vcmask 7168  }
  0x11   : > { %v312_v4 = vunpack.c.0.s8 %v311_v2  ;;  %p257_p5 = scmp.lt.s32.totalorder %s14932_s29, 127 }
  0x12   : > { %20873 = vst [vmem:[#allocation2_spill] sm:$0xff] %v16742_v3  ;;  %s16610_s23 = smul.u32 134, %s16740_s22  ;;  %s14934_s10 = sshll.u32 %s16740_s22, 3 }
  0x13   : > { %v16746_v5 = vsub.s32 %v312_v4, %v16742_v3  ;;  %s21462_s29 = smov (!%p257_p5, %s14932_s29), 127  ;;  %s20157_s13 = scalar_lea.vmem %s20541_s4, %s14934_s10 }
  0x14   : > { %s16753_s26 = scalar_lea.vmem %s20538_s1, %s16610_s23  ;;  %s14933_s18 = sshll.u32 %s21462_s29, 2 }
  0x15   : > { %20874 = vst [vmem:[#allocation3_spill] sm:$0xff] %v16746_v5  ;;  %v272_v7 = vld [vmem:[%s16753_s26] sm:$0xff]  ;;  %v273_v10 = vld [vmem:[%s16753_s26 + $0x8] sm:$0xff]  ;;  %v274_v18 = vld [vmem:[%s16753_s26 + $0x10] sm:$0xff]  ;;  %s20121_s9 = scalar_lea.vmem %s20540_s3, %s14933_s18  ;;  %s270_s7 = scalar_lea.vmem %s20542_s5, %s14934_s10 }
  0x16   : > { %v16757_v8 = vrot.slane %v272_v7, %v16746_v5  ;;  %v309_v9 = vcombine.high %v272_v7, %v272_v7  ;;  %v16776_v14 = vrot.slane %v273_v10, %v16746_v5  ;;  %v326_v15 = vcombine.high %v273_v10, %v273_v10  ;;  %v275_v24 = vld [vmem:[%s16753_s26 + $0x18] sm:$0xff]  ;;  %v276_v30 = vld [vmem:[%s16753_s26 + $0x20] sm:$0xff]  ;;  %v277_v36 = vld [vmem:[%s16753_s26 + $0x28] sm:$0xff] }
  0x17   : > { %v16799_v20 = vrot.slane %v274_v18, %v16746_v5  ;;  %v343_v21 = vcombine.high %v274_v18, %v274_v18  ;;  %v16822_v26 = vrot.slane %v275_v24, %v16746_v5  ;;  %v360_v27 = vcombine.high %v275_v24, %v275_v24  ;;  %v278_v42 = vld [vmem:[%s16753_s26 + $0x30] sm:$0xff]  ;;  %v279_v48 = vld [vmem:[%s16753_s26 + $0x38] sm:$0xff]  ;;  %v280_v54 = vld [vmem:[%s16753_s26 + $0x40] sm:$0xff] }
  0x18   : > { %588 = vrot.lane.b32.xlu0 %v16757_v8, %s16685_s27  ;;  %v16763_v11 = vrot.slane %v309_v9, %v16746_v5  ;;  %v16767_v12 = vcombine.high %v16757_v8, %v16757_v8  ;;  %v16784_v16 = vcombine.high %v16776_v14, %v16776_v14  ;;  %v16787_v17 = vrot.slane %v326_v15, %v16746_v5  ;;  %v281_v60 = vld [vmem:[%s16753_s26 + $0x48] sm:$0xff]  ;;  %v282_v2 = vld [vmem:[%s16753_s26 + $0x50] sm:$0xff]  ;;  %v283_v18 = vld [vmem:[%s16753_s26 + $0x58] sm:$0xff] }
  0x19   : > { %v16807_v22 = vcombine.high %v16799_v20, %v16799_v20  ;;  %v16810_v23 = vrot.slane %v343_v21, %v16746_v5  ;;  %v16830_v28 = vcombine.high %v16822_v26, %v16822_v26  ;;  %v16833_v29 = vrot.slane %v360_v27, %v16746_v5  ;;  %v287_v6 = vld [vmem:[%s16753_s26 + $0x78] sm:$0xff] }
  0x1a   : > { %592 = vrot.lane.b32.xlu1 %v16763_v11, %s16685_s27  ;;  %v16773_v13 = vcombine.high %v16763_v11, %v16763_v11  ;;  %v16796_v19 = vcombine.high %v16787_v17, %v16787_v17  ;;  %v16845_v32 = vrot.slane %v276_v30, %v16746_v5  ;;  %v377_v33 = vcombine.high %v276_v30, %v276_v30 }
  0x1b   : > { %v16819_v25 = vcombine.high %v16810_v23, %v16810_v23  ;;  %v16842_v31 = vcombine.high %v16833_v29, %v16833_v29  ;;  %v16868_v38 = vrot.slane %v277_v36, %v16746_v5  ;;  %v394_v39 = vcombine.high %v277_v36, %v277_v36  ;;  %v284_v36 = vld [vmem:[%s16753_s26 + $0x60] sm:$0xff] }
  0x1c   : > { %590 = vrot.lane.b32.xlu0 %v16767_v12, %s16685_s27  ;;  %v16853_v34 = vcombine.high %v16845_v32, %v16845_v32  ;;  %v16856_v35 = vrot.slane %v377_v33, %v16746_v5  ;;  %v16891_v44 = vrot.slane %v278_v42, %v16746_v5  ;;  %v411_v45 = vcombine.high %v278_v42, %v278_v42 }
  0x1d   : > { %v16876_v40 = vcombine.high %v16868_v38, %v16868_v38  ;;  %v16879_v41 = vrot.slane %v394_v39, %v16746_v5  ;;  %v16914_v50 = vrot.slane %v279_v48, %v16746_v5  ;;  %v428_v51 = vcombine.high %v279_v48, %v279_v48 }
  0x1e   : > { %594 = vrot.lane.b32.xlu1 %v16773_v13, %s16685_s27  ;;  %v16865_v37 = vcombine.high %v16856_v35, %v16856_v35  ;;  %v16899_v46 = vcombine.high %v16891_v44, %v16891_v44  ;;  %v16902_v47 = vrot.slane %v411_v45, %v16746_v5  ;;  %v16937_v56 = vrot.slane %v280_v54, %v16746_v5 }
  0x1f   : > { %v16888_v43 = vcombine.high %v16879_v41, %v16879_v41  ;;  %v16922_v52 = vcombine.high %v16914_v50, %v16914_v50  ;;  %v16925_v53 = vrot.slane %v428_v51, %v16746_v5  ;;  %v445_v57 = vcombine.high %v280_v54, %v280_v54  ;;  %v285_v54 = vld [vmem:[%s16753_s26 + $0x68] sm:$0xff] }
  0x20   : > { %596 = vrot.lane.b32.xlu0 %v16776_v14, %s16685_s27  ;;  %v16911_v49 = vcombine.high %v16902_v47, %v16902_v47  ;;  %20878 = vst [vmem:[#allocation7_spill] sm:$0xff] %v16937_v56  ;;  %v16945_v58 = vcombine.high %v16937_v56, %v16937_v56  ;;  %v16960_v62 = vrot.slane %v281_v60, %v16746_v5 }
  0x21   : > { %20876 = vst [vmem:[#allocation5_spill] sm:$0xff] %v16922_v52  ;;  %v16934_v55 = vcombine.high %v16925_v53, %v16925_v53  ;;  %v16948_v59 = vrot.slane %v445_v57, %v16746_v5  ;;  %v462_v63 = vcombine.high %v281_v60, %v281_v60  ;;  %v16983_v7 = vrot.slane %v282_v2, %v16746_v5 }
  0x22   : > { %598 = vrot.lane.b32.xlu1 %v16784_v16, %s16685_s27  ;;  %20875 = vst [vmem:[#allocation4_spill] sm:$0xff] %v16911_v49  ;;  %20879 = vst [vmem:[#allocation8_spill] sm:$0xff] %v16945_v58  ;;  %v16968_v0 = vcombine.high %v16960_v62, %v16960_v62  ;;  %v479_v9 = vcombine.high %v282_v2, %v282_v2  ;;  %v17006_v24 = vrot.slane %v283_v18, %v16746_v5 }
  0x23   : > { %20877 = vst [vmem:[#allocation6_spill] sm:$0xff] %v16934_v55  ;;  %v16957_v61 = vcombine.high %v16948_v59, %v16948_v59  ;;  %v16971_v1 = vrot.slane %v462_v63, %v16746_v5  ;;  %20884 = vst [vmem:[#allocation13_spill] sm:$0xff] %v16983_v7  ;;  %v16991_v10 = vcombine.high %v16983_v7, %v16983_v7 }
  0x24   : > { %600 = vrot.lane.b32.xlu0 %v16787_v17, %s16685_s27  ;;  %20881 = vst [vmem:[#allocation10_spill] sm:$0xff] %v16968_v0  ;;  %v16994_v15 = vrot.slane %v479_v9, %v16746_v5  ;;  %20888 = vst [vmem:[#allocation17_spill] sm:$0xff] %v17006_v24  ;;  %v496_v27 = vcombine.high %v283_v18, %v283_v18  ;;  %v17014_v30 = vcombine.high %v17006_v24, %v17006_v24  ;;  %v286_v18 = vld [vmem:[%s16753_s26 + $0x70] sm:$0xff] }
  0x25   : > { %20880 = vst [vmem:[#allocation9_spill] sm:$0xff] %v16957_v61  ;;  %20882 = vst [vmem:[#allocation11_spill] sm:$0xff] %v16971_v1  ;;  %v16980_v4 = vcombine.high %v16971_v1, %v16971_v1  ;;  %v17029_v42 = vrot.slane %v284_v36, %v16746_v5  ;;  %v513_v45 = vcombine.high %v284_v36, %v284_v36 }
  0x26   : > { %602 = vrot.lane.b32.xlu1 %v16796_v19, %s16685_s27  ;;  %20885 = vst [vmem:[#allocation14_spill] sm:$0xff] %v16991_v10  ;;  %20886 = vst [vmem:[#allocation15_spill] sm:$0xff] %v16994_v15  ;;  %v17003_v21 = vcombine.high %v16994_v15, %v16994_v15  ;;  %v17017_v33 = vrot.slane %v496_v27, %v16746_v5  ;;  %v17052_v60 = vrot.slane %v285_v54, %v16746_v5 }
  0x27   : > { %20883 = vst [vmem:[#allocation12_spill] sm:$0xff] %v16980_v4  ;;  %20889 = vst [vmem:[#allocation18_spill] sm:$0xff] %v17014_v30  ;;  %v17037_v48 = vcombine.high %v17029_v42, %v17029_v42  ;;  %v17040_v51 = vrot.slane %v513_v45, %v16746_v5  ;;  %v530_v63 = vcombine.high %v285_v54, %v285_v54 }
  0x28   : > { %604 = vrot.lane.b32.xlu0 %v16799_v20, %s16685_s27  ;;  %20887 = vst [vmem:[#allocation16_spill] sm:$0xff] %v17003_v21  ;;  %20890 = vst [vmem:[#allocation19_spill] sm:$0xff] %v17017_v33  ;;  %v17026_v39 = vcombine.high %v17017_v33, %v17017_v33  ;;  %v17060_v2 = vcombine.high %v17052_v60, %v17052_v60  ;;  %v17075_v36 = vrot.slane %v286_v18, %v16746_v5 }
  0x29   : > { %20892 = vst [vmem:[#allocation21_spill] sm:$0xff] %v17029_v42  ;;  %20893 = vst [vmem:[#allocation22_spill] sm:$0xff] %v17037_v48  ;;  %v17049_v57 = vcombine.high %v17040_v51, %v17040_v51  ;;  %v17063_v9 = vrot.slane %v530_v63, %v16746_v5  ;;  %v547_v45 = vcombine.high %v286_v18, %v286_v18 }
  0x2a   : > { %606 = vrot.lane.b32.xlu1 %v16807_v22, %s16685_s27  ;;  %20891 = vst [vmem:[#allocation20_spill] sm:$0xff] %v17026_v39  ;;  %20894 = vst [vmem:[#allocation23_spill] sm:$0xff] %v17040_v51  ;;  %v17083_v54 = vcombine.high %v17075_v36, %v17075_v36 }
  0x2b   : > { %20895 = vst [vmem:[#allocation24_spill] sm:$0xff] %v17049_v57  ;;  %20896 = vst [vmem:[#allocation25_spill] sm:$0xff] %v17052_v60  ;;  %v17072_v27 = vcombine.high %v17063_v9, %v17063_v9  ;;  %v17086_v63 = vrot.slane %v547_v45, %v16746_v5 }
  0x2c   : > { %608 = vrot.lane.b32.xlu0 %v16810_v23, %s16685_s27  ;;  %20897 = vst [vmem:[#allocation26_spill] sm:$0xff] %v17060_v2  ;;  %20898 = vst [vmem:[#allocation27_spill] sm:$0xff] %v17063_v9 }
  0x2d   : > { %20899 = vst [vmem:[#allocation28_spill] sm:$0xff] %v17072_v27  ;;  %20900 = vst [vmem:[#allocation29_spill] sm:$0xff] %v17075_v36  ;;  %v17095_v18 = vcombine.high %v17086_v63, %v17086_v63 }
  0x2e   : > { %610 = vrot.lane.b32.xlu1 %v16819_v25, %s16685_s27  ;;  %20901 = vst [vmem:[#allocation30_spill] sm:$0xff] %v17083_v54  ;;  %20902 = vst [vmem:[#allocation31_spill] sm:$0xff] %v17086_v63 }
  0x2f   : > { %20903 = vst [vmem:[#allocation32_spill] sm:$0xff] %v17095_v18 }
  0x30   : > { %612 = vrot.lane.b32.xlu0 %v16822_v26, %s16685_s27 }
  0x32   : > { %614 = vrot.lane.b32.xlu1 %v16830_v28, %s16685_s27 }
  0x34   : > { %616 = vrot.lane.b32.xlu0 %v16833_v29, %s16685_s27 }
  0x36   : > { %618 = vrot.lane.b32.xlu1 %v16842_v31, %s16685_s27 }
  0x38   : > { %620 = vrot.lane.b32.xlu0 %v16845_v32, %s16685_s27 }
  0x3a   : > { %622 = vrot.lane.b32.xlu1 %v16853_v34, %s16685_s27 }
  0x3c   : > { %624 = vrot.lane.b32.xlu0 %v16856_v35, %s16685_s27 }
  0x3e   : > { %626 = vrot.lane.b32.xlu1 %v16865_v37, %s16685_s27 }
  0x40   : > { %628 = vrot.lane.b32.xlu0 %v16868_v38, %s16685_s27 }
  0x42   : > { %630 = vrot.lane.b32.xlu1 %v16876_v40, %s16685_s27 }
  0x44   : > { %632 = vrot.lane.b32.xlu0 %v16879_v41, %s16685_s27 }
  0x46   : > { %634 = vrot.lane.b32.xlu1 %v16888_v43, %s16685_s27 }
  0x48   : > { %636 = vrot.lane.b32.xlu0 %v16891_v44, %s16685_s27 }
  0x4a   : > { %638 = vrot.lane.b32.xlu1 %v16899_v46, %s16685_s27 }
  0x4c   : > { %640 = vrot.lane.b32.xlu0 %v16902_v47, %s16685_s27 }
  0x4e   : > { %642 = vrot.lane.b32.xlu1 %v16911_v49, %s16685_s27 }
  0x50   : > { %644 = vrot.lane.b32.xlu0 %v16914_v50, %s16685_s27 }
  0x52   : > { %646 = vrot.lane.b32.xlu1 %v16922_v52, %s16685_s27 }
  0x54   : > { %648 = vrot.lane.b32.xlu0 %v16925_v53, %s16685_s27 }
  0x56   : > { %650 = vrot.lane.b32.xlu1 %v16934_v55, %s16685_s27 }
  0x58   : > { %652 = vrot.lane.b32.xlu0 %v16937_v56, %s16685_s27 }
  0x5a   : > { %654 = vrot.lane.b32.xlu1 %v16945_v58, %s16685_s27 }
  0x5c   : > { %656 = vrot.lane.b32.xlu0 %v16948_v59, %s16685_s27 }
  0x5e   : > { %658 = vrot.lane.b32.xlu1 %v16957_v61, %s16685_s27 }
  0x60   : > { %660 = vrot.lane.b32.xlu0 %v16960_v62, %s16685_s27 }
  0x62   : > { %662 = vrot.lane.b32.xlu1 %v16968_v0, %s16685_s27 }
  0x64   : > { %664 = vrot.lane.b32.xlu0 %v16971_v1, %s16685_s27 }
  0x66   : > { %666 = vrot.lane.b32.xlu1 %v16980_v4, %s16685_s27 }
  0x68   : > { %668 = vrot.lane.b32.xlu0 %v16983_v7, %s16685_s27 }
  0x6a   : > { %670 = vrot.lane.b32.xlu1 %v16991_v10, %s16685_s27 }
  0x6c   : > { %672 = vrot.lane.b32.xlu0 %v16994_v15, %s16685_s27 }
  0x6e   : > { %674 = vrot.lane.b32.xlu1 %v17003_v21, %s16685_s27 }
  0x70   : > { %676 = vrot.lane.b32.xlu0 %v17006_v24, %s16685_s27 }
  0x72   : > { %678 = vrot.lane.b32.xlu1 %v17014_v30, %s16685_s27 }
  0x74   : > { %680 = vrot.lane.b32.xlu0 %v17017_v33, %s16685_s27 }
  0x76   : > { %682 = vrot.lane.b32.xlu1 %v17026_v39, %s16685_s27 }
  0x78   : > { %684 = vrot.lane.b32.xlu0 %v17029_v42, %s16685_s27 }
  0x7a   : > { %686 = vrot.lane.b32.xlu1 %v17037_v48, %s16685_s27 }
  0x7c   : > { %688 = vrot.lane.b32.xlu0 %v17040_v51, %s16685_s27 }
  0x7e   : > { %690 = vrot.lane.b32.xlu1 %v17049_v57, %s16685_s27 }
  0x80   : > { %692 = vrot.lane.b32.xlu0 %v17052_v60, %s16685_s27 }
  0x82   : > { %694 = vrot.lane.b32.xlu1 %v17060_v2, %s16685_s27 }
  0x84   : > { %696 = vrot.lane.b32.xlu0 %v17063_v9, %s16685_s27  ;;  %v564_v9 = vcombine.high %v287_v6, %v287_v6 }
  0x86   : > { %698 = vrot.lane.b32.xlu1 %v17072_v27, %s16685_s27  ;;  %v17098_v27 = vrot.slane %v287_v6, %v16746_v5  ;;  %v17109_v2 = vrot.slane %v564_v9, %v16746_v5  ;;  %v17123_v9 = vld [vmem:[%s20537_s0 + $0x4] sm:$0xf] }
  0x87   : > { %v17126_v5 = vld.sshfl [vmem:[%s16753_s26 + $0x80] sm:$0x3f pattern:$0x76325410] }
  0x88   : > { %700 = vrot.lane.b32.xlu0 %v17075_v36, %s16685_s27  ;;  %20904 = vst [vmem:[#allocation33_spill] sm:$0xff] %v17098_v27  ;;  %20906 = vst [vmem:[#allocation35_spill] sm:$0xff] %v17109_v2 }
  0x89   : > { %20908 = vst [vmem:[#allocation37_spill] sm:$0xff] %v17126_v5 }
  0x8a   : > { %v589_v3 = vpop.permute.xlu0 %588  ;;  %702 = vrot.lane.b32.xlu1 %v17083_v54, %s16685_s27  ;;  %v17106_v54 = vcombine.high %v17098_v27, %v17098_v27 }
  0x8c   : > { %704 = vrot.lane.b32.xlu0 %v17086_v63, %s16685_s27  ;;  %v593_v45 = vpop.permute.xlu1 %592  ;;  %20905 = vst [vmem:[#allocation34_spill] sm:$0xff] %v17106_v54 }
  0x8e   : > { %v591_v36 = vpop.permute.xlu0 %590  ;;  %706 = vrot.lane.b32.xlu1 %v17095_v18, %s16685_s27 }
  0x8f   : > { %v17112_v6 = vsel %vm718_vm0, %v591_v36, %v593_v45  ;;  %v719_v63 = vsel %vm718_vm0, %v589_v3, %v591_v36  ;;  %v17135_v36 = vcombine.high %v17109_v2, %v17109_v2 }
  0x90   : > { %20907 = vst [vmem:[#allocation36_spill] sm:$0xff] %v17112_v6  ;;  %708 = vrot.lane.b32.xlu0 %v17098_v27, %s16685_s27  ;;  %14937 = vmatprep.subr.msk.bf16.mxu0 %vm787_vm1, %v17112_v6  ;;  %v595_v60 = vpop.permute.xlu1 %594  ;;  %v789_v18 = vsel %vm787_vm1, %v719_v63, 0  ;;  %v20914_v27 = vmov 0  }
  0x91   : > { %981 = vmatpush1.bf16.msra.mxu0 %v789_v18  ;;  %v17131_v3 = vsel %vm718_vm0, %v593_v45, %v595_v60  ;;  %20910 = vst [vmem:[#allocation39_spill] sm:$0xff] %v17135_v36 }
  0x92   : > { %v597_v57 = vpop.permute.xlu0 %596  ;;  %710 = vrot.lane.b32.xlu1 %v17106_v54, %s16685_s27  ;;  %20909 = vst [vmem:[#allocation38_spill] sm:$0xff] %v17131_v3  ;;  %v17151_v6 = vsel %vm787_vm1, %v17131_v3, 0 }
  0x93   : > { %v17138_v63 = vsel %vm718_vm0, %v595_v60, %v597_v57  ;;  %20913 = vst [vmem:[#allocation42_spill] sm:$0xff] %v17151_v6 }
  0x94   : > { %20911 = vst [vmem:[#allocation40_spill] sm:$0xff] %v17138_v63  ;;  %712 = vrot.lane.b32.xlu0 %v17109_v2, %s16685_s27  ;;  %14938 = vmatmul.mubr.msk.bf16.vlgmr.msra.gmra.mrb[0].mxu0 %vm783_vm2, %v17123_v9  ;;  %v599_v18 = vpop.permute.xlu1 %598 }
  0x95   : > { %14939 = vmatprep.subr.msk.bf16.mxu1 %vm787_vm1, %v17138_v63  ;;  %v17147_v45 = vsel %vm718_vm0, %v597_v57, %v599_v18  ;;  %1094 = vmatprep.mubr.bf16.mxu0 %v20914_v27 }
  0x96   : > { %20912 = vst [vmem:[#allocation41_spill] sm:$0xff] %v17147_v45  ;;  %1022 = vmatpush1.bf16.msra.mxu1 %v17151_v6  ;;  %v601_v60 = vpop.permute.xlu0 %600  ;;  %714 = vrot.lane.b32.xlu1 %v17135_v36, %s16685_s27  ;;  %v17166_v63 = vsel %vm787_vm1, %v17147_v45, 0 }
  0x97   : > { %v17158_v2 = vsel %vm718_vm0, %v599_v18, %v601_v60  ;;  %20916 = vst [vmem:[#allocation44_spill] sm:$0xff] %v17166_v63 }
  0x98   : > { %20915 = vst [vmem:[#allocation43_spill] sm:$0xff] %v17158_v2  ;;  %716 = vrot.lane.b32.xlu0 %v17126_v5, %s16685_s27  ;;  %14941 = vmatprep.subr.msk.bf16.mxu0 %vm787_vm1, %v17158_v2  ;;  %v603_v57 = vpop.permute.xlu1 %602 }
  0x99   : > { %14940 = vmatmul.mubr.msk.bf16.vlgmr.msra.gmra.mrb[0].mxu1 %vm783_vm2, %v17123_v9  ;;  %1063 = vmatpush1.bf16.msra.mxu0 %v17166_v63  ;;  %v17172_v6 = vsel %vm718_vm0, %v601_v60, %v603_v57 }
  0x9a   : > { %20917 = vst [vmem:[#allocation45_spill] sm:$0xff] %v17172_v6  ;;  %v605_v18 = vpop.permute.xlu0 %604  ;;  %1135 = vmatprep.mubr.bf16.mxu1 %v20914_v27  ;;  %3801 = vrot.lane.b32.xlu1 %v16757_v8, %s16686_s30  ;;  %v17191_v45 = vsel %vm787_vm1, %v17172_v6, 0 }
  0x9b   : > { %v17178_v2 = vsel %vm718_vm0, %v603_v57, %v605_v18  ;;  %20920 = vst [vmem:[#allocation48_spill] sm:$0xff] %v17191_v45 }
  0x9c   : > { %20918 = vst [vmem:[#allocation46_spill] sm:$0xff] %v17178_v2  ;;  %3803 = vrot.lane.b32.xlu0 %v16767_v12, %s16686_s30  ;;  %14942 = vmatmul.mubr.msk.bf16.vlgmr.msra.gmra.mrb[4].mxu0 %vm783_vm2, %v17123_v9  ;;  %v607_v63 = vpop.permute.xlu1 %606 }
  0x9d   : > { %14943 = vmatprep.subr.msk.bf16.mxu1 %vm787_vm1, %v17178_v2  ;;  %v17187_v60 = vsel %vm718_vm0, %v605_v18, %v607_v63  ;;  %1176 = vmatprep.mubr.bf16.mxu0 %v20914_v27 }
  0x9e   : > { %20919 = vst [vmem:[#allocation47_spill] sm:$0xff] %v17187_v60  ;;  %1104 = vmatpush1.bf16.msra.mxu1 %v17191_v45  ;;  %v609_v57 = vpop.permute.xlu0 %608  ;;  %3805 = vrot.lane.b32.xlu1 %v16763_v11, %s16686_s30  ;;  %v17206_v2 = vsel %vm787_vm1, %v17187_v60, 0 }
  0x9f   : > { %v17198_v3 = vsel %vm718_vm0, %v607_v63, %v609_v57  ;;  %20922 = vst [vmem:[#allocation50_spill] sm:$0xff] %v17206_v2 }
  0xa0   : > { %20921 = vst [vmem:[#allocation49_spill] sm:$0xff] %v17198_v3  ;;  %3807 = vrot.lane.b32.xlu0 %v16773_v13, %s16686_s30  ;;  %14945 = vmatprep.subr.msk.bf16.mxu0 %vm787_vm1, %v17198_v3  ;;  %v611_v18 = vpop.permute.xlu1 %610 }
  0xa1   : > { %14944 = vmatmul.mubr.msk.bf16.vlgmr.msra.gmra.mrb[4].mxu1 %vm783_vm2, %v17123_v9  ;;  %1145 = vmatpush1.bf16.msra.mxu0 %v17206_v2  ;;  %v17212_v45 = vsel %vm718_vm0, %v609_v57, %v611_v18 }
  0xa2   : > { %20923 = vst [vmem:[#allocation51_spill] sm:$0xff] %v17212_v45  ;;  %v613_v63 = vpop.permute.xlu0 %612  ;;  %1217 = vmatprep.mubr.bf16.mxu1 %v20914_v27  ;;  %3809 = vrot.lane.b32.xlu1 %v16776_v14, %s16686_s30  ;;  %v17231_v2 = vsel %vm787_vm1, %v17212_v45, 0 }
  0xa3   : > { %v17218_v3 = vsel %vm718_vm0, %v611_v18, %v613_v63  ;;  %20926 = vst [vmem:[#allocation54_spill] sm:$0xff] %v17231_v2 }
  0xa4   : > { %20924 = vst [vmem:[#allocation52_spill] sm:$0xff] %v17218_v3  ;;  %3811 = vrot.lane.b32.xlu0 %v16784_v16, %s16686_s30  ;;  %14946 = vmatmul.mubr.msk.bf16.vlgmr.msra.gmra.mrb[8].mxu0 %vm783_vm2, %v17123_v9  ;;  %v615_v60 = vpop.permute.xlu1 %614 }
  0xa5   : > { %14947 = vmatprep.subr.msk.bf16.mxu1 %vm787_vm1, %v17218_v3  ;;  %v17227_v57 = vsel %vm718_vm0, %v613_v63, %v615_v60  ;;  %1258 = vmatprep.mubr.bf16.mxu0 %v20914_v27 }
  0xa6   : > { %20925 = vst [vmem:[#allocation53_spill] sm:$0xff] %v17227_v57  ;;  %1186 = vmatpush1.bf16.msra.mxu1 %v17231_v2  ;;  %v617_v18 = vpop.permute.xlu0 %616  ;;  %3813 = vrot.lane.b32.xlu1 %v16787_v17, %s16686_s30  ;;  %v17246_v3 = vsel %vm787_vm1, %v17227_v57, 0 }
  0xa7   : > { %v17238_v6 = vsel %vm718_vm0, %v615_v60, %v617_v18  ;;  %20928 = vst [vmem:[#allocation56_spill] sm:$0xff] %v17246_v3 }
  0xa8   : > { %20927 = vst [vmem:[#allocation55_spill] sm:$0xff] %v17238_v6  ;;  %3815 = vrot.lane.b32.xlu0 %v16796_v19, %s16686_s30  ;;  %14949 = vmatprep.subr.msk.bf16.mxu0 %vm787_vm1, %v17238_v6  ;;  %v619_v63 = vpop.permute.xlu1 %618 }
  0xa9   : > { %14948 = vmatmul.mubr.msk.bf16.vlgmr.msra.gmra.mrb[8].mxu1 %vm783_vm2, %v17123_v9  ;;  %1227 = vmatpush1.bf16.msra.mxu0 %v17246_v3  ;;  %v17252_v2 = vsel %vm718_vm0, %v617_v18, %v619_v63 }
  0xaa   : > { %20929 = vst [vmem:[#allocation57_spill] sm:$0xff] %v17252_v2  ;;  %v621_v60 = vpop.permute.xlu0 %620  ;;  %1299 = vmatprep.mubr.bf16.mxu1 %v20914_v27  ;;  %3817 = vrot.lane.b32.xlu1 %v16799_v20, %s16686_s30  ;;  %v17271_v3 = vsel %vm787_vm1, %v17252_v2, 0 }
  0xab   : > { %v17258_v6 = vsel %vm718_vm0, %v619_v63, %v621_v60  ;;  %20932 = vst [vmem:[#allocation60_spill] sm:$0xff] %v17271_v3 }
  0xac   : > { %20930 = vst [vmem:[#allocation58_spill] sm:$0xff] %v17258_v6  ;;  %3819 = vrot.lane.b32.xlu0 %v16807_v22, %s16686_s30  ;;  %14950 = vmatmul.mubr.msk.bf16.vlgmr.msra.gmra.mrb[12].mxu0 %vm783_vm2, %v17123_v9  ;;  %v623_v57 = vpop.permute.xlu1 %622 }
  0xad   : > { %14951 = vmatprep.subr.msk.bf16.mxu1 %vm787_vm1, %v17258_v6  ;;  %v17267_v18 = vsel %vm718_vm0, %v621_v60, %v623_v57  ;;  %1340 = vmatprep.mubr.bf16.mxu0 %v20914_v27 }
  0xae   : > { %20931 = vst [vmem:[#allocation59_spill] sm:$0xff] %v17267_v18  ;;  %1268 = vmatpush1.bf16.msra.mxu1 %v17271_v3  ;;  %v625_v63 = vpop.permute.xlu0 %624  ;;  %3821 = vrot.lane.b32.xlu1 %v16810_v23, %s16686_s30  ;;  %v17286_v6 = vsel %vm787_vm1, %v17267_v18, 0 }
  0xaf   : > { %v17278_v45 = vsel %vm718_vm0, %v623_v57, %v625_v63  ;;  %20934 = vst [vmem:[#allocation62_spill] sm:$0xff] %v17286_v6 }
  0xb0   : > { %20933 = vst [vmem:[#allocation61_spill] sm:$0xff] %v17278_v45  ;;  %3823 = vrot.lane.b32.xlu0 %v16819_v25, %s16686_s30  ;;  %14953 = vmatprep.subr.msk.bf16.mxu0 %vm787_vm1, %v17278_v45  ;;  %v627_v60 = vpop.permute.xlu1 %626 }
  0xb1   : > { %14952 = vmatmul.mubr.msk.bf16.vlgmr.msra.gmra.mrb[12].mxu1 %vm783_vm2, %v17123_v9  ;;  %1309 = vmatpush1.bf16.msra.mxu0 %v17286_v6  ;;  %v17292_v3 = vsel %vm718_vm0, %v625_v63, %v627_v60 }
  0xb2   : > { %20935 = vst [vmem:[#allocation63_spill] sm:$0xff] %v17292_v3  ;;  %v629_v57 = vpop.permute.xlu0 %628  ;;  %1381 = vmatprep.mubr.bf16.mxu1 %v20914_v27  ;;  %3825 = vrot.lane.b32.xlu1 %v16822_v26, %s16686_s30  ;;  %v17311_v6 = vsel %vm787_vm1, %v17292_v3, 0 }
  0xb3   : > { %v17298_v45 = vsel %vm718_vm0, %v627_v60, %v629_v57  ;;  %20938 = vst [vmem:[#allocation66_spill] sm:$0xff] %v17311_v6 }
  0xb4   : > { %20936 = vst [vmem:[#allocation64_spill] sm:$0xff] %v17298_v45  ;;  %3827 = vrot.lane.b32.xlu0 %v16830_v28, %s16686_s30  ;;  %14954 = vmatmul.mubr.msk.bf16.vlgmr.msra.gmra.mrb[16].mxu0 %vm783_vm2, %v17123_v9  ;;  %v631_v18 = vpop.permute.xlu1 %630 }
  0xb5   : > { %14955 = vmatprep.subr.msk.bf16.mxu1 %vm787_vm1, %v17298_v45  ;;  %v17307_v63 = vsel %vm718_vm0, %v629_v57, %v631_v18  ;;  %1422 = vmatprep.mubr.bf16.mxu0 %v20914_v27 }
  0xb6   : > { %20937 = vst [vmem:[#allocation65_spill] sm:$0xff] %v17307_v63  ;;  %1350 = vmatpush1.bf16.msra.mxu1 %v17311_v6  ;;  %v633_v60 = vpop.permute.xlu0 %632  ;;  %3829 = vrot.lane.b32.xlu1 %v16833_v29, %s16686_s30  ;;  %v17326_v45 = vsel %vm787_vm1, %v17307_v63, 0 }
  0xb7   : > { %v17318_v2 = vsel %vm718_vm0, %v631_v18, %v633_v60  ;;  %20940 = vst [vmem:[#allocation68_spill] sm:$0xff] %v17326_v45 }
  0xb8   : > { %20939 = vst [vmem:[#allocation67_spill] sm:$0xff] %v17318_v2  ;;  %3831 = vrot.lane.b32.xlu0 %v16842_v31, %s16686_s30  ;;  %14957 = vmatprep.subr.msk.bf16.mxu0 %vm787_vm1, %v17318_v2  ;;  %v635_v57 = vpop.permute.xlu1 %634 }
  0xb9   : > { %14956 = vmatmul.mubr.msk.bf16.vlgmr.msra.gmra.mrb[16].mxu1 %vm783_vm2, %v17123_v9  ;;  %1391 = vmatpush1.bf16.msra.mxu0 %v17326_v45  ;;  %v17332_v6 = vsel %vm718_vm0, %v633_v60, %v635_v57 }
  0xba   : > { %20941 = vst [vmem:[#allocation69_spill] sm:$0xff] %v17332_v6  ;;  %v637_v18 = vpop.permute.xlu0 %636  ;;  %1463 = vmatprep.mubr.bf16.mxu1 %v20914_v27  ;;  %3833 = vrot.lane.b32.xlu1 %v16845_v32, %s16686_s30  ;;  %v17351_v45 = vsel %vm787_vm1, %v17332_v6, 0 }
  0xbb   : > { %v17338_v2 = vsel %vm718_vm0, %v635_v57, %v637_v18  ;;  %20944 = vst [vmem:[#allocation72_spill] sm:$0xff] %v17351_v45 }
  0xbc   : > { %20942 = vst [vmem:[#allocation70_spill] sm:$0xff] %v17338_v2  ;;  %3835 = vrot.lane.b32.xlu0 %v16853_v34, %s16686_s30  ;;  %14958 = vmatmul.mubr.msk.bf16.vlgmr.msra.gmra.mrb[20].mxu0 %vm783_vm2, %v17123_v9  ;;  %v639_v63 = vpop.permute.xlu1 %638 }
  0xbd   : > { %14959 = vmatprep.subr.msk.bf16.mxu1 %vm787_vm1, %v17338_v2  ;;  %v17347_v60 = vsel %vm718_vm0, %v637_v18, %v639_v63  ;;  %1504 = vmatprep.mubr.bf16.mxu0 %v20914_v27 }
  0xbe   : > { %20943 = vst [vmem:[#allocation71_spill] sm:$0xff] %v17347_v60  ;;  %1432 = vmatpush1.bf16.msra.mxu1 %v17351_v45  ;;  %v641_v57 = vpop.permute.xlu0 %640  ;;  %3837 = vrot.lane.b32.xlu1 %v16856_v35, %s16686_s30  ;;  %v17366_v2 = vsel %vm787_vm1, %v17347_v60, 0 }
  0xbf   : > { %v17358_v3 = vsel %vm718_vm0, %v639_v63, %v641_v57  ;;  %20946 = vst [vmem:[#allocation74_spill] sm:$0xff] %v17366_v2 }
  0xc0   : > { %20945 = vst [vmem:[#allocation73_spill] sm:$0xff] %v17358_v3  ;;  %3839 = vrot.lane.b32.xlu0 %v16865_v37, %s16686_s30  ;;  %14961 = vmatprep.subr.msk.bf16.mxu0 %vm787_vm1, %v17358_v3  ;;  %v643_v18 = vpop.permute.xlu1 %642 }
  0xc1   : > { %14960 = vmatmul.mubr.msk.bf16.vlgmr.msra.gmra.mrb[20].mxu1 %vm783_vm2, %v17123_v9  ;;  %1473 = vmatpush1.bf16.msra.mxu0 %v17366_v2  ;;  %v17372_v45 = vsel %vm718_vm0, %v641_v57, %v643_v18 }
  0xc2   : > { %20947 = vst [vmem:[#allocation75_spill] sm:$0xff] %v17372_v45  ;;  %v645_v63 = vpop.permute.xlu0 %644  ;;  %1545 = vmatprep.mubr.bf16.mxu1 %v20914_v27  ;;  %3841 = vrot.lane.b32.xlu1 %v16868_v38, %s16686_s30  ;;  %v17391_v2 = vsel %vm787_vm1, %v17372_v45, 0 }
  0xc3   : > { %v17378_v3 = vsel %vm718_vm0, %v643_v18, %v645_v63  ;;  %20950 = vst [vmem:[#allocation78_spill] sm:$0xff] %v17391_v2 }
  0xc4   : > { %20948 = vst [vmem:[#allocation76_spill] sm:$0xff] %v17378_v3  ;;  %3843 = vrot.lane.b32.xlu0 %v16876_v40, %s16686_s30  ;;  %14962 = vmatmul.mubr.msk.bf16.vlgmr.msra.gmra.mrb[24].mxu0 %vm783_vm2, %v17123_v9  ;;  %v647_v60 = vpop.permute.xlu1 %646 }
  0xc5   : > { %14963 = vmatprep.subr.msk.bf16.mxu1 %vm787_vm1, %v17378_v3  ;;  %v17387_v57 = vsel %vm718_vm0, %v645_v63, %v647_v60  ;;  %1586 = vmatprep.mubr.bf16.mxu0 %v20914_v27 }
  0xc6   : > { %20949 = vst [vmem:[#allocation77_spill] sm:$0xff] %v17387_v57  ;;  %1514 = vmatpush1.bf16.msra.mxu1 %v17391_v2  ;;  %v649_v18 = vpop.permute.xlu0 %648  ;;  %3845 = vrot.lane.b32.xlu1 %v16879_v41, %s16686_s30  ;;  %v17406_v3 = vsel %vm787_vm1, %v17387_v57, 0 }
  0xc7   : > { %v17398_v6 = vsel %vm718_vm0, %v647_v60, %v649_v18  ;;  %20952 = vst [vmem:[#allocation80_spill] sm:$0xff] %v17406_v3 }
  0xc8   : > { %20951 = vst [vmem:[#allocation79_spill] sm:$0xff] %v17398_v6  ;;  %3847 = vrot.lane.b32.xlu0 %v16888_v43, %s16686_s30  ;;  %14965 = vmatprep.subr.msk.bf16.mxu0 %vm787_vm1, %v17398_v6  ;;  %v651_v63 = vpop.permute.xlu1 %650 }
  0xc9   : > { %14964 = vmatmul.mubr.msk.bf16.vlgmr.msra.gmra.mrb[24].mxu1 %vm783_vm2, %v17123_v9  ;;  %1555 = vmatpush1.bf16.msra.mxu0 %v17406_v3  ;;  %v17412_v2 = vsel %vm718_vm0, %v649_v18, %v651_v63 }
  0xca   : > { %20953 = vst [vmem:[#allocation81_spill] sm:$0xff] %v17412_v2  ;;  %v653_v60 = vpop.permute.xlu0 %652  ;;  %1627 = vmatprep.mubr.bf16.mxu1 %v20914_v27  ;;  %3849 = vrot.lane.b32.xlu1 %v16891_v44, %s16686_s30  ;;  %v17431_v3 = vsel %vm787_vm1, %v17412_v2, 0 }
  0xcb   : > { %v17418_v6 = vsel %vm718_vm0, %v651_v63, %v653_v60  ;;  %20956 = vst [vmem:[#allocation84_spill] sm:$0xff] %v17431_v3 }
  0xcc   : > { %20954 = vst [vmem:[#allocation82_spill] sm:$0xff] %v17418_v6  ;;  %3851 = vrot.lane.b32.xlu0 %v16899_v46, %s16686_s30  ;;  %14966 = vmatmul.mubr.msk.bf16.vlgmr.msra.gmra.mrb[28].mxu0 %vm783_vm2, %v17123_v9  ;;  %v655_v57 = vpop.permute.xlu1 %654 }
  0xcd   : > { %14967 = vmatprep.subr.msk.bf16.mxu1 %vm787_vm1, %v17418_v6  ;;  %v17427_v18 = vsel %vm718_vm0, %v653_v60, %v655_v57  ;;  %1668 = vmatprep.mubr.bf16.mxu0 %v20914_v27 }
  0xce   : > { %20955 = vst [vmem:[#allocation83_spill] sm:$0xff] %v17427_v18  ;;  %1596 = vmatpush1.bf16.msra.mxu1 %v17431_v3  ;;  %v657_v63 = vpop.permute.xlu0 %656  ;;  %3853 = vrot.lane.b32.xlu1 %v16902_v47, %s16686_s30  ;;  %v17446_v6 = vsel %vm787_vm1, %v17427_v18, 0 }
  0xcf   : > { %v17438_v45 = vsel %vm718_vm0, %v655_v57, %v657_v63  ;;  %20958 = vst [vmem:[#allocation86_spill] sm:$0xff] %v17446_v6 }
  0xd0   : > { %20957 = vst [vmem:[#allocation85_spill] sm:$0xff] %v17438_v45  ;;  %3855 = vrot.lane.b32.xlu0 %v16911_v49, %s16686_s30  ;;  %14969 = vmatprep.subr.msk.bf16.mxu0 %vm787_vm1, %v17438_v45  ;;  %v659_v60 = vpop.permute.xlu1 %658 }
  0xd1   : > { %14968 = vmatmul.mubr.msk.bf16.vlgmr.msra.gmra.mrb[28].mxu1 %vm783_vm2, %v17123_v9  ;;  %1637 = vmatpush1.bf16.msra.mxu0 %v17446_v6  ;;  %v17452_v3 = vsel %vm718_vm0, %v657_v63, %v659_v60 }
  0xd2   : > { %20959 = vst [vmem:[#allocation87_spill] sm:$0xff] %v17452_v3  ;;  %v661_v57 = vpop.permute.xlu0 %660  ;;  %1709 = vmatprep.mubr.bf16.mxu1 %v20914_v27  ;;  %3857 = vrot.lane.b32.xlu1 %v16914_v50, %s16686_s30  ;;  %v17471_v6 = vsel %vm787_vm1, %v17452_v3, 0 }
  0xd3   : > { %v17458_v45 = vsel %vm718_vm0, %v659_v60, %v661_v57  ;;  %20962 = vst [vmem:[#allocation90_spill] sm:$0xff] %v17471_v6 }
  0xd4   : > { %20960 = vst [vmem:[#allocation88_spill] sm:$0xff] %v17458_v45  ;;  %3859 = vrot.lane.b32.xlu0 %v16922_v52, %s16686_s30  ;;  %14970 = vmatmul.mubr.msk.bf16.vlgmr.msra.gmra.mrb[32].mxu0 %vm783_vm2, %v17123_v9  ;;  %v663_v18 = vpop.permute.xlu1 %662 }
  0xd5   : > { %14971 = vmatprep.subr.msk.bf16.mxu1 %vm787_vm1, %v17458_v45  ;;  %v17467_v63 = vsel %vm718_vm0, %v661_v57, %v663_v18  ;;  %1750 = vmatprep.mubr.bf16.mxu0 %v20914_v27 }
  0xd6   : > { %20961 = vst [vmem:[#allocation89_spill] sm:$0xff] %v17467_v63  ;;  %1678 = vmatpush1.bf16.msra.mxu1 %v17471_v6  ;;  %v665_v60 = vpop.permute.xlu0 %664  ;;  %3861 = vrot.lane.b32.xlu1 %v16925_v53, %s16686_s30  ;;  %v17486_v45 = vsel %vm787_vm1, %v17467_v63, 0 }
  0xd7   : > { %v17478_v2 = vsel %vm718_vm0, %v663_v18, %v665_v60  ;;  %20964 = vst [vmem:[#allocation92_spill] sm:$0xff] %v17486_v45 }
  0xd8   : > { %20963 = vst [vmem:[#allocation91_spill] sm:$0xff] %v17478_v2  ;;  %3863 = vrot.lane.b32.xlu0 %v16934_v55, %s16686_s30  ;;  %14973 = vmatprep.subr.msk.bf16.mxu0 %vm787_vm1, %v17478_v2  ;;  %v667_v57 = vpop.permute.xlu1 %666 }
  0xd9   : > { %14972 = vmatmul.mubr.msk.bf16.vlgmr.msra.gmra.mrb[32].mxu1 %vm783_vm2, %v17123_v9  ;;  %1719 = vmatpush1.bf16.msra.mxu0 %v17486_v45  ;;  %v17492_v6 = vsel %vm718_vm0, %v665_v60, %v667_v57 }
  0xda   : > { %20965 = vst [vmem:[#allocation93_spill] sm:$0xff] %v17492_v6  ;;  %v669_v18 = vpop.permute.xlu0 %668  ;;  %1791 = vmatprep.mubr.bf16.mxu1 %v20914_v27  ;;  %3865 = vrot.lane.b32.xlu1 %v16937_v56, %s16686_s30  ;;  %v17506_v60 = vsel %vm787_vm1, %v17492_v6, 0 }
  0xdb   : > { %v17498_v2 = vsel %vm718_vm0, %v667_v57, %v669_v18  ;;  %20967 = vst [vmem:[#allocation95_spill] sm:$0xff] %v17506_v60 }
  0xdc   : > { %20966 = vst [vmem:[#allocation94_spill] sm:$0xff] %v17498_v2  ;;  %3867 = vrot.lane.b32.xlu0 %v16945_v58, %s16686_s30  ;;  %14974 = vmatmul.mubr.msk.bf16.vlgmr.msra.gmra.mrb[36].mxu0 %vm783_vm2, %v17123_v9  ;;  %v671_v63 = vpop.permute.xlu1 %670 }
  0xdd   : > { %14975 = vmatprep.subr.msk.bf16.mxu1 %vm787_vm1, %v17498_v2  ;;  %v17511_v45 = vsel %vm718_vm0, %v669_v18, %v671_v63  ;;  %1832 = vmatprep.mubr.bf16.mxu0 %v20914_v27 }
  0xde   : > { %20968 = vst [vmem:[#allocation96_spill] sm:$0xff] %v17511_v45  ;;  %1760 = vmatpush1.bf16.msra.mxu1 %v17506_v60  ;;  %v673_v57 = vpop.permute.xlu0 %672  ;;  %3869 = vrot.lane.b32.xlu1 %v16948_v59, %s16686_s30  ;;  %v17522_v6 = vsel %vm787_vm1, %v17511_v45, 0 }
  0xdf   : > { %v17518_v3 = vsel %vm718_vm0, %v671_v63, %v673_v57  ;;  %20970 = vst [vmem:[#allocation98_spill] sm:$0xff] %v17522_v6 }
  0xe0   : > { %20969 = vst [vmem:[#allocation97_spill] sm:$0xff] %v17518_v3  ;;  %3871 = vrot.lane.b32.xlu0 %v16957_v61, %s16686_s30  ;;  %14977 = vmatprep.subr.msk.bf16.mxu0 %vm787_vm1, %v17518_v3  ;;  %v675_v18 = vpop.permute.xlu1 %674 }
  0xe1   : > { %14976 = vmatmul.mubr.msk.bf16.vlgmr.msra.gmra.mrb[36].mxu1 %vm783_vm2, %v17123_v9  ;;  %1801 = vmatpush1.bf16.msra.mxu0 %v17522_v6  ;;  %v17532_v60 = vsel %vm718_vm0, %v673_v57, %v675_v18 }
  0xe2   : > { %20971 = vst [vmem:[#allocation99_spill] sm:$0xff] %v17532_v60  ;;  %v677_v63 = vpop.permute.xlu0 %676  ;;  %1873 = vmatprep.mubr.bf16.mxu1 %v20914_v27  ;;  %3873 = vrot.lane.b32.xlu1 %v16960_v62, %s16686_s30  ;;  %v17546_v57 = vsel %vm787_vm1, %v17532_v60, 0 }
  0xe3   : > { %v17538_v2 = vsel %vm718_vm0, %v675_v18, %v677_v63  ;;  %20973 = vst [vmem:[#allocation101_spill] sm:$0xff] %v17546_v57 }
  0xe4   : > { %20972 = vst [vmem:[#allocation100_spill] sm:$0xff] %v17538_v2  ;;  %3875 = vrot.lane.b32.xlu0 %v16968_v0, %s16686_s30  ;;  %14978 = vmatmul.mubr.msk.bf16.vlgmr.msra.gmra.mrb[40].mxu0 %vm783_vm2, %v17123_v9  ;;  %v679_v3 = vpop.permute.xlu1 %678 }
  0xe5   : > { %14979 = vmatprep.subr.msk.bf16.mxu1 %vm787_vm1, %v17538_v2  ;;  %v17551_v6 = vsel %vm718_vm0, %v677_v63, %v679_v3  ;;  %1914 = vmatprep.mubr.bf16.mxu0 %v20914_v27 }
  0xe6   : > { %20974 = vst [vmem:[#allocation102_spill] sm:$0xff] %v17551_v6  ;;  %1842 = vmatpush1.bf16.msra.mxu1 %v17546_v57  ;;  %v681_v18 = vpop.permute.xlu0 %680  ;;  %3877 = vrot.lane.b32.xlu1 %v16971_v1, %s16686_s30  ;;  %v17562_v60 = vsel %vm787_vm1, %v17551_v6, 0 }
  0xe7   : > { %v17558_v45 = vsel %vm718_vm0, %v679_v3, %v681_v18  ;;  %20976 = vst [vmem:[#allocation104_spill] sm:$0xff] %v17562_v60 }
  0xe8   : > { %20975 = vst [vmem:[#allocation103_spill] sm:$0xff] %v17558_v45  ;;  %3879 = vrot.lane.b32.xlu0 %v16980_v4, %s16686_s30  ;;  %14981 = vmatprep.subr.msk.bf16.mxu0 %vm787_vm1, %v17558_v45  ;;  %v683_v63 = vpop.permute.xlu1 %682 }
  0xe9   : > { %14980 = vmatmul.mubr.msk.bf16.vlgmr.msra.gmra.mrb[40].mxu1 %vm783_vm2, %v17123_v9  ;;  %1883 = vmatpush1.bf16.msra.mxu0 %v17562_v60  ;;  %v17572_v57 = vsel %vm718_vm0, %v681_v18, %v683_v63 }
  0xea   : > { %20977 = vst [vmem:[#allocation105_spill] sm:$0xff] %v17572_v57  ;;  %v685_v3 = vpop.permute.xlu0 %684  ;;  %1955 = vmatprep.mubr.bf16.mxu1 %v20914_v27  ;;  %3881 = vrot.lane.b32.xlu1 %v16983_v7, %s16686_s30  ;;  %v17586_v18 = vsel %vm787_vm1, %v17572_v57, 0 }
  0xeb   : > { %v17578_v2 = vsel %vm718_vm0, %v683_v63, %v685_v3  ;;  %20979 = vst [vmem:[#allocation107_spill] sm:$0xff] %v17586_v18 }
  0xec   : > { %20978 = vst [vmem:[#allocation106_spill] sm:$0xff] %v17578_v2  ;;  %3883 = vrot.lane.b32.xlu0 %v16991_v10, %s16686_s30  ;;  %14982 = vmatmul.mubr.msk.bf16.vlgmr.msra.gmra.mrb[44].mxu0 %vm783_vm2, %v17123_v9  ;;  %v687_v45 = vpop.permute.xlu1 %686 }
  0xed   : > { %14983 = vmatprep.subr.msk.bf16.mxu1 %vm787_vm1, %v17578_v2  ;;  %v17591_v60 = vsel %vm718_vm0, %v685_v3, %v687_v45  ;;  %1996 = vmatprep.mubr.bf16.mxu0 %v20914_v27 }
  0xee   : > { %20980 = vst [vmem:[#allocation108_spill] sm:$0xff] %v17591_v60  ;;  %1924 = vmatpush1.bf16.msra.mxu1 %v17586_v18  ;;  %v689_v63 = vpop.permute.xlu0 %688  ;;  %3885 = vrot.lane.b32.xlu1 %v16994_v15, %s16686_s30  ;;  %v17602_v57 = vsel %vm787_vm1, %v17591_v60, 0 }
  0xef   : > { %v17598_v6 = vsel %vm718_vm0, %v687_v45, %v689_v63  ;;  %20982 = vst [vmem:[#allocation110_spill] sm:$0xff] %v17602_v57 }
  0xf0   : > { %20981 = vst [vmem:[#allocation109_spill] sm:$0xff] %v17598_v6  ;;  %3887 = vrot.lane.b32.xlu0 %v17003_v21, %s16686_s30  ;;  %14985 = vmatprep.subr.msk.bf16.mxu0 %vm787_vm1, %v17598_v6  ;;  %v691_v3 = vpop.permute.xlu1 %690 }
  0xf1   : > { %14984 = vmatmul.mubr.msk.bf16.vlgmr.msra.gmra.mrb[44].mxu1 %vm783_vm2, %v17123_v9  ;;  %1965 = vmatpush1.bf16.msra.mxu0 %v17602_v57  ;;  %v17612_v18 = vsel %vm718_vm0, %v689_v63, %v691_v3 }
  0xf2   : > { %20983 = vst [vmem:[#allocation111_spill] sm:$0xff] %v17612_v18  ;;  %v693_v45 = vpop.permute.xlu0 %692  ;;  %2037 = vmatprep.mubr.bf16.mxu1 %v20914_v27  ;;  %3889 = vrot.lane.b32.xlu1 %v17006_v24, %s16686_s30  ;;  %v17626_v63 = vsel %vm787_vm1, %v17612_v18, 0 }
  0xf3   : > { %v17618_v2 = vsel %vm718_vm0, %v691_v3, %v693_v45  ;;  %20985 = vst [vmem:[#allocation113_spill] sm:$0xff] %v17626_v63 }
  0xf4   : > { %20984 = vst [vmem:[#allocation112_spill] sm:$0xff] %v17618_v2  ;;  %3891 = vrot.lane.b32.xlu0 %v17014_v30, %s16686_s30  ;;  %14986 = vmatmul.mubr.msk.bf16.vlgmr.msra.gmra.mrb[48].mxu0 %vm783_vm2, %v17123_v9  ;;  %v695_v6 = vpop.permute.xlu1 %694 }
  0xf5   : > { %14987 = vmatprep.subr.msk.bf16.mxu1 %vm787_vm1, %v17618_v2  ;;  %v17631_v57 = vsel %vm718_vm0, %v693_v45, %v695_v6  ;;  %2078 = vmatprep.mubr.bf16.mxu0 %v20914_v27 }
  0xf6   : > { %20986 = vst [vmem:[#allocation114_spill] sm:$0xff] %v17631_v57  ;;  %2006 = vmatpush1.bf16.msra.mxu1 %v17626_v63  ;;  %v697_v3 = vpop.permute.xlu0 %696  ;;  %3893 = vrot.lane.b32.xlu1 %v17017_v33, %s16686_s30  ;;  %v17642_v18 = vsel %vm787_vm1, %v17631_v57, 0 }
  0xf7   : > { %v17638_v60 = vsel %vm718_vm0, %v695_v6, %v697_v3  ;;  %20988 = vst [vmem:[#allocation116_spill] sm:$0xff] %v17642_v18 }
  0xf8   : > { %20987 = vst [vmem:[#allocation115_spill] sm:$0xff] %v17638_v60  ;;  %3895 = vrot.lane.b32.xlu0 %v17026_v39, %s16686_s30  ;;  %14989 = vmatprep.subr.msk.bf16.mxu0 %vm787_vm1, %v17638_v60  ;;  %v699_v45 = vpop.permute.xlu1 %698 }
  0xf9   : > { %14988 = vmatmul.mubr.msk.bf16.vlgmr.msra.gmra.mrb[48].mxu1 %vm783_vm2, %v17123_v9  ;;  %2047 = vmatpush1.bf16.msra.mxu0 %v17642_v18  ;;  %v17652_v63 = vsel %vm718_vm0, %v697_v3, %v699_v45 }
  0xfa   : > { %20989 = vst [vmem:[#allocation117_spill] sm:$0xff] %v17652_v63  ;;  %v701_v6 = vpop.permute.xlu0 %700  ;;  %2119 = vmatprep.mubr.bf16.mxu1 %v20914_v27  ;;  %3897 = vrot.lane.b32.xlu1 %v17029_v42, %s16686_s30  ;;  %v17666_v3 = vsel %vm787_vm1, %v17652_v63, 0 }
  0xfb   : > { %v17658_v2 = vsel %vm718_vm0, %v699_v45, %v701_v6  ;;  %20991 = vst [vmem:[#allocation119_spill] sm:$0xff] %v17666_v3 }
  0xfc   : > { %20990 = vst [vmem:[#allocation118_spill] sm:$0xff] %v17658_v2  ;;  %3899 = vrot.lane.b32.xlu0 %v17037_v48, %s16686_s30  ;;  %14990 = vmatmul.mubr.msk.bf16.vlgmr.msra.gmra.mrb[52].mxu0 %vm783_vm2, %v17123_v9  ;;  %v703_v60 = vpop.permute.xlu1 %702 }
  0xfd   : > { %14991 = vmatprep.subr.msk.bf16.mxu1 %vm787_vm1, %v17658_v2  ;;  %v17671_v18 = vsel %vm718_vm0, %v701_v6, %v703_v60  ;;  %2160 = vmatprep.mubr.bf16.mxu0 %v20914_v27  ;;  %v20995_v2 = vld [vmem:[#allocation24_spill] sm:$0xff] }
  0xfe   : > { %20992 = vst [vmem:[#allocation120_spill] sm:$0xff] %v17671_v18  ;;  %2088 = vmatpush1.bf16.msra.mxu1 %v17666_v3  ;;  %v705_v45 = vpop.permute.xlu0 %704  ;;  %3901 = vrot.lane.b32.xlu1 %v17040_v51, %s16686_s30  ;;  %v17682_v63 = vsel %vm787_vm1, %v17671_v18, 0  ;;  %v20997_v18 = vld [vmem:[#allocation25_spill] sm:$0xff] }
  0xff   : > { %v17678_v57 = vsel %vm718_vm0, %v703_v60, %v705_v45  ;;  %20994 = vst [vmem:[#allocation122_spill] sm:$0xff] %v17682_v63 }
 0x100   : > { %20993 = vst [vmem:[#allocation121_spill] sm:$0xff] %v17678_v57  ;;  %3903 = vrot.lane.b32.xlu0 %v20995_v2, %s16686_s30  ;;  %14993 = vmatprep.subr.msk.bf16.mxu0 %vm787_vm1, %v17678_v57  ;;  %v707_v6 = vpop.permute.xlu1 %706  ;;  %v20999_v57 = vld [vmem:[#allocation26_spill] sm:$0xff] }
 0x101   : > { %14992 = vmatmul.mubr.msk.bf16.vlgmr.msra.gmra.mrb[52].mxu1 %vm783_vm2, %v17123_v9  ;;  %2129 = vmatpush1.bf16.msra.mxu0 %v17682_v63  ;;  %v17692_v3 = vsel %vm718_vm0, %v705_v45, %v707_v6 }
 0x102   : > { %20996 = vst [vmem:[#allocation123_spill] sm:$0xff] %v17692_v3  ;;  %v709_v60 = vpop.permute.xlu0 %708  ;;  %2201 = vmatprep.mubr.bf16.mxu1 %v20914_v27  ;;  %3905 = vrot.lane.b32.xlu1 %v20997_v18, %s16686_s30  ;;  %v17706_v45 = vsel %vm787_vm1, %v17692_v3, 0  ;;  %v21002_v18 = vld [vmem:[#allocation27_spill] sm:$0xff] }
 0x103   : > { %v17698_v51 = vsel %vm718_vm0, %v707_v6, %v709_v60  ;;  %21000 = vst [vmem:[#allocation125_spill] sm:$0xff] %v17706_v45 }
 0x104   : > { %20998 = vst [vmem:[#allocation124_spill] sm:$0xff] %v17698_v51  ;;  %3907 = vrot.lane.b32.xlu0 %v20999_v57, %s16686_s30  ;;  %14994 = vmatmul.mubr.msk.bf16.vlgmr.msra.gmra.mrb[56].mxu0 %vm783_vm2, %v17123_v9  ;;  %v711_v2 = vpop.permute.xlu1 %710 }
 0x105   : > { %14995 = vmatprep.subr.msk.bf16.mxu1 %vm787_vm1, %v17698_v51  ;;  %v17711_v63 = vsel %vm718_vm0, %v709_v60, %v711_v2  ;;  %2242 = vmatprep.mubr.bf16.mxu0 %v20914_v27  ;;  %v21005_v51 = vld [vmem:[#allocation28_spill] sm:$0xff] }
 0x106   : > { %21001 = vst [vmem:[#allocation126_spill] sm:$0xff] %v17711_v63  ;;  %2170 = vmatpush1.bf16.msra.mxu1 %v17706_v45  ;;  %v713_v6 = vpop.permute.xlu0 %712  ;;  %3909 = vrot.lane.b32.xlu1 %v21002_v18, %s16686_s30  ;;  %v17722_v3 = vsel %vm787_vm1, %v17711_v63, 0  ;;  %v2296_v63 = vsel %vm787_vm1, %v16757_v8, 0  ;;  %v21009_v18 = vld [vmem:[#allocation29_spill] sm:$0xff]  ;;  %v17763_v8 = vsel %vm787_vm1, %v16763_v11, 0 }
 0x107   : > { %v17718_v57 = vsel %vm718_vm0, %v711_v2, %v713_v6  ;;  %21004 = vst [vmem:[#allocation128_spill] sm:$0xff] %v17722_v3  ;;  %21012 = vst [vmem:[#allocation133_spill] sm:$0xff] %v17763_v8 }
 0x108   : > { %21003 = vst [vmem:[#allocation127_spill] sm:$0xff] %v17718_v57  ;;  %3911 = vrot.lane.b32.xlu0 %v21005_v51, %s16686_s30  ;;  %14997 = vmatprep.subr.msk.bf16.mxu0 %vm787_vm1, %v17718_v57  ;;  %v715_v60 = vpop.permute.xlu1 %714 }
 0x109   : > { %14996 = vmatmul.mubr.msk.bf16.vlgmr.msra.gmra.mrb[56].mxu1 %vm783_vm2, %v17123_v9  ;;  %2211 = vmatpush1.bf16.msra.mxu0 %v17722_v3  ;;  %v17732_v45 = vsel %vm718_vm0, %v713_v6, %v715_v60  ;;  %v21010_v6 = vld [vmem:[#allocation30_spill] sm:$0xff] }
 0x10a   : > { %21006 = vst [vmem:[#allocation129_spill] sm:$0xff] %v17732_v45  ;;  %v17734_v2 = vpop.permute.xlu0 %716  ;;  %2283 = vmatprep.mubr.bf16.mxu1 %v20914_v27  ;;  %15001 = vmatprep.subr.msk.bf16.mxu0 %vm787_vm1, %v16767_v12  ;;  %v17753_v3 = vsel %vm787_vm1, %v17732_v45, 0  ;;  %v21020_v45 = vld [vmem:[#allocation35_spill] sm:$0xff] }
 0x10b   : > { %21007 = vst [vmem:[#allocation130_spill] sm:$0xff] %v17734_v2  ;;  %v17743_v57 = vsel %vm718_vm0, %v715_v60, %v17734_v2  ;;  %3913 = vrot.lane.b32.xlu1 %v21009_v18, %s16686_s30  ;;  %21011 = vst [vmem:[#allocation132_spill] sm:$0xff] %v17753_v3  ;;  %v21013_v60 = vld [vmem:[#allocation32_spill] sm:$0xff]  ;;  %v17804_v2 = vcombine.high %v17126_v5, %v17126_v5 }
 0x10c   : > { %21008 = vst [vmem:[#allocation131_spill] sm:$0xff] %v17743_v57  ;;  %3915 = vrot.lane.b32.xlu0 %v21010_v6, %s16686_s30  ;;  %14998 = vmatmul.mubr.msk.bf16.vlgmr.msra.gmra.mrb[60].mxu0 %vm783_vm2, %v17123_v9 }
 0x10d   : > { %14999 = vmatprep.subr.msk.bf16.mxu1 %vm787_vm1, %v17743_v57  ;;  %2488 = vmatpush1.bf16.msra.mxu0 %v2296_v63  ;;  %v21014_v57 = vld [vmem:[#allocation31_spill] sm:$0xff]  ;;  %v17776_v63 = vld [vmem:[%s20537_s0] sm:$0xf]  ;;  %21018 = vst [vmem:[#allocation135_spill] sm:$0xff] %v17804_v2 }
 0x10e   : > { %2252 = vmatpush1.bf16.msra.mxu1 %v17753_v3  ;;  %2519 = vmatprep.mubr.bf16.mxu0 %v20914_v27  ;;  %v17782_v3 = vsel %vm787_vm1, %v16776_v14, 0 }
 0x10f   : > { %15003 = vmatprep.subr.msk.bf16.mxu1 %vm787_vm1, %v16773_v13  ;;  %15005 = vmatprep.subr.msk.bf16.mxu0 %vm787_vm1, %v16784_v16  ;;  %21015 = vst [vmem:[#allocation31_spill] sm:$0xff] %v17782_v3 }
 0x110   : > { %3919 = vrot.lane.b32.xlu0 %v21013_v60, %s16686_s30  ;;  %3917 = vrot.lane.b32.xlu1 %v21014_v57, %s16686_s30 }
 0x111   : > { %15000 = vmatmul.mubr.msk.bf16.vlgmr.msra.gmra.mrb[60].mxu1 %vm783_vm2, %v17123_v9  ;;  %v21016_v9 = vld [vmem:[#allocation33_spill] sm:$0xff] }
 0x112   : > { %2529 = vmatpush1.bf16.msra.mxu1 %v17763_v8  ;;  %2560 = vmatprep.mubr.bf16.mxu1 %v20914_v27  ;;  %v17798_v8 = vsel %vm787_vm1, %v16787_v17, 0 }
 0x113   : > { %15007 = vmatprep.subr.msk.bf16.mxu1 %vm787_vm1, %v16796_v19  ;;  %21017 = vst [vmem:[#allocation134_spill] sm:$0xff] %v17798_v8 }
 0x114   : > { %3923 = vrot.lane.b32.xlu0 %v17106_v54, %s16686_s30  ;;  %15002 = vmatmul.mubr.msk.bf16.vlgmr.msra.gmra.mrb[0].mxu0 %vm783_vm2, %v17776_v63 }
 0x115   : > { %2570 = vmatpush1.bf16.msra.mxu0 %v17782_v3  ;;  %2601 = vmatprep.mubr.bf16.mxu0 %v20914_v27  ;;  %v17812_v3 = vsel %vm787_vm1, %v16799_v20, 0 }
 0x116   : > { %15009 = vmatprep.subr.msk.bf16.mxu0 %vm787_vm1, %v16807_v22  ;;  %3921 = vrot.lane.b32.xlu1 %v21016_v9, %s16686_s30  ;;  %21019 = vst [vmem:[#allocation136_spill] sm:$0xff] %v17812_v3 }
 0x118   : > { %3927 = vrot.lane.b32.xlu0 %v17135_v36, %s16686_s30 }
 0x119   : > { %15004 = vmatmul.mubr.msk.bf16.vlgmr.msra.gmra.mrb[0].mxu1 %vm783_vm2, %v17776_v63 }
 0x11a   : > { %2611 = vmatpush1.bf16.msra.mxu1 %v17798_v8  ;;  %2642 = vmatprep.mubr.bf16.mxu1 %v20914_v27  ;;  %v17828_v8 = vsel %vm787_vm1, %v16810_v23, 0 }
 0x11b   : > { %15011 = vmatprep.subr.msk.bf16.mxu1 %vm787_vm1, %v16819_v25  ;;  %3925 = vrot.lane.b32.xlu1 %v21020_v45, %s16686_s30  ;;  %21021 = vst [vmem:[#allocation137_spill] sm:$0xff] %v17828_v8 }
 0x11c   : > { %6954 = vrot.lane.b32.xlu0 %v17804_v2, %s16685_s27  ;;  %15006 = vmatmul.mubr.msk.bf16.vlgmr.msra.gmra.mrb[4].mxu0 %vm783_vm2, %v17776_v63 }
 0x11d   : > { %2652 = vmatpush1.bf16.msra.mxu0 %v17812_v3  ;;  %2683 = vmatprep.mubr.bf16.mxu0 %v20914_v27  ;;  %v17838_v3 = vsel %vm787_vm1, %v16822_v26, 0 }
 0x11e   : > { %15013 = vmatprep.subr.msk.bf16.mxu0 %vm787_vm1, %v16830_v28  ;;  %21022 = vst [vmem:[#allocation138_spill] sm:$0xff] %v17838_v3 }
 0x11f   : > { %3929 = vrot.lane.b32.xlu1 %v17126_v5, %s16686_s30 }
 0x121   : > { %15008 = vmatmul.mubr.msk.bf16.vlgmr.msra.gmra.mrb[4].mxu1 %vm783_vm2, %v17776_v63 }
 0x122   : > { %2693 = vmatpush1.bf16.msra.mxu1 %v17828_v8  ;;  %2724 = vmatprep.mubr.bf16.mxu1 %v20914_v27  ;;  %v17852_v8 = vsel %vm787_vm1, %v16833_v29, 0 }
 0x123   : > { %15015 = vmatprep.subr.msk.bf16.mxu1 %vm787_vm1, %v16842_v31  ;;  %8341 = vrot.lane.b32.xlu1 %v17804_v2, %s16686_s30  ;;  %21023 = vst [vmem:[#allocation139_spill] sm:$0xff] %v17852_v8  ;;  %v17860_v2 = vsel %vm787_vm1, %v16845_v32, 0 }
 0x124   : > { %15010 = vmatmul.mubr.msk.bf16.vlgmr.msra.gmra.mrb[8].mxu0 %vm783_vm2, %v17776_v63  ;;  %21024 = vst [vmem:[#allocation140_spill] sm:$0xff] %v17860_v2 }
 0x125   : > { %2734 = vmatpush1.bf16.msra.mxu0 %v17838_v3  ;;  %2765 = vmatprep.mubr.bf16.mxu0 %v20914_v27  ;;  %v17880_v3 = vsel %vm787_vm1, %v16868_v38, 0 }
 0x126   : > { %15017 = vmatprep.subr.msk.bf16.mxu0 %vm787_vm1, %v16853_v34  ;;  %21026 = vst [vmem:[#allocation142_spill] sm:$0xff] %v17880_v3 }
 0x129   : > { %15012 = vmatmul.mubr.msk.bf16.vlgmr.msra.gmra.mrb[8].mxu1 %vm783_vm2, %v17776_v63 }
 0x12a   : > { %2775 = vmatpush1.bf16.msra.mxu1 %v17852_v8  ;;  %2806 = vmatprep.mubr.bf16.mxu1 %v20914_v27  ;;  %v17872_v8 = vsel %vm787_vm1, %v16856_v35, 0 }
 0x12b   : > { %15019 = vmatprep.subr.msk.bf16.mxu1 %vm787_vm1, %v16865_v37  ;;  %21025 = vst [vmem:[#allocation141_spill] sm:$0xff] %v17872_v8 }
 0x12c   : > { %15014 = vmatmul.mubr.msk.bf16.vlgmr.msra.gmra.mrb[12].mxu0 %vm783_vm2, %v17776_v63 }
 0x12d   : > { %2816 = vmatpush1.bf16.msra.mxu0 %v17860_v2  ;;  %2847 = vmatprep.mubr.bf16.mxu0 %v20914_v27  ;;  %v17900_v2 = vsel %vm787_vm1, %v16891_v44, 0 }
 0x12e   : > { %15021 = vmatprep.subr.msk.bf16.mxu0 %vm787_vm1, %v16876_v40  ;;  %21028 = vst [vmem:[#allocation144_spill] sm:$0xff] %v17900_v2 }
 0x131   : > { %15016 = vmatmul.mubr.msk.bf16.vlgmr.msra.gmra.mrb[12].mxu1 %vm783_vm2, %v17776_v63 }
 0x132   : > { %2857 = vmatpush1.bf16.msra.mxu1 %v17872_v8  ;;  %2888 = vmatprep.mubr.bf16.mxu1 %v20914_v27  ;;  %v17892_v8 = vsel %vm787_vm1, %v16879_v41, 0 }
 0x133   : > { %15023 = vmatprep.subr.msk.bf16.mxu1 %vm787_vm1, %v16888_v43  ;;  %21027 = vst [vmem:[#allocation143_spill] sm:$0xff] %v17892_v8 }
 0x134   : > { %15018 = vmatmul.mubr.msk.bf16.vlgmr.msra.gmra.mrb[16].mxu0 %vm783_vm2, %v17776_v63 }
 0x135   : > { %2898 = vmatpush1.bf16.msra.mxu0 %v17880_v3  ;;  %2929 = vmatprep.mubr.bf16.mxu0 %v20914_v27  ;;  %v17908_v3 = vpop.permute.xlu1 %3801 }
 0x136   : > { %15025 = vmatprep.subr.msk.bf16.mxu0 %vm787_vm1, %v16899_v46 }
 0x139   : > { %15020 = vmatmul.mubr.msk.bf16.vlgmr.msra.gmra.mrb[16].mxu1 %vm783_vm2, %v17776_v63  ;;  %v17926_v5 = vpop.permute.xlu1 %3805 }
 0x13a   : > { %2939 = vmatpush1.bf16.msra.mxu1 %v17892_v8  ;;  %2970 = vmatprep.mubr.bf16.mxu1 %v20914_v27  ;;  %v17914_v8 = vsel %vm787_vm1, %v16902_v47, 0 }
 0x13b   : > { %15027 = vmatprep.subr.msk.bf16.mxu1 %vm787_vm1, %v16911_v49  ;;  %21029 = vst [vmem:[#allocation145_spill] sm:$0xff] %v17914_v8 }
 0x13c   : > { %15022 = vmatmul.mubr.msk.bf16.vlgmr.msra.gmra.mrb[20].mxu0 %vm783_vm2, %v17776_v63 }
 0x13d   : > { %2980 = vmatpush1.bf16.msra.mxu0 %v17900_v2  ;;  %3011 = vmatprep.mubr.bf16.mxu0 %v20914_v27  ;;  %v17922_v2 = vsel %vm787_vm1, %v16914_v50, 0 }
 0x13e   : > { %15029 = vmatprep.subr.msk.bf16.mxu0 %vm787_vm1, %v16922_v52  ;;  %21030 = vst [vmem:[#allocation146_spill] sm:$0xff] %v17922_v2  ;;  %v17930_v52 = vpop.permute.xlu0 %3803 }
 0x141   : > { %15024 = vmatmul.mubr.msk.bf16.vlgmr.msra.gmra.mrb[20].mxu1 %vm783_vm2, %v17776_v63 }
 0x142   : > { %3021 = vmatpush1.bf16.msra.mxu1 %v17914_v8  ;;  %3052 = vmatprep.mubr.bf16.mxu1 %v20914_v27  ;;  %v17938_v8 = vsel %vm787_vm1, %v16925_v53, 0  ;;  %v17950_v49 = vpop.permute.xlu0 %3807 }
 0x143   : > { %15031 = vmatprep.subr.msk.bf16.mxu1 %vm787_vm1, %v16934_v55  ;;  %21031 = vst [vmem:[#allocation147_spill] sm:$0xff] %v17938_v8  ;;  %v17942_v55 = vpop.permute.xlu1 %3809 }
 0x144   : > { %15026 = vmatmul.mubr.msk.bf16.vlgmr.msra.gmra.mrb[24].mxu0 %vm783_vm2, %v17776_v63 }
 0x145   : > { %3062 = vmatpush1.bf16.msra.mxu0 %v17922_v2  ;;  %3093 = vmatprep.mubr.bf16.mxu0 %v20914_v27  ;;  %v17948_v2 = vsel %vm787_vm1, %v16937_v56, 0 }
 0x146   : > { %15033 = vmatprep.subr.msk.bf16.mxu0 %vm787_vm1, %v16945_v58  ;;  %21032 = vst [vmem:[#allocation148_spill] sm:$0xff] %v17948_v2  ;;  %v17966_v56 = vpop.permute.xlu0 %3811 }
 0x147   : > { %v17964_v58 = vpop.permute.xlu1 %3813 }
 0x149   : > { %15028 = vmatmul.mubr.msk.bf16.vlgmr.msra.gmra.mrb[24].mxu1 %vm783_vm2, %v17776_v63 }
 0x14a   : > { %3103 = vmatpush1.bf16.msra.mxu1 %v17938_v8  ;;  %3134 = vmatprep.mubr.bf16.mxu1 %v20914_v27  ;;  %v17962_v8 = vsel %vm787_vm1, %v16948_v59, 0 }
 0x14b   : > { %15035 = vmatprep.subr.msk.bf16.mxu1 %vm787_vm1, %v16957_v61  ;;  %21033 = vst [vmem:[#allocation149_spill] sm:$0xff] %v17962_v8  ;;  %v17990_v61 = vsel %vm787_vm1, %v16971_v1, 0 }
 0x14c   : > { %15030 = vmatmul.mubr.msk.bf16.vlgmr.msra.gmra.mrb[28].mxu0 %vm783_vm2, %v17776_v63  ;;  %21035 = vst [vmem:[#allocation151_spill] sm:$0xff] %v17990_v61 }
 0x14d   : > { %3144 = vmatpush1.bf16.msra.mxu0 %v17948_v2  ;;  %3175 = vmatprep.mubr.bf16.mxu0 %v20914_v27  ;;  %v17974_v2 = vsel %vm787_vm1, %v16960_v62, 0 }
 0x14e   : > { %15037 = vmatprep.subr.msk.bf16.mxu0 %vm787_vm1, %v16968_v0  ;;  %21034 = vst [vmem:[#allocation150_spill] sm:$0xff] %v17974_v2  ;;  %v17982_v0 = vpop.permute.xlu1 %3817 }
 0x151   : > { %15032 = vmatmul.mubr.msk.bf16.vlgmr.msra.gmra.mrb[28].mxu1 %vm783_vm2, %v17776_v63 }
 0x152   : > { %3185 = vmatpush1.bf16.msra.mxu1 %v17962_v8  ;;  %3216 = vmatprep.mubr.bf16.mxu1 %v20914_v27  ;;  %v17986_v8 = vpop.permute.xlu0 %3815 }
 0x153   : > { %15039 = vmatprep.subr.msk.bf16.mxu1 %vm787_vm1, %v16980_v4 }
 0x154   : > { %15034 = vmatmul.mubr.msk.bf16.vlgmr.msra.gmra.mrb[32].mxu0 %vm783_vm2, %v17776_v63 }
 0x155   : > { %3226 = vmatpush1.bf16.msra.mxu0 %v17974_v2  ;;  %3257 = vmatprep.mubr.bf16.mxu0 %v20914_v27  ;;  %v17998_v2 = vsel %vm787_vm1, %v16983_v7, 0 }
 0x156   : > { %15041 = vmatprep.subr.msk.bf16.mxu0 %vm787_vm1, %v16991_v10  ;;  %21036 = vst [vmem:[#allocation152_spill] sm:$0xff] %v17998_v2  ;;  %v18002_v10 = vpop.permute.xlu1 %3821  ;;  %v18006_v4 = vpop.permute.xlu0 %3819 }
 0x159   : > { %15036 = vmatmul.mubr.msk.bf16.vlgmr.msra.gmra.mrb[32].mxu1 %vm783_vm2, %v17776_v63 }
 0x15a   : > { %3267 = vmatpush1.bf16.msra.mxu1 %v17990_v61  ;;  %3298 = vmatprep.mubr.bf16.mxu1 %v20914_v27  ;;  %v18014_v61 = vsel %vm787_vm1, %v16994_v15, 0  ;;  %v18026_v7 = vpop.permute.xlu0 %3823  ;;  %v21043_v15 = vld [vmem:[#allocation23_spill] sm:$0xff] }
 0x15b   : > { %15043 = vmatprep.subr.msk.bf16.mxu1 %vm787_vm1, %v17003_v21  ;;  %21037 = vst [vmem:[#allocation153_spill] sm:$0xff] %v18014_v61  ;;  %v18018_v21 = vpop.permute.xlu1 %3825 }
 0x15c   : > { %15038 = vmatmul.mubr.msk.bf16.vlgmr.msra.gmra.mrb[36].mxu0 %vm783_vm2, %v17776_v63 }
 0x15d   : > { %3308 = vmatpush1.bf16.msra.mxu0 %v17998_v2  ;;  %3339 = vmatprep.mubr.bf16.mxu0 %v20914_v27  ;;  %v18024_v2 = vsel %vm787_vm1, %v17006_v24, 0 }
 0x15e   : > { %15045 = vmatprep.subr.msk.bf16.mxu0 %vm787_vm1, %v17014_v30  ;;  %21038 = vst [vmem:[#allocation154_spill] sm:$0xff] %v18024_v2  ;;  %v18042_v24 = vpop.permute.xlu0 %3827 }
 0x15f   : > { %v18040_v30 = vpop.permute.xlu1 %3829 }
 0x161   : > { %15040 = vmatmul.mubr.msk.bf16.vlgmr.msra.gmra.mrb[36].mxu1 %vm783_vm2, %v17776_v63 }
 0x162   : > { %3349 = vmatpush1.bf16.msra.mxu1 %v18014_v61  ;;  %3380 = vmatprep.mubr.bf16.mxu1 %v20914_v27  ;;  %v18038_v61 = vsel %vm787_vm1, %v17017_v33, 0  ;;  %v21042_v33 = vld [vmem:[#allocation26_spill] sm:$0xff] }
 0x163   : > { %15047 = vmatprep.subr.msk.bf16.mxu1 %vm787_vm1, %v17026_v39  ;;  %21039 = vst [vmem:[#allocation155_spill] sm:$0xff] %v18038_v61  ;;  %v18058_v39 = vpop.permute.xlu1 %3833 }
 0x164   : > { %15042 = vmatmul.mubr.msk.bf16.vlgmr.msra.gmra.mrb[40].mxu0 %vm783_vm2, %v17776_v63 }
 0x165   : > { %3390 = vmatpush1.bf16.msra.mxu0 %v18024_v2  ;;  %3421 = vmatprep.mubr.bf16.mxu0 %v20914_v27  ;;  %v18050_v2 = vsel %vm787_vm1, %v17029_v42, 0  ;;  %v18066_v42 = vsel %vm787_vm1, %v21043_v15, 0 }
 0x166   : > { %15049 = vmatprep.subr.msk.bf16.mxu0 %vm787_vm1, %v17037_v48  ;;  %21040 = vst [vmem:[#allocation156_spill] sm:$0xff] %v18050_v2  ;;  %v21041_v48 = vld [vmem:[#allocation24_spill] sm:$0xff]  ;;  %21044 = vst [vmem:[#allocation157_spill] sm:$0xff] %v18066_v42 }
 0x169   : > { %15044 = vmatmul.mubr.msk.bf16.vlgmr.msra.gmra.mrb[40].mxu1 %vm783_vm2, %v17776_v63 }
 0x16a   : > { %3431 = vmatpush1.bf16.msra.mxu1 %v18038_v61  ;;  %3462 = vmatprep.mubr.bf16.mxu1 %v20914_v27  ;;  %v18062_v61 = vpop.permute.xlu0 %3831 }
 0x16b   : > { %15051 = vmatprep.subr.msk.bf16.mxu1 %vm787_vm1, %v21041_v48 }
 0x16c   : > { %15046 = vmatmul.mubr.msk.bf16.vlgmr.msra.gmra.mrb[44].mxu0 %vm783_vm2, %v17776_v63 }
 0x16d   : > { %3472 = vmatpush1.bf16.msra.mxu0 %v18050_v2  ;;  %3503 = vmatprep.mubr.bf16.mxu0 %v20914_v27  ;;  %v21045_v2 = vld [vmem:[#allocation25_spill] sm:$0xff] }
 0x16e   : > { %15053 = vmatprep.subr.msk.bf16.mxu0 %vm787_vm1, %v21042_v33  ;;  %v18074_v48 = vsel %vm787_vm1, %v21045_v2, 0  ;;  %v18078_v33 = vpop.permute.xlu1 %3837  ;;  %v18082_v15 = vpop.permute.xlu0 %3835 }
 0x16f   : > { %21046 = vst [vmem:[#allocation158_spill] sm:$0xff] %v18074_v48 }
 0x171   : > { %15048 = vmatmul.mubr.msk.bf16.vlgmr.msra.gmra.mrb[44].mxu1 %vm783_vm2, %v17776_v63 }
 0x172   : > { %3513 = vmatpush1.bf16.msra.mxu1 %v18066_v42  ;;  %3544 = vmatprep.mubr.bf16.mxu1 %v20914_v27  ;;  %v21047_v42 = vld [vmem:[#allocation27_spill] sm:$0xff]  ;;  %v18102_v1 = vpop.permute.xlu0 %3839 }
 0x173   : > { %15055 = vmatprep.subr.msk.bf16.mxu1 %vm787_vm1, %v21005_v51  ;;  %v18090_v2 = vsel %vm787_vm1, %v21047_v42, 0  ;;  %v18094_v51 = vpop.permute.xlu1 %3841 }
 0x174   : > { %15050 = vmatmul.mubr.msk.bf16.vlgmr.msra.gmra.mrb[48].mxu0 %vm783_vm2, %v17776_v63  ;;  %21048 = vst [vmem:[#allocation27_spill] sm:$0xff] %v18090_v2 }
 0x175   : > { %3554 = vmatpush1.bf16.msra.mxu0 %v18074_v48  ;;  %3585 = vmatprep.mubr.bf16.mxu0 %v20914_v27  ;;  %v18100_v48 = vsel %vm787_vm1, %v21009_v18, 0 }
 0x176   : > { %15057 = vmatprep.subr.msk.bf16.mxu0 %vm787_vm1, %v21010_v6  ;;  %21049 = vst [vmem:[#allocation159_spill] sm:$0xff] %v18100_v48  ;;  %v18118_v18 = vpop.permute.xlu0 %3843 }
 0x177   : > { %v18116_v6 = vpop.permute.xlu1 %3845 }
 0x179   : > { %15052 = vmatmul.mubr.msk.bf16.vlgmr.msra.gmra.mrb[48].mxu1 %vm783_vm2, %v17776_v63 }
 0x17a   : > { %3595 = vmatpush1.bf16.msra.mxu1 %v18090_v2  ;;  %3626 = vmatprep.mubr.bf16.mxu1 %v20914_v27  ;;  %v18114_v2 = vsel %vm787_vm1, %v21014_v57, 0 }
 0x17b   : > { %15059 = vmatprep.subr.msk.bf16.mxu1 %vm787_vm1, %v21013_v60  ;;  %21050 = vst [vmem:[#allocation160_spill] sm:$0xff] %v18114_v2  ;;  %v18143_v60 = vpop.permute.xlu0 %3847 }
 0x17c   : > { %15054 = vmatmul.mubr.msk.bf16.vlgmr.msra.gmra.mrb[52].mxu0 %vm783_vm2, %v17776_v63 }
 0x17d   : > { %3636 = vmatpush1.bf16.msra.mxu0 %v18100_v48  ;;  %3667 = vmatprep.mubr.bf16.mxu0 %v20914_v27  ;;  %v18126_v48 = vsel %vm787_vm1, %v21016_v9, 0  ;;  %v3932_v9 = vsel %vm3931_vm3, %v17908_v3, %v17930_v52 }
 0x17e   : > { %15061 = vmatprep.subr.msk.bf16.mxu0 %vm787_vm1, %v17106_v54  ;;  %21051 = vst [vmem:[#allocation161_spill] sm:$0xff] %v18126_v48  ;;  %v18131_v54 = vsel %vm3931_vm3, %v17930_v52, %v17926_v5  ;;  %v18167_v52 = vsel %vm3931_vm3, %v17966_v56, %v17964_v58 }
 0x17f   : > { %21052 = vst [vmem:[#allocation162_spill] sm:$0xff] %v18131_v54  ;;  %21055 = vst [vmem:[#allocation165_spill] sm:$0xff] %v18167_v52 }
 0x181   : > { %15056 = vmatmul.mubr.msk.bf16.vlgmr.msra.gmra.mrb[52].mxu1 %vm783_vm2, %v17776_v63 }
 0x182   : > { %3677 = vmatpush1.bf16.msra.mxu1 %v18114_v2  ;;  %3708 = vmatprep.mubr.bf16.mxu1 %v20914_v27  ;;  %v18139_v2 = vpop.permute.xlu1 %3849 }
 0x183   : > { %15063 = vmatprep.subr.msk.bf16.mxu1 %vm787_vm1, %v17135_v36  ;;  %v18150_v36 = vsel %vm787_vm1, %v21020_v45, 0  ;;  %v18174_v45 = vsel %vm3931_vm3, %v17926_v5, %v17950_v49  ;;  %v18190_v5 = vsel %vm3931_vm3, %v17942_v55, %v17966_v56  ;;  %v18219_v56 = vsel %vm3931_vm3, %v18006_v4, %v18002_v10 }
 0x184   : > { %15058 = vmatmul.mubr.msk.bf16.vlgmr.msra.gmra.mrb[56].mxu0 %vm783_vm2, %v17776_v63  ;;  %21053 = vst [vmem:[#allocation163_spill] sm:$0xff] %v18150_v36  ;;  %21059 = vst [vmem:[#allocation169_spill] sm:$0xff] %v18219_v56 }
 0x185   : > { %3718 = vmatpush1.bf16.msra.mxu0 %v18126_v48  ;;  %3749 = vmatprep.mubr.bf16.mxu0 %v20914_v27  ;;  %v18155_v48 = vsel %vm3931_vm3, %v17950_v49, %v17942_v55  ;;  %v18195_v49 = vsel %vm3931_vm3, %v17986_v8, %v17982_v0 }
 0x186   : > { %15066 = vmatprep.subr.msk.bf16.mxu0 %vm787_vm1, %v18131_v54  ;;  %21054 = vst [vmem:[#allocation164_spill] sm:$0xff] %v18155_v48  ;;  %v4000_v54 = vsel %vm787_vm1, %v3932_v9, 0  ;;  %v18169_v3 = vpop.permute.xlu1 %3853  ;;  %v18178_v9 = vpop.permute.xlu0 %3851  ;;  %21057 = vst [vmem:[#allocation167_spill] sm:$0xff] %v18195_v49 }
 0x189   : > { %15060 = vmatmul.mubr.msk.bf16.vlgmr.msra.gmra.mrb[56].mxu1 %vm783_vm2, %v17776_v63 }
 0x18a   : > { %3759 = vmatpush1.bf16.msra.mxu1 %v18150_v36  ;;  %3790 = vmatprep.mubr.bf16.mxu1 %v20914_v27  ;;  %v18185_v36 = vsel %vm787_vm1, %v18174_v45, 0  ;;  %v18212_v55 = vpop.permute.xlu0 %3855 }
 0x18b   : > { %15068 = vmatprep.subr.msk.bf16.mxu1 %vm787_vm1, %v18155_v48  ;;  %21056 = vst [vmem:[#allocation166_spill] sm:$0xff] %v18185_v36  ;;  %v18208_v48 = vsel %vm787_vm1, %v18190_v5, 0 }
 0x18c   : > { %15062 = vmatmul.mubr.msk.bf16.vlgmr.msra.gmra.mrb[60].mxu0 %vm783_vm2, %v17776_v63  ;;  %21058 = vst [vmem:[#allocation168_spill] sm:$0xff] %v18208_v48 }
 0x18d   : > { %4192 = vmatpush1.bf16.msra.mxu0 %v4000_v54  ;;  %4223 = vmatprep.mubr.bf16.mxu0 %v20914_v27  ;;  %v18202_v54 = vld [vmem:[%s20537_s0 + $0x8] sm:$0xf] }
 0x18e   : > { %15070 = vmatprep.subr.msk.bf16.mxu0 %vm787_vm1, %v18167_v52  ;;  %v18204_v52 = vpop.permute.xlu1 %3857 }
 0x191   : > { %15064 = vmatmul.mubr.msk.bf16.vlgmr.msra.gmra.mrb[60].mxu1 %vm783_vm2, %v17776_v63  ;;  %v18224_v63 = vsel %vm3931_vm3, %v17964_v58, %v17986_v8  ;;  %v18246_v8 = vsel %vm3931_vm3, %v18026_v7, %v18018_v21 }
 0x192   : > { %4233 = vmatpush1.bf16.msra.mxu1 %v18185_v36  ;;  %4264 = vmatprep.mubr.bf16.mxu1 %v20914_v27  ;;  %v18234_v36 = vsel %vm787_vm1, %v18224_v63, 0  ;;  %v18241_v58 = vpop.permute.xlu1 %3861  ;;  %21062 = vst [vmem:[#allocation172_spill] sm:$0xff] %v18246_v8 }
 0x193   : > { %15072 = vmatprep.subr.msk.bf16.mxu1 %vm787_vm1, %v18195_v49  ;;  %21060 = vst [vmem:[#allocation170_spill] sm:$0xff] %v18234_v36  ;;  %v18239_v49 = vsel %vm3931_vm3, %v17982_v0, %v18006_v4  ;;  %v18263_v0 = vsel %vm3931_vm3, %v18042_v24, %v18040_v30  ;;  %v18268_v4 = vsel %vm3931_vm3, %v18002_v10, %v18026_v7 }
 0x194   : > { %15067 = vmatmul.mubr.msk.bf16.vlgmr.msra.gmra.mrb[0].mxu0 %vm783_vm2, %v18202_v54  ;;  %21061 = vst [vmem:[#allocation171_spill] sm:$0xff] %v18239_v49  ;;  %21064 = vst [vmem:[#allocation174_spill] sm:$0xff] %v18263_v0  ;;  %v18287_v7 = vsel %vm3931_vm3, %v18018_v21, %v18042_v24  ;;  %v18292_v10 = vsel %vm3931_vm3, %v18062_v61, %v18058_v39  ;;  %v18307_v21 = vsel %vm3931_vm3, %v18082_v15, %v18078_v33 }
 0x195   : > { %4274 = vmatpush1.bf16.msra.mxu0 %v18208_v48  ;;  %4305 = vmatprep.mubr.bf16.mxu0 %v20914_v27  ;;  %v18248_v48 = vpop.permute.xlu0 %3859  ;;  %21066 = vst [vmem:[#allocation176_spill] sm:$0xff] %v18292_v10  ;;  %21068 = vst [vmem:[#allocation178_spill] sm:$0xff] %v18307_v21 }
 0x196   : > { %15074 = vmatprep.subr.msk.bf16.mxu0 %vm787_vm1, %v18219_v56  ;;  %v18254_v56 = vsel %vm787_vm1, %v18239_v49, 0  ;;  %v18282_v49 = vsel %vm787_vm1, %v18268_v4, 0 }
 0x197   : > { %21063 = vst [vmem:[#allocation173_spill] sm:$0xff] %v18254_v56  ;;  %21065 = vst [vmem:[#allocation175_spill] sm:$0xff] %v18282_v49 }
 0x199   : > { %15069 = vmatmul.mubr.msk.bf16.vlgmr.msra.gmra.mrb[0].mxu1 %vm783_vm2, %v18202_v54 }
 0x19a   : > { %4315 = vmatpush1.bf16.msra.mxu1 %v18234_v36  ;;  %4346 = vmatprep.mubr.bf16.mxu1 %v20914_v27  ;;  %v18274_v36 = vpop.permute.xlu1 %3865 }
 0x19b   : > { %15076 = vmatprep.subr.msk.bf16.mxu1 %vm787_vm1, %v18246_v8  ;;  %v18278_v8 = vpop.permute.xlu0 %3863 }
 0x19c   : > { %15071 = vmatmul.mubr.msk.bf16.vlgmr.msra.gmra.mrb[4].mxu0 %vm783_vm2, %v18202_v54 }
 0x19d   : > { %4356 = vmatpush1.bf16.msra.mxu0 %v18254_v56  ;;  %4387 = vmatprep.mubr.bf16.mxu0 %v20914_v27  ;;  %v18298_v56 = vsel %vm787_vm1, %v18287_v7, 0 }
 0x19e   : > { %15078 = vmatprep.subr.msk.bf16.mxu0 %vm787_vm1, %v18263_v0  ;;  %21067 = vst [vmem:[#allocation177_spill] sm:$0xff] %v18298_v56  ;;  %v18309_v24 = vpop.permute.xlu1 %3869  ;;  %v18314_v0 = vsel %vm3931_vm3, %v18040_v30, %v18062_v61  ;;  %v18331_v61 = vsel %vm3931_vm3, %v18058_v39, %v18082_v15  ;;  %v18336_v30 = vsel %vm3931_vm3, %v18102_v1, %v18094_v51 }
 0x19f   : > { %21069 = vst [vmem:[#allocation179_spill] sm:$0xff] %v18314_v0  ;;  %21071 = vst [vmem:[#allocation181_spill] sm:$0xff] %v18336_v30  ;;  %v18355_v39 = vsel %vm3931_vm3, %v18118_v18, %v18116_v6 }
 0x1a0   : > { %21073 = vst [vmem:[#allocation183_spill] sm:$0xff] %v18355_v39 }
 0x1a1   : > { %15073 = vmatmul.mubr.msk.bf16.vlgmr.msra.gmra.mrb[4].mxu1 %vm783_vm2, %v18202_v54 }
 0x1a2   : > { %4397 = vmatpush1.bf16.msra.mxu1 %v18282_v49  ;;  %4428 = vmatprep.mubr.bf16.mxu1 %v20914_v27  ;;  %v18318_v49 = vpop.permute.xlu0 %3867 }
 0x1a3   : > { %15080 = vmatprep.subr.msk.bf16.mxu1 %vm787_vm1, %v18292_v10  ;;  %v18326_v10 = vsel %vm787_vm1, %v18314_v0, 0  ;;  %v18360_v0 = vsel %vm3931_vm3, %v18078_v33, %v18102_v1  ;;  %v18382_v33 = vsel %vm3931_vm3, %v18143_v60, %v18139_v2 }
 0x1a4   : > { %15075 = vmatmul.mubr.msk.bf16.vlgmr.msra.gmra.mrb[8].mxu0 %vm783_vm2, %v18202_v54  ;;  %21070 = vst [vmem:[#allocation180_spill] sm:$0xff] %v18326_v10  ;;  %21076 = vst [vmem:[#allocation186_spill] sm:$0xff] %v18382_v33 }
 0x1a5   : > { %4438 = vmatpush1.bf16.msra.mxu0 %v18298_v56  ;;  %4469 = vmatprep.mubr.bf16.mxu0 %v20914_v27  ;;  %v18340_v56 = vpop.permute.xlu1 %3873 }
 0x1a6   : > { %15082 = vmatprep.subr.msk.bf16.mxu0 %vm787_vm1, %v18307_v21  ;;  %v18344_v21 = vsel %vm787_vm1, %v18331_v61, 0  ;;  %v18348_v15 = vpop.permute.xlu0 %3871 }
 0x1a7   : > { %21072 = vst [vmem:[#allocation182_spill] sm:$0xff] %v18344_v21 }
 0x1a9   : > { %15077 = vmatmul.mubr.msk.bf16.vlgmr.msra.gmra.mrb[8].mxu1 %vm783_vm2, %v18202_v54  ;;  %v18377_v1 = vpop.permute.xlu1 %3877 }
 0x1aa   : > { %4479 = vmatpush1.bf16.msra.mxu1 %v18326_v10  ;;  %4510 = vmatprep.mubr.bf16.mxu1 %v20914_v27  ;;  %v18370_v10 = vsel %vm787_vm1, %v18360_v0, 0 }
 0x1ab   : > { %15084 = vmatprep.subr.msk.bf16.mxu1 %vm787_vm1, %v18336_v30  ;;  %21074 = vst [vmem:[#allocation184_spill] sm:$0xff] %v18370_v10  ;;  %v18375_v30 = vsel %vm3931_vm3, %v18094_v51, %v18118_v18  ;;  %v18399_v51 = vsel %vm3931_vm3, %v18178_v9, %v18169_v3  ;;  %v18404_v18 = vsel %vm3931_vm3, %v18116_v6, %v18143_v60 }
 0x1ac   : > { %15079 = vmatmul.mubr.msk.bf16.vlgmr.msra.gmra.mrb[12].mxu0 %vm783_vm2, %v18202_v54  ;;  %21075 = vst [vmem:[#allocation185_spill] sm:$0xff] %v18375_v30  ;;  %21078 = vst [vmem:[#allocation188_spill] sm:$0xff] %v18399_v51  ;;  %v18421_v6 = vsel %vm3931_vm3, %v18139_v2, %v18178_v9  ;;  %v18426_v60 = vsel %vm3931_vm3, %v18212_v55, %v18204_v52  ;;  %v18441_v2 = vsel %vm3931_vm3, %v18248_v48, %v18241_v58 }
 0x1ad   : > { %4520 = vmatpush1.bf16.msra.mxu0 %v18344_v21  ;;  %4551 = vmatprep.mubr.bf16.mxu0 %v20914_v27  ;;  %v18384_v21 = vpop.permute.xlu0 %3875  ;;  %21080 = vst [vmem:[#allocation190_spill] sm:$0xff] %v18426_v60  ;;  %21082 = vst [vmem:[#allocation192_spill] sm:$0xff] %v18441_v2 }
 0x1ae   : > { %15086 = vmatprep.subr.msk.bf16.mxu0 %vm787_vm1, %v18355_v39  ;;  %v18390_v39 = vsel %vm787_vm1, %v18375_v30, 0  ;;  %v18416_v30 = vsel %vm787_vm1, %v18404_v18, 0 }
 0x1af   : > { %21077 = vst [vmem:[#allocation187_spill] sm:$0xff] %v18390_v39  ;;  %21079 = vst [vmem:[#allocation189_spill] sm:$0xff] %v18416_v30 }
 0x1b1   : > { %15081 = vmatmul.mubr.msk.bf16.vlgmr.msra.gmra.mrb[12].mxu1 %vm783_vm2, %v18202_v54 }
 0x1b2   : > { %4561 = vmatpush1.bf16.msra.mxu1 %v18370_v10  ;;  %4592 = vmatprep.mubr.bf16.mxu1 %v20914_v27  ;;  %v18410_v10 = vpop.permute.xlu1 %3881 }
 0x1b3   : > { %15088 = vmatprep.subr.msk.bf16.mxu1 %vm787_vm1, %v18382_v33  ;;  %v3880_v33 = vpop.permute.xlu0 %3879 }
 0x1b4   : > { %15083 = vmatmul.mubr.msk.bf16.vlgmr.msra.gmra.mrb[16].mxu0 %vm783_vm2, %v18202_v54 }
 0x1b5   : > { %4602 = vmatpush1.bf16.msra.mxu0 %v18390_v39  ;;  %4633 = vmatprep.mubr.bf16.mxu0 %v20914_v27  ;;  %v18432_v39 = vsel %vm787_vm1, %v18421_v6, 0 }
 0x1b6   : > { %15090 = vmatprep.subr.msk.bf16.mxu0 %vm787_vm1, %v18399_v51  ;;  %21081 = vst [vmem:[#allocation191_spill] sm:$0xff] %v18432_v39  ;;  %v18443_v9 = vpop.permute.xlu1 %3885  ;;  %v18448_v51 = vsel %vm3931_vm3, %v18169_v3, %v18212_v55  ;;  %v18463_v3 = vsel %vm3931_vm3, %v18204_v52, %v18248_v48  ;;  %v18468_v55 = vsel %vm3931_vm3, %v18278_v8, %v18274_v36 }
 0x1b7   : > { %21083 = vst [vmem:[#allocation193_spill] sm:$0xff] %v18448_v51  ;;  %21085 = vst [vmem:[#allocation195_spill] sm:$0xff] %v18468_v55  ;;  %v18485_v52 = vsel %vm3931_vm3, %v18318_v49, %v18309_v24 }
 0x1b8   : > { %21087 = vst [vmem:[#allocation197_spill] sm:$0xff] %v18485_v52 }
 0x1b9   : > { %15085 = vmatmul.mubr.msk.bf16.vlgmr.msra.gmra.mrb[16].mxu1 %vm783_vm2, %v18202_v54 }
 0x1ba   : > { %4643 = vmatpush1.bf16.msra.mxu1 %v18416_v30  ;;  %4674 = vmatprep.mubr.bf16.mxu1 %v20914_v27  ;;  %v3884_v30 = vpop.permute.xlu0 %3883 }
 0x1bb   : > { %15092 = vmatprep.subr.msk.bf16.mxu1 %vm787_vm1, %v18426_v60  ;;  %v18458_v60 = vsel %vm787_vm1, %v18448_v51, 0  ;;  %v18490_v51 = vsel %vm3931_vm3, %v18241_v58, %v18278_v8  ;;  %v18510_v8 = vsel %vm3931_vm3, %v18348_v15, %v18340_v56 }
 0x1bc   : > { %15087 = vmatmul.mubr.msk.bf16.vlgmr.msra.gmra.mrb[20].mxu0 %vm783_vm2, %v18202_v54  ;;  %21084 = vst [vmem:[#allocation194_spill] sm:$0xff] %v18458_v60  ;;  %21090 = vst [vmem:[#allocation200_spill] sm:$0xff] %v18510_v8 }
 0x1bd   : > { %4684 = vmatpush1.bf16.msra.mxu0 %v18432_v39  ;;  %4715 = vmatprep.mubr.bf16.mxu0 %v20914_v27  ;;  %v18472_v39 = vpop.permute.xlu1 %3889 }
 0x1be   : > { %15094 = vmatprep.subr.msk.bf16.mxu0 %vm787_vm1, %v18441_v2  ;;  %v18476_v2 = vsel %vm787_vm1, %v18463_v3, 0  ;;  %v3888_v48 = vpop.permute.xlu0 %3887 }
 0x1bf   : > { %21086 = vst [vmem:[#allocation196_spill] sm:$0xff] %v18476_v2 }
 0x1c1   : > { %15089 = vmatmul.mubr.msk.bf16.vlgmr.msra.gmra.mrb[20].mxu1 %vm783_vm2, %v18202_v54  ;;  %v3894_v58 = vpop.permute.xlu1 %3893 }
 0x1c2   : > { %4725 = vmatpush1.bf16.msra.mxu1 %v18458_v60  ;;  %4756 = vmatprep.mubr.bf16.mxu1 %v20914_v27  ;;  %v18500_v60 = vsel %vm787_vm1, %v18490_v51, 0 }
 0x1c3   : > { %15096 = vmatprep.subr.msk.bf16.mxu1 %vm787_vm1, %v18468_v55  ;;  %21088 = vst [vmem:[#allocation198_spill] sm:$0xff] %v18500_v60  ;;  %v18505_v55 = vsel %vm3931_vm3, %v18274_v36, %v18318_v49  ;;  %v18525_v36 = vsel %vm3931_vm3, %v18384_v21, %v18377_v1  ;;  %v18530_v49 = vsel %vm3931_vm3, %v18309_v24, %v18348_v15 }
 0x1c4   : > { %15091 = vmatmul.mubr.msk.bf16.vlgmr.msra.gmra.mrb[24].mxu0 %vm783_vm2, %v18202_v54  ;;  %21089 = vst [vmem:[#allocation199_spill] sm:$0xff] %v18505_v55  ;;  %21092 = vst [vmem:[#allocation202_spill] sm:$0xff] %v18525_v36  ;;  %v18545_v24 = vsel %vm3931_vm3, %v18340_v56, %v18384_v21  ;;  %v18549_v15 = vsel %vm3931_vm3, %v3880_v33, %v18410_v10  ;;  %v18563_v56 = vsel %vm3931_vm3, %v3884_v30, %v18443_v9 }
 0x1c5   : > { %4766 = vmatpush1.bf16.msra.mxu0 %v18476_v2  ;;  %4797 = vmatprep.mubr.bf16.mxu0 %v20914_v27  ;;  %v3892_v2 = vpop.permute.xlu0 %3891  ;;  %21094 = vst [vmem:[#allocation204_spill] sm:$0xff] %v18545_v24  ;;  %21095 = vst [vmem:[#allocation205_spill] sm:$0xff] %v18549_v15 }
 0x1c6   : > { %15098 = vmatprep.subr.msk.bf16.mxu0 %vm787_vm1, %v18485_v52  ;;  %v18516_v52 = vsel %vm787_vm1, %v18505_v55, 0  ;;  %v18540_v55 = vsel %vm787_vm1, %v18530_v49, 0  ;;  %21097 = vst [vmem:[#allocation207_spill] sm:$0xff] %v18563_v56 }
 0x1c7   : > { %21091 = vst [vmem:[#allocation201_spill] sm:$0xff] %v18516_v52  ;;  %21093 = vst [vmem:[#allocation203_spill] sm:$0xff] %v18540_v55 }
 0x1c9   : > { %15093 = vmatmul.mubr.msk.bf16.vlgmr.msra.gmra.mrb[24].mxu1 %vm783_vm2, %v18202_v54 }
 0x1ca   : > { %4807 = vmatpush1.bf16.msra.mxu1 %v18500_v60  ;;  %4838 = vmatprep.mubr.bf16.mxu1 %v20914_v27  ;;  %v3898_v60 = vpop.permute.xlu1 %3897 }
 0x1cb   : > { %15100 = vmatprep.subr.msk.bf16.mxu1 %vm787_vm1, %v18510_v8  ;;  %v3896_v8 = vpop.permute.xlu0 %3895 }
 0x1cc   : > { %15095 = vmatmul.mubr.msk.bf16.vlgmr.msra.gmra.mrb[28].mxu0 %vm783_vm2, %v18202_v54 }
 0x1cd   : > { %4848 = vmatpush1.bf16.msra.mxu0 %v18516_v52  ;;  %4879 = vmatprep.mubr.bf16.mxu0 %v20914_v27  ;;  %v18555_v52 = vsel %vm787_vm1, %v18545_v24, 0 }
 0x1ce   : > { %15102 = vmatprep.subr.msk.bf16.mxu0 %vm787_vm1, %v18525_v36  ;;  %21096 = vst [vmem:[#allocation206_spill] sm:$0xff] %v18555_v52  ;;  %v3902_v21 = vpop.permute.xlu1 %3901  ;;  %v18567_v36 = vsel %vm3931_vm3, %v18377_v1, %v3880_v33  ;;  %v18585_v1 = vsel %vm3931_vm3, %v3888_v48, %v18472_v39 }
 0x1cf   : > { %v3900_v24 = vpop.permute.xlu0 %3899  ;;  %21100 = vst [vmem:[#allocation210_spill] sm:$0xff] %v18585_v1 }
 0x1d1   : > { %15097 = vmatmul.mubr.msk.bf16.vlgmr.msra.gmra.mrb[28].mxu1 %vm783_vm2, %v18202_v54 }
 0x1d2   : > { %4889 = vmatpush1.bf16.msra.mxu1 %v18540_v55  ;;  %4920 = vmatprep.mubr.bf16.mxu1 %v20914_v27  ;;  %v18577_v55 = vsel %vm787_vm1, %v18567_v36, 0  ;;  %v3906_v33 = vpop.permute.xlu1 %3905 }
 0x1d3   : > { %15104 = vmatprep.subr.msk.bf16.mxu1 %vm787_vm1, %v18549_v15  ;;  %21098 = vst [vmem:[#allocation208_spill] sm:$0xff] %v18577_v55  ;;  %v18581_v15 = vsel %vm3931_vm3, %v18410_v10, %v3884_v30  ;;  %v18598_v10 = vsel %vm3931_vm3, %v3892_v2, %v3894_v58  ;;  %v18602_v30 = vsel %vm3931_vm3, %v18443_v9, %v3888_v48 }
 0x1d4   : > { %15099 = vmatmul.mubr.msk.bf16.vlgmr.msra.gmra.mrb[32].mxu0 %vm783_vm2, %v18202_v54  ;;  %21099 = vst [vmem:[#allocation209_spill] sm:$0xff] %v18581_v15  ;;  %21102 = vst [vmem:[#allocation212_spill] sm:$0xff] %v18598_v10  ;;  %v18619_v48 = vsel %vm3931_vm3, %v3896_v8, %v3898_v60 }
 0x1d5   : > { %4930 = vmatpush1.bf16.msra.mxu0 %v18555_v52  ;;  %4961 = vmatprep.mubr.bf16.mxu0 %v20914_v27  ;;  %v18591_v52 = vsel %vm787_vm1, %v18581_v15, 0  ;;  %21105 = vst [vmem:[#allocation215_spill] sm:$0xff] %v18619_v48 }
 0x1d6   : > { %15106 = vmatprep.subr.msk.bf16.mxu0 %vm787_vm1, %v18563_v56  ;;  %21101 = vst [vmem:[#allocation211_spill] sm:$0xff] %v18591_v52  ;;  %v3904_v56 = vpop.permute.xlu0 %3903  ;;  %v3910_v9 = vpop.permute.xlu1 %3909 }
 0x1d9   : > { %15101 = vmatmul.mubr.msk.bf16.vlgmr.msra.gmra.mrb[32].mxu1 %vm783_vm2, %v18202_v54 }
 0x1da   : > { %4971 = vmatpush1.bf16.msra.mxu1 %v18577_v55  ;;  %5002 = vmatprep.mubr.bf16.mxu1 %v20914_v27  ;;  %v18612_v55 = vsel %vm787_vm1, %v18602_v30, 0  ;;  %v3908_v15 = vpop.permute.xlu0 %3907 }
 0x1db   : > { %15108 = vmatprep.subr.msk.bf16.mxu1 %vm787_vm1, %v18585_v1  ;;  %21103 = vst [vmem:[#allocation213_spill] sm:$0xff] %v18612_v55  ;;  %v18616_v1 = vsel %vm3931_vm3, %v18472_v39, %v3892_v2  ;;  %v18632_v39 = vsel %vm3931_vm3, %v3900_v24, %v3902_v21  ;;  %v18635_v2 = vsel %vm3931_vm3, %v3894_v58, %v3896_v8 }
 0x1dc   : > { %15103 = vmatmul.mubr.msk.bf16.vlgmr.msra.gmra.mrb[36].mxu0 %vm783_vm2, %v18202_v54  ;;  %21104 = vst [vmem:[#allocation214_spill] sm:$0xff] %v18616_v1  ;;  %21107 = vst [vmem:[#allocation217_spill] sm:$0xff] %v18632_v39  ;;  %v18651_v58 = vsel %vm3931_vm3, %v3904_v56, %v3906_v33 }
 0x1dd   : > { %5012 = vmatpush1.bf16.msra.mxu0 %v18591_v52  ;;  %5043 = vmatprep.mubr.bf16.mxu0 %v20914_v27  ;;  %v18625_v52 = vsel %vm787_vm1, %v18616_v1, 0  ;;  %v18648_v1 = vsel %vm3931_vm3, %v3898_v60, %v3900_v24  ;;  %21109 = vst [vmem:[#allocation219_spill] sm:$0xff] %v18651_v58  ;;  %v18664_v60 = vsel %vm3931_vm3, %v3908_v15, %v3910_v9 }
 0x1de   : > { %15110 = vmatprep.subr.msk.bf16.mxu0 %vm787_vm1, %v18598_v10  ;;  %21106 = vst [vmem:[#allocation216_spill] sm:$0xff] %v18625_v52  ;;  %v3914_v10 = vpop.permute.xlu1 %3913  ;;  %v18657_v8 = vsel %vm787_vm1, %v18648_v1, 0  ;;  %21111 = vst [vmem:[#allocation221_spill] sm:$0xff] %v18664_v60 }
 0x1df   : > { %21110 = vst [vmem:[#allocation220_spill] sm:$0xff] %v18657_v8 }
 0x1e1   : > { %15105 = vmatmul.mubr.msk.bf16.vlgmr.msra.gmra.mrb[36].mxu1 %vm783_vm2, %v18202_v54 }
 0x1e2   : > { %5053 = vmatpush1.bf16.msra.mxu1 %v18612_v55  ;;  %5084 = vmatprep.mubr.bf16.mxu1 %v20914_v27  ;;  %v3912_v55 = vpop.permute.xlu0 %3911  ;;  %v3918_v24 = vpop.permute.xlu1 %3917 }
 0x1e3   : > { %15112 = vmatprep.subr.msk.bf16.mxu1 %vm787_vm1, %v18619_v48  ;;  %v18645_v48 = vsel %vm787_vm1, %v18635_v2, 0 }
 0x1e4   : > { %15107 = vmatmul.mubr.msk.bf16.vlgmr.msra.gmra.mrb[40].mxu0 %vm783_vm2, %v18202_v54  ;;  %21108 = vst [vmem:[#allocation218_spill] sm:$0xff] %v18645_v48 }
 0x1e5   : > { %5094 = vmatpush1.bf16.msra.mxu0 %v18625_v52  ;;  %5125 = vmatprep.mubr.bf16.mxu0 %v20914_v27  ;;  %v18667_v52 = vsel %vm3931_vm3, %v3902_v21, %v3904_v56  ;;  %v18683_v56 = vsel %vm3931_vm3, %v3912_v55, %v3914_v10 }
 0x1e6   : > { %15114 = vmatprep.subr.msk.bf16.mxu0 %vm787_vm1, %v18632_v39  ;;  %v3916_v39 = vpop.permute.xlu0 %3915  ;;  %21114 = vst [vmem:[#allocation224_spill] sm:$0xff] %v18683_v56  ;;  %v3922_v21 = vpop.permute.xlu1 %3921 }
 0x1e9   : > { %15109 = vmatmul.mubr.msk.bf16.vlgmr.msra.gmra.mrb[40].mxu1 %vm783_vm2, %v18202_v54 }
 0x1ea   : > { %5135 = vmatpush1.bf16.msra.mxu1 %v18645_v48  ;;  %5166 = vmatprep.mubr.bf16.mxu1 %v20914_v27  ;;  %v18677_v48 = vsel %vm787_vm1, %v18667_v52, 0 }
 0x1eb   : > { %15116 = vmatprep.subr.msk.bf16.mxu1 %vm787_vm1, %v18651_v58  ;;  %21112 = vst [vmem:[#allocation222_spill] sm:$0xff] %v18677_v48  ;;  %v18680_v58 = vsel %vm3931_vm3, %v3906_v33, %v3908_v15  ;;  %v18696_v15 = vsel %vm3931_vm3, %v3916_v39, %v3918_v24  ;;  %v18699_v33 = vsel %vm3931_vm3, %v3910_v9, %v3912_v55 }
 0x1ec   : > { %15111 = vmatmul.mubr.msk.bf16.vlgmr.msra.gmra.mrb[44].mxu0 %vm783_vm2, %v18202_v54  ;;  %21113 = vst [vmem:[#allocation223_spill] sm:$0xff] %v18680_v58  ;;  %21116 = vst [vmem:[#allocation226_spill] sm:$0xff] %v18696_v15 }
 0x1ed   : > { %5176 = vmatpush1.bf16.msra.mxu0 %v18657_v8  ;;  %5207 = vmatprep.mubr.bf16.mxu0 %v20914_v27  ;;  %v18689_v8 = vsel %vm787_vm1, %v18680_v58, 0  ;;  %v3926_v58 = vpop.permute.xlu1 %3925 }
 0x1ee   : > { %15118 = vmatprep.subr.msk.bf16.mxu0 %vm787_vm1, %v18664_v60  ;;  %21115 = vst [vmem:[#allocation225_spill] sm:$0xff] %v18689_v8  ;;  %v3920_v60 = vpop.permute.xlu0 %3919 }
 0x1ef   : > { %v18715_v55 = vsel %vm3931_vm3, %v3920_v60, %v3922_v21 }
 0x1f0   : > { %21118 = vst [vmem:[#allocation228_spill] sm:$0xff] %v18715_v55 }
 0x1f1   : > { %15113 = vmatmul.mubr.msk.bf16.vlgmr.msra.gmra.mrb[44].mxu1 %vm783_vm2, %v18202_v54 }
 0x1f2   : > { %5217 = vmatpush1.bf16.msra.mxu1 %v18677_v48  ;;  %5248 = vmatprep.mubr.bf16.mxu1 %v20914_v27  ;;  %v18709_v48 = vsel %vm787_vm1, %v18699_v33, 0  ;;  %v3924_v9 = vpop.permute.xlu0 %3923 }
 0x1f3   : > { %15120 = vmatprep.subr.msk.bf16.mxu1 %vm787_vm1, %v18683_v56  ;;  %21117 = vst [vmem:[#allocation227_spill] sm:$0xff] %v18709_v48  ;;  %v18712_v56 = vsel %vm3931_vm3, %v3914_v10, %v3916_v39  ;;  %v18728_v10 = vsel %vm3931_vm3, %v3924_v9, %v3926_v58  ;;  %v18731_v39 = vsel %vm3931_vm3, %v3918_v24, %v3920_v60 }
 0x1f4   : > { %15115 = vmatmul.mubr.msk.bf16.vlgmr.msra.gmra.mrb[48].mxu0 %vm783_vm2, %v18202_v54  ;;  %v18746_v60 = vsel %vm3931_vm3, %v3922_v21, %v3924_v9 }
 0x1f5   : > { %5258 = vmatpush1.bf16.msra.mxu0 %v18689_v8  ;;  %5289 = vmatprep.mubr.bf16.mxu0 %v20914_v27  ;;  %v18721_v8 = vsel %vm787_vm1, %v18712_v56, 0 }
 0x1f6   : > { %15122 = vmatprep.subr.msk.bf16.mxu0 %vm787_vm1, %v18696_v15  ;;  %21119 = vst [vmem:[#allocation229_spill] sm:$0xff] %v18721_v8  ;;  %v18737_v15 = vpop.permute.xlu1 %3929 }
 0x1f9   : > { %15117 = vmatmul.mubr.msk.bf16.vlgmr.msra.gmra.mrb[48].mxu1 %vm783_vm2, %v18202_v54 }
 0x1fa   : > { %5299 = vmatpush1.bf16.msra.mxu1 %v18709_v48  ;;  %5330 = vmatprep.mubr.bf16.mxu1 %v20914_v27  ;;  %v3928_v48 = vpop.permute.xlu0 %3927 }
 0x1fb   : > { %15124 = vmatprep.subr.msk.bf16.mxu1 %vm787_vm1, %v18715_v55  ;;  %v18743_v55 = vsel %vm787_vm1, %v18731_v39, 0  ;;  %v18750_v24 = vsel %vm3931_vm3, %v3928_v48, %v18737_v15  ;;  %v18763_v21 = vsel %vm3931_vm3, %v3926_v58, %v3928_v48  ;;  %v2299_v48 = vsel %vm787_vm1, %v16767_v12, 0  ;;  %v18795_v12 = vld [vmem:[%s20537_s0 + $0xc] sm:$0xf] }
 0x1fc   : > { %15119 = vmatmul.mubr.msk.bf16.vlgmr.msra.gmra.mrb[52].mxu0 %vm783_vm2, %v18202_v54  ;;  %21120 = vst [vmem:[#allocation230_spill] sm:$0xff] %v18743_v55  ;;  %v18773_v9 = vsel %vm787_vm1, %v18763_v21, 0  ;;  %v2317_v58 = vsel %vm787_vm1, %v16796_v19, 0 }
 0x1fd   : > { %5340 = vmatpush1.bf16.msra.mxu0 %v18721_v8  ;;  %5371 = vmatprep.mubr.bf16.mxu0 %v20914_v27  ;;  %v18756_v8 = vsel %vm787_vm1, %v18746_v60, 0  ;;  %21122 = vst [vmem:[#allocation232_spill] sm:$0xff] %v18773_v9 }
 0x1fe   : > { %15126 = vmatprep.subr.msk.bf16.mxu0 %vm787_vm1, %v18728_v10  ;;  %21121 = vst [vmem:[#allocation231_spill] sm:$0xff] %v18756_v8 }
 0x201   : > { %15121 = vmatmul.mubr.msk.bf16.vlgmr.msra.gmra.mrb[52].mxu1 %vm783_vm2, %v18202_v54 }
 0x202   : > { %5381 = vmatpush1.bf16.msra.mxu1 %v18743_v55  ;;  %5412 = vmatprep.mubr.bf16.mxu1 %v20914_v27  ;;  %v21158_v55 = vld [vmem:[#allocation36_spill] sm:$0xff] }
 0x203   : > { %15128 = vmatprep.subr.msk.bf16.mxu1 %vm787_vm1, %v18750_v24 }
 0x204   : > { %15123 = vmatmul.mubr.msk.bf16.vlgmr.msra.gmra.mrb[56].mxu0 %vm783_vm2, %v18202_v54 }
 0x205   : > { %5422 = vmatpush1.bf16.msra.mxu0 %v18756_v8  ;;  %5453 = vmatprep.mubr.bf16.mxu0 %v20914_v27  ;;  %v21157_v8 = vld [vmem:[#allocation41_spill] sm:$0xff] }
 0x206   : > { %15131 = vmatprep.subr.msk.bf16.mxu0 %vm787_vm1, %v16763_v11  ;;  %v2305_v11 = vsel %vm787_vm1, %v16773_v13, 0 }
 0x209   : > { %15125 = vmatmul.mubr.msk.bf16.vlgmr.msra.gmra.mrb[56].mxu1 %vm783_vm2, %v18202_v54 }
 0x20a   : > { %5463 = vmatpush1.bf16.msra.mxu1 %v18773_v9  ;;  %5494 = vmatprep.mubr.bf16.mxu1 %v20914_v27 }
 0x20b   : > { %15133 = vmatprep.subr.msk.bf16.mxu1 %vm787_vm1, %v16776_v14  ;;  %v2311_v14 = vsel %vm787_vm1, %v16784_v16, 0 }
 0x20c   : > { %15127 = vmatmul.mubr.msk.bf16.vlgmr.msra.gmra.mrb[60].mxu0 %vm783_vm2, %v18202_v54 }
 0x20d   : > { %5576 = vmatpush1.bf16.msra.mxu0 %v2299_v48  ;;  %5607 = vmatprep.mubr.bf16.mxu0 %v20914_v27  ;;  %v21123_v48 = vld [vmem:[#allocation3_spill] sm:$0xff] }
 0x20e   : > { %15135 = vmatprep.subr.msk.bf16.mxu0 %vm787_vm1, %v16787_v17  ;;  %v16657_v17 = vld [vmem:[%s16753_s26 + $0x80] sm:$0x3f] }
 0x211   : > { %15129 = vmatmul.mubr.msk.bf16.vlgmr.msra.gmra.mrb[60].mxu1 %vm783_vm2, %v18202_v54  ;;  %v11112_v54 = vcombine.high %v16657_v17, %v16657_v17  ;;  %v21125_v17 = vld [vmem:[#allocation5_spill] sm:$0xff] }
 0x212   : > { %5617 = vmatpush1.bf16.msra.mxu1 %v2305_v11  ;;  %5648 = vmatprep.mubr.bf16.mxu1 %v20914_v27 }
 0x213   : > { %15137 = vmatprep.subr.msk.bf16.mxu1 %vm787_vm1, %v16799_v20  ;;  %v11119_v11 = vrot.slane %v11112_v54, %v21123_v48  ;;  %v2323_v20 = vsel %vm787_vm1, %v16807_v22, 0  ;;  %v21126_v54 = vld [vmem:[#allocation7_spill] sm:$0xff]  ;;  %v21128_v48 = vld [vmem:[#allocation8_spill] sm:$0xff] }
 0x214   : > { %15132 = vmatmul.mubr.msk.bf16.vlgmr.msra.gmra.mrb[0].mxu0 %vm783_vm2, %v18795_v12 }
 0x215   : > { %5658 = vmatpush1.bf16.msra.mxu0 %v2311_v14  ;;  %5689 = vmatprep.mubr.bf16.mxu0 %v20914_v27 }
 0x216   : > { %15139 = vmatprep.subr.msk.bf16.mxu0 %vm787_vm1, %v16810_v23  ;;  %11120 = vrot.lane.b32.xlu0 %v11119_v11, %s16685_s27  ;;  %v2329_v23 = vsel %vm787_vm1, %v16819_v25, 0 }
 0x217   : > { %12507 = vrot.lane.b32.xlu1 %v11119_v11, %s16686_s30  ;;  %v2395_v11 = vsel %vm787_vm1, %v21128_v48, 0 }
 0x219   : > { %15134 = vmatmul.mubr.msk.bf16.vlgmr.msra.gmra.mrb[0].mxu1 %vm783_vm2, %v18795_v12 }
 0x21a   : > { %5699 = vmatpush1.bf16.msra.mxu1 %v2317_v58  ;;  %5730 = vmatprep.mubr.bf16.mxu1 %v20914_v27 }
 0x21b   : > { %15141 = vmatprep.subr.msk.bf16.mxu1 %vm787_vm1, %v16822_v26  ;;  %v2335_v26 = vsel %vm787_vm1, %v16830_v28, 0 }
 0x21c   : > { %15136 = vmatmul.mubr.msk.bf16.vlgmr.msra.gmra.mrb[4].mxu0 %vm783_vm2, %v18795_v12 }
 0x21d   : > { %5740 = vmatpush1.bf16.msra.mxu0 %v2323_v20  ;;  %5771 = vmatprep.mubr.bf16.mxu0 %v20914_v27  ;;  %v21130_v20 = vld [vmem:[#allocation9_spill] sm:$0xff] }
 0x21e   : > { %15143 = vmatprep.subr.msk.bf16.mxu0 %vm787_vm1, %v16833_v29  ;;  %v2341_v29 = vsel %vm787_vm1, %v16842_v31, 0 }
 0x221   : > { %15138 = vmatmul.mubr.msk.bf16.vlgmr.msra.gmra.mrb[4].mxu1 %vm783_vm2, %v18795_v12 }
 0x222   : > { %5781 = vmatpush1.bf16.msra.mxu1 %v2329_v23  ;;  %5812 = vmatprep.mubr.bf16.mxu1 %v20914_v27  ;;  %v2401_v23 = vsel %vm787_vm1, %v21130_v20, 0 }
 0x223   : > { %15145 = vmatprep.subr.msk.bf16.mxu1 %vm787_vm1, %v16845_v32  ;;  %v2347_v32 = vsel %vm787_vm1, %v16853_v34, 0 }
 0x224   : > { %15140 = vmatmul.mubr.msk.bf16.vlgmr.msra.gmra.mrb[8].mxu0 %vm783_vm2, %v18795_v12 }
 0x225   : > { %5822 = vmatpush1.bf16.msra.mxu0 %v2335_v26  ;;  %5853 = vmatprep.mubr.bf16.mxu0 %v20914_v27  ;;  %v21131_v26 = vld [vmem:[#allocation10_spill] sm:$0xff] }
 0x226   : > { %15147 = vmatprep.subr.msk.bf16.mxu0 %vm787_vm1, %v16856_v35  ;;  %v2353_v35 = vsel %vm787_vm1, %v16865_v37, 0 }
 0x229   : > { %15142 = vmatmul.mubr.msk.bf16.vlgmr.msra.gmra.mrb[8].mxu1 %vm783_vm2, %v18795_v12 }
 0x22a   : > { %5863 = vmatpush1.bf16.msra.mxu1 %v2341_v29  ;;  %5894 = vmatprep.mubr.bf16.mxu1 %v20914_v27  ;;  %v21132_v29 = vld [vmem:[#allocation13_spill] sm:$0xff] }
 0x22b   : > { %15149 = vmatprep.subr.msk.bf16.mxu1 %vm787_vm1, %v16868_v38  ;;  %v2359_v38 = vsel %vm787_vm1, %v16876_v40, 0 }
 0x22c   : > { %15144 = vmatmul.mubr.msk.bf16.vlgmr.msra.gmra.mrb[12].mxu0 %vm783_vm2, %v18795_v12 }
 0x22d   : > { %5904 = vmatpush1.bf16.msra.mxu0 %v2347_v32  ;;  %5935 = vmatprep.mubr.bf16.mxu0 %v20914_v27  ;;  %v21133_v32 = vld [vmem:[#allocation15_spill] sm:$0xff] }
 0x22e   : > { %15151 = vmatprep.subr.msk.bf16.mxu0 %vm787_vm1, %v16879_v41  ;;  %v2365_v41 = vsel %vm787_vm1, %v16888_v43, 0 }
 0x231   : > { %15146 = vmatmul.mubr.msk.bf16.vlgmr.msra.gmra.mrb[12].mxu1 %vm783_vm2, %v18795_v12 }
 0x232   : > { %5945 = vmatpush1.bf16.msra.mxu1 %v2353_v35  ;;  %5976 = vmatprep.mubr.bf16.mxu1 %v20914_v27  ;;  %v21134_v35 = vld [vmem:[#allocation12_spill] sm:$0xff] }
 0x233   : > { %15153 = vmatprep.subr.msk.bf16.mxu1 %vm787_vm1, %v16891_v44  ;;  %v2371_v44 = vsel %vm787_vm1, %v16899_v46, 0 }
 0x234   : > { %15148 = vmatmul.mubr.msk.bf16.vlgmr.msra.gmra.mrb[16].mxu0 %vm783_vm2, %v18795_v12 }
 0x235   : > { %5986 = vmatpush1.bf16.msra.mxu0 %v2359_v38  ;;  %6017 = vmatprep.mubr.bf16.mxu0 %v20914_v27  ;;  %v2413_v38 = vsel %vm787_vm1, %v21134_v35, 0 }
 0x236   : > { %15155 = vmatprep.subr.msk.bf16.mxu0 %vm787_vm1, %v16902_v47  ;;  %v21124_v47 = vld [vmem:[#allocation4_spill] sm:$0xff] }
 0x237   : > { %v2377_v14 = vsel %vm787_vm1, %v21124_v47, 0 }
 0x239   : > { %15150 = vmatmul.mubr.msk.bf16.vlgmr.msra.gmra.mrb[16].mxu1 %vm783_vm2, %v18795_v12 }
 0x23a   : > { %6027 = vmatpush1.bf16.msra.mxu1 %v2365_v41  ;;  %6058 = vmatprep.mubr.bf16.mxu1 %v20914_v27  ;;  %v21135_v41 = vld [vmem:[#allocation14_spill] sm:$0xff] }
 0x23b   : > { %15157 = vmatprep.subr.msk.bf16.mxu1 %vm787_vm1, %v16914_v50  ;;  %v2383_v50 = vsel %vm787_vm1, %v21125_v17, 0 }
 0x23c   : > { %15152 = vmatmul.mubr.msk.bf16.vlgmr.msra.gmra.mrb[20].mxu0 %vm783_vm2, %v18795_v12 }
 0x23d   : > { %6068 = vmatpush1.bf16.msra.mxu0 %v2371_v44  ;;  %6099 = vmatprep.mubr.bf16.mxu0 %v20914_v27  ;;  %v2419_v44 = vsel %vm787_vm1, %v21135_v41, 0 }
 0x23e   : > { %15159 = vmatprep.subr.msk.bf16.mxu0 %vm787_vm1, %v16925_v53  ;;  %v21127_v53 = vld [vmem:[#allocation6_spill] sm:$0xff] }
 0x23f   : > { %v2389_v58 = vsel %vm787_vm1, %v21127_v53, 0 }
 0x241   : > { %15154 = vmatmul.mubr.msk.bf16.vlgmr.msra.gmra.mrb[20].mxu1 %vm783_vm2, %v18795_v12 }
 0x242   : > { %6109 = vmatpush1.bf16.msra.mxu1 %v2377_v14  ;;  %6140 = vmatprep.mubr.bf16.mxu1 %v20914_v27  ;;  %v21136_v14 = vld [vmem:[#allocation17_spill] sm:$0xff] }
 0x243   : > { %15161 = vmatprep.subr.msk.bf16.mxu1 %vm787_vm1, %v21126_v54  ;;  %v21138_v54 = vld [vmem:[#allocation16_spill] sm:$0xff] }
 0x244   : > { %15156 = vmatmul.mubr.msk.bf16.vlgmr.msra.gmra.mrb[24].mxu0 %vm783_vm2, %v18795_v12 }
 0x245   : > { %6150 = vmatpush1.bf16.msra.mxu0 %v2383_v50  ;;  %6181 = vmatprep.mubr.bf16.mxu0 %v20914_v27  ;;  %v21137_v50 = vld [vmem:[#allocation19_spill] sm:$0xff] }
 0x246   : > { %15163 = vmatprep.subr.msk.bf16.mxu0 %vm787_vm1, %v16948_v59  ;;  %v21129_v59 = vld [vmem:[#allocation11_spill] sm:$0xff] }
 0x249   : > { %15158 = vmatmul.mubr.msk.bf16.vlgmr.msra.gmra.mrb[24].mxu1 %vm783_vm2, %v18795_v12 }
 0x24a   : > { %6191 = vmatpush1.bf16.msra.mxu1 %v2389_v58  ;;  %6222 = vmatprep.mubr.bf16.mxu1 %v20914_v27  ;;  %v2425_v58 = vsel %vm787_vm1, %v21138_v54, 0 }
 0x24b   : > { %15165 = vmatprep.subr.msk.bf16.mxu1 %vm787_vm1, %v16960_v62  ;;  %v2407_v62 = vsel %vm787_vm1, %v21131_v26, 0 }
 0x24c   : > { %15160 = vmatmul.mubr.msk.bf16.vlgmr.msra.gmra.mrb[28].mxu0 %vm783_vm2, %v18795_v12 }
 0x24d   : > { %6232 = vmatpush1.bf16.msra.mxu0 %v2395_v11  ;;  %6263 = vmatprep.mubr.bf16.mxu0 %v20914_v27  ;;  %v21139_v11 = vld [vmem:[#allocation18_spill] sm:$0xff] }
 0x24e   : > { %15167 = vmatprep.subr.msk.bf16.mxu0 %vm787_vm1, %v21129_v59  ;;  %v2431_v59 = vsel %vm787_vm1, %v21139_v11, 0 }
 0x251   : > { %15162 = vmatmul.mubr.msk.bf16.vlgmr.msra.gmra.mrb[28].mxu1 %vm783_vm2, %v18795_v12 }
 0x252   : > { %6273 = vmatpush1.bf16.msra.mxu1 %v2401_v23  ;;  %6304 = vmatprep.mubr.bf16.mxu1 %v20914_v27  ;;  %v21140_v23 = vld [vmem:[#allocation21_spill] sm:$0xff] }
 0x253   : > { %15169 = vmatprep.subr.msk.bf16.mxu1 %vm787_vm1, %v21132_v29  ;;  %v21142_v29 = vld [vmem:[#allocation20_spill] sm:$0xff] }
 0x254   : > { %15164 = vmatmul.mubr.msk.bf16.vlgmr.msra.gmra.mrb[32].mxu0 %vm783_vm2, %v18795_v12 }
 0x255   : > { %6314 = vmatpush1.bf16.msra.mxu0 %v2407_v62  ;;  %6345 = vmatprep.mubr.bf16.mxu0 %v20914_v27  ;;  %v21141_v62 = vld [vmem:[#allocation23_spill] sm:$0xff] }
 0x256   : > { %15171 = vmatprep.subr.msk.bf16.mxu0 %vm787_vm1, %v21133_v32  ;;  %v2437_v32 = vsel %vm787_vm1, %v21142_v29, 0 }
 0x259   : > { %15166 = vmatmul.mubr.msk.bf16.vlgmr.msra.gmra.mrb[32].mxu1 %vm783_vm2, %v18795_v12 }
 0x25a   : > { %6355 = vmatpush1.bf16.msra.mxu1 %v2413_v38  ;;  %6386 = vmatprep.mubr.bf16.mxu1 %v20914_v27  ;;  %v21143_v38 = vld [vmem:[#allocation22_spill] sm:$0xff] }
 0x25b   : > { %15173 = vmatprep.subr.msk.bf16.mxu1 %vm787_vm1, %v21136_v14  ;;  %v21144_v14 = vld [vmem:[#allocation25_spill] sm:$0xff] }
 0x25c   : > { %15168 = vmatmul.mubr.msk.bf16.vlgmr.msra.gmra.mrb[36].mxu0 %vm783_vm2, %v18795_v12 }
 0x25d   : > { %6396 = vmatpush1.bf16.msra.mxu0 %v2419_v44  ;;  %6427 = vmatprep.mubr.bf16.mxu0 %v20914_v27  ;;  %v2443_v44 = vsel %vm787_vm1, %v21143_v38, 0 }
 0x25e   : > { %15175 = vmatprep.subr.msk.bf16.mxu0 %vm787_vm1, %v21137_v50  ;;  %v21145_v50 = vld [vmem:[#allocation24_spill] sm:$0xff] }
 0x261   : > { %15170 = vmatmul.mubr.msk.bf16.vlgmr.msra.gmra.mrb[36].mxu1 %vm783_vm2, %v18795_v12 }
 0x262   : > { %6437 = vmatpush1.bf16.msra.mxu1 %v2425_v58  ;;  %6468 = vmatprep.mubr.bf16.mxu1 %v20914_v27  ;;  %v2449_v58 = vsel %vm787_vm1, %v21145_v50, 0 }
 0x263   : > { %15177 = vmatprep.subr.msk.bf16.mxu1 %vm787_vm1, %v21140_v23 }
 0x264   : > { %15172 = vmatmul.mubr.msk.bf16.vlgmr.msra.gmra.mrb[40].mxu0 %vm783_vm2, %v18795_v12 }
 0x265   : > { %6478 = vmatpush1.bf16.msra.mxu0 %v2431_v59  ;;  %6509 = vmatprep.mubr.bf16.mxu0 %v20914_v27  ;;  %v21146_v59 = vld [vmem:[#allocation26_spill] sm:$0xff] }
 0x266   : > { %15179 = vmatprep.subr.msk.bf16.mxu0 %vm787_vm1, %v21141_v62  ;;  %v2455_v23 = vsel %vm787_vm1, %v21146_v59, 0  ;;  %v21147_v62 = vld [vmem:[#allocation29_spill] sm:$0xff] }
 0x269   : > { %15174 = vmatmul.mubr.msk.bf16.vlgmr.msra.gmra.mrb[40].mxu1 %vm783_vm2, %v18795_v12 }
 0x26a   : > { %6519 = vmatpush1.bf16.msra.mxu1 %v2437_v32  ;;  %6550 = vmatprep.mubr.bf16.mxu1 %v20914_v27 }
 0x26b   : > { %15181 = vmatprep.subr.msk.bf16.mxu1 %vm787_vm1, %v21144_v14 }
 0x26c   : > { %15176 = vmatmul.mubr.msk.bf16.vlgmr.msra.gmra.mrb[44].mxu0 %vm783_vm2, %v18795_v12 }
 0x26d   : > { %6560 = vmatpush1.bf16.msra.mxu0 %v2443_v44  ;;  %6591 = vmatprep.mubr.bf16.mxu0 %v20914_v27  ;;  %v21149_v44 = vld [vmem:[#allocation30_spill] sm:$0xff] }
 0x26e   : > { %15183 = vmatprep.subr.msk.bf16.mxu0 %vm787_vm1, %v21047_v42  ;;  %v21148_v42 = vld [vmem:[#allocation28_spill] sm:$0xff]  ;;  %v2467_v14 = vsel %vm787_vm1, %v21149_v44, 0 }
 0x26f   : > { %v2461_v32 = vsel %vm787_vm1, %v21148_v42, 0 }
 0x271   : > { %15178 = vmatmul.mubr.msk.bf16.vlgmr.msra.gmra.mrb[44].mxu1 %vm783_vm2, %v18795_v12 }
 0x272   : > { %6601 = vmatpush1.bf16.msra.mxu1 %v2449_v58  ;;  %6632 = vmatprep.mubr.bf16.mxu1 %v20914_v27  ;;  %v21150_v58 = vld [vmem:[#allocation33_spill] sm:$0xff] }
 0x273   : > { %15185 = vmatprep.subr.msk.bf16.mxu1 %vm787_vm1, %v21147_v62 }
 0x274   : > { %15180 = vmatmul.mubr.msk.bf16.vlgmr.msra.gmra.mrb[48].mxu0 %vm783_vm2, %v18795_v12 }
 0x275   : > { %6642 = vmatpush1.bf16.msra.mxu0 %v2455_v23  ;;  %6673 = vmatprep.mubr.bf16.mxu0 %v20914_v27  ;;  %v21152_v23 = vld [vmem:[#allocation32_spill] sm:$0xff] }
 0x276   : > { %15187 = vmatprep.subr.msk.bf16.mxu0 %vm787_vm1, %v21014_v57  ;;  %v21151_v57 = vld [vmem:[#allocation35_spill] sm:$0xff]  ;;  %v2473_v62 = vsel %vm787_vm1, %v21152_v23, 0 }
 0x279   : > { %15182 = vmatmul.mubr.msk.bf16.vlgmr.msra.gmra.mrb[48].mxu1 %vm783_vm2, %v18795_v12 }
 0x27a   : > { %6683 = vmatpush1.bf16.msra.mxu1 %v2461_v32  ;;  %6714 = vmatprep.mubr.bf16.mxu1 %v20914_v27  ;;  %v21153_v32 = vld [vmem:[#allocation34_spill] sm:$0xff] }
 0x27b   : > { %15189 = vmatprep.subr.msk.bf16.mxu1 %vm787_vm1, %v21150_v58  ;;  %v2479_v9 = vsel %vm787_vm1, %v21153_v32, 0  ;;  %v21154_v58 = vld [vmem:[#allocation37_spill] sm:$0xff] }
 0x27c   : > { %15184 = vmatmul.mubr.msk.bf16.vlgmr.msra.gmra.mrb[52].mxu0 %vm783_vm2, %v18795_v12 }
 0x27d   : > { %6724 = vmatpush1.bf16.msra.mxu0 %v2467_v14  ;;  %6755 = vmatprep.mubr.bf16.mxu0 %v20914_v27  ;;  %v21155_v14 = vld [vmem:[#allocation38_spill] sm:$0xff] }
 0x27e   : > { %15191 = vmatprep.subr.msk.bf16.mxu0 %vm787_vm1, %v21151_v57  ;;  %v21156_v57 = vld [vmem:[#allocation39_spill] sm:$0xff] }
 0x281   : > { %15186 = vmatmul.mubr.msk.bf16.vlgmr.msra.gmra.mrb[52].mxu1 %vm783_vm2, %v18795_v12 }
 0x282   : > { %6765 = vmatpush1.bf16.msra.mxu1 %v2473_v62  ;;  %6796 = vmatprep.mubr.bf16.mxu1 %v20914_v27  ;;  %v2485_v62 = vsel %vm787_vm1, %v21156_v57, 0  ;;  %v19222_v57 = vpop.permute.xlu0 %6954 }
 0x283   : > { %15193 = vmatprep.subr.msk.bf16.mxu1 %vm787_vm1, %v21154_v58 }
 0x284   : > { %15188 = vmatmul.mubr.msk.bf16.vlgmr.msra.gmra.mrb[56].mxu0 %vm783_vm2, %v18795_v12 }
 0x285   : > { %6806 = vmatpush1.bf16.msra.mxu0 %v2479_v9  ;;  %6837 = vmatprep.mubr.bf16.mxu0 %v20914_v27  ;;  %v792_v9 = vsel %vm787_vm1, %v21158_v55, 0  ;;  %v21161_v55 = vld [vmem:[#allocation47_spill] sm:$0xff] }
 0x286   : > { %15196 = vmatprep.subr.msk.bf16.mxu0 %vm787_vm1, %v21155_v14  ;;  %v21159_v14 = vld [vmem:[#allocation45_spill] sm:$0xff] }
 0x289   : > { %15190 = vmatmul.mubr.msk.bf16.vlgmr.msra.gmra.mrb[56].mxu1 %vm783_vm2, %v18795_v12 }
 0x28a   : > { %6847 = vmatpush1.bf16.msra.mxu1 %v2485_v62  ;;  %6878 = vmatprep.mubr.bf16.mxu1 %v20914_v27  ;;  %v21160_v62 = vld [vmem:[#allocation40_spill] sm:$0xff] }
 0x28b   : > { %15198 = vmatprep.subr.msk.bf16.mxu1 %vm787_vm1, %v21157_v8  ;;  %v798_v58 = vsel %vm787_vm1, %v21160_v62, 0  ;;  %v19028_v8 = vld [vmem:[%s20537_s0 + $0x10] sm:$0xf] }
 0x28c   : > { %15192 = vmatmul.mubr.msk.bf16.vlgmr.msra.gmra.mrb[60].mxu0 %vm783_vm2, %v18795_v12 }
 0x28d   : > { %6964 = vmatpush1.bf16.msra.mxu0 %v792_v9  ;;  %6995 = vmatprep.mubr.bf16.mxu0 %v20914_v27  ;;  %v21162_v9 = vld [vmem:[#allocation43_spill] sm:$0xff] }
 0x28e   : > { %15200 = vmatprep.subr.msk.bf16.mxu0 %vm787_vm1, %v21159_v14  ;;  %v21163_v14 = vld [vmem:[#allocation51_spill] sm:$0xff] }
 0x291   : > { %15194 = vmatmul.mubr.msk.bf16.vlgmr.msra.gmra.mrb[60].mxu1 %vm783_vm2, %v18795_v12  ;;  %v804_v12 = vsel %vm787_vm1, %v21162_v9, 0 }
 0x292   : > { %7005 = vmatpush1.bf16.msra.mxu1 %v798_v58  ;;  %7036 = vmatprep.mubr.bf16.mxu1 %v20914_v27  ;;  %v21164_v58 = vld [vmem:[#allocation46_spill] sm:$0xff] }
 0x293   : > { %15202 = vmatprep.subr.msk.bf16.mxu1 %vm787_vm1, %v21161_v55  ;;  %v810_v62 = vsel %vm787_vm1, %v21164_v58, 0  ;;  %v21165_v55 = vld [vmem:[#allocation53_spill] sm:$0xff] }
 0x294   : > { %15197 = vmatmul.mubr.msk.bf16.vlgmr.msra.gmra.mrb[0].mxu0 %vm783_vm2, %v19028_v8 }
 0x295   : > { %7046 = vmatpush1.bf16.msra.mxu0 %v804_v12  ;;  %7077 = vmatprep.mubr.bf16.mxu0 %v20914_v27  ;;  %v21166_v12 = vld [vmem:[#allocation49_spill] sm:$0xff] }
 0x296   : > { %15204 = vmatprep.subr.msk.bf16.mxu0 %vm787_vm1, %v21163_v14  ;;  %v816_v9 = vsel %vm787_vm1, %v21166_v12, 0  ;;  %v21167_v14 = vld [vmem:[#allocation57_spill] sm:$0xff] }
 0x299   : > { %15199 = vmatmul.mubr.msk.bf16.vlgmr.msra.gmra.mrb[0].mxu1 %vm783_vm2, %v19028_v8 }
 0x29a   : > { %7087 = vmatpush1.bf16.msra.mxu1 %v810_v62  ;;  %7118 = vmatprep.mubr.bf16.mxu1 %v20914_v27  ;;  %v21168_v62 = vld [vmem:[#allocation52_spill] sm:$0xff] }
 0x29b   : > { %15206 = vmatprep.subr.msk.bf16.mxu1 %vm787_vm1, %v21165_v55  ;;  %v822_v58 = vsel %vm787_vm1, %v21168_v62, 0  ;;  %v21169_v55 = vld [vmem:[#allocation59_spill] sm:$0xff] }
 0x29c   : > { %15201 = vmatmul.mubr.msk.bf16.vlgmr.msra.gmra.mrb[4].mxu0 %vm783_vm2, %v19028_v8 }
 0x29d   : > { %7128 = vmatpush1.bf16.msra.mxu0 %v816_v9  ;;  %7159 = vmatprep.mubr.bf16.mxu0 %v20914_v27  ;;  %v21170_v9 = vld [vmem:[#allocation55_spill] sm:$0xff] }
 0x29e   : > { %15208 = vmatprep.subr.msk.bf16.mxu0 %vm787_vm1, %v21167_v14  ;;  %v828_v12 = vsel %vm787_vm1, %v21170_v9, 0  ;;  %v21171_v14 = vld [vmem:[#allocation63_spill] sm:$0xff] }
 0x2a1   : > { %15203 = vmatmul.mubr.msk.bf16.vlgmr.msra.gmra.mrb[4].mxu1 %vm783_vm2, %v19028_v8 }
 0x2a2   : > { %7169 = vmatpush1.bf16.msra.mxu1 %v822_v58  ;;  %7200 = vmatprep.mubr.bf16.mxu1 %v20914_v27  ;;  %v21172_v58 = vld [vmem:[#allocation58_spill] sm:$0xff] }
 0x2a3   : > { %15210 = vmatprep.subr.msk.bf16.mxu1 %vm787_vm1, %v21169_v55  ;;  %v834_v62 = vsel %vm787_vm1, %v21172_v58, 0  ;;  %v21173_v55 = vld [vmem:[#allocation65_spill] sm:$0xff] }
 0x2a4   : > { %15205 = vmatmul.mubr.msk.bf16.vlgmr.msra.gmra.mrb[8].mxu0 %vm783_vm2, %v19028_v8 }
 0x2a5   : > { %7210 = vmatpush1.bf16.msra.mxu0 %v828_v12  ;;  %7241 = vmatprep.mubr.bf16.mxu0 %v20914_v27  ;;  %v21174_v12 = vld [vmem:[#allocation61_spill] sm:$0xff] }
 0x2a6   : > { %15212 = vmatprep.subr.msk.bf16.mxu0 %vm787_vm1, %v21171_v14  ;;  %v840_v9 = vsel %vm787_vm1, %v21174_v12, 0  ;;  %v21175_v14 = vld [vmem:[#allocation69_spill] sm:$0xff] }
 0x2a9   : > { %15207 = vmatmul.mubr.msk.bf16.vlgmr.msra.gmra.mrb[8].mxu1 %vm783_vm2, %v19028_v8 }
 0x2aa   : > { %7251 = vmatpush1.bf16.msra.mxu1 %v834_v62  ;;  %7282 = vmatprep.mubr.bf16.mxu1 %v20914_v27  ;;  %v21176_v62 = vld [vmem:[#allocation64_spill] sm:$0xff] }
 0x2ab   : > { %15214 = vmatprep.subr.msk.bf16.mxu1 %vm787_vm1, %v21173_v55  ;;  %v846_v58 = vsel %vm787_vm1, %v21176_v62, 0  ;;  %v21177_v55 = vld [vmem:[#allocation71_spill] sm:$0xff] }
 0x2ac   : > { %15209 = vmatmul.mubr.msk.bf16.vlgmr.msra.gmra.mrb[12].mxu0 %vm783_vm2, %v19028_v8 }
 0x2ad   : > { %7292 = vmatpush1.bf16.msra.mxu0 %v840_v9  ;;  %7323 = vmatprep.mubr.bf16.mxu0 %v20914_v27  ;;  %v21178_v9 = vld [vmem:[#allocation67_spill] sm:$0xff] }
 0x2ae   : > { %15216 = vmatprep.subr.msk.bf16.mxu0 %vm787_vm1, %v21175_v14  ;;  %v852_v12 = vsel %vm787_vm1, %v21178_v9, 0  ;;  %v21179_v14 = vld [vmem:[#allocation75_spill] sm:$0xff] }
 0x2b1   : > { %15211 = vmatmul.mubr.msk.bf16.vlgmr.msra.gmra.mrb[12].mxu1 %vm783_vm2, %v19028_v8 }
 0x2b2   : > { %7333 = vmatpush1.bf16.msra.mxu1 %v846_v58  ;;  %7364 = vmatprep.mubr.bf16.mxu1 %v20914_v27  ;;  %v21180_v58 = vld [vmem:[#allocation70_spill] sm:$0xff] }
 0x2b3   : > { %15218 = vmatprep.subr.msk.bf16.mxu1 %vm787_vm1, %v21177_v55  ;;  %v858_v62 = vsel %vm787_vm1, %v21180_v58, 0  ;;  %v21181_v55 = vld [vmem:[#allocation77_spill] sm:$0xff] }
 0x2b4   : > { %15213 = vmatmul.mubr.msk.bf16.vlgmr.msra.gmra.mrb[16].mxu0 %vm783_vm2, %v19028_v8 }
 0x2b5   : > { %7374 = vmatpush1.bf16.msra.mxu0 %v852_v12  ;;  %7405 = vmatprep.mubr.bf16.mxu0 %v20914_v27  ;;  %v21182_v12 = vld [vmem:[#allocation73_spill] sm:$0xff] }
 0x2b6   : > { %15220 = vmatprep.subr.msk.bf16.mxu0 %vm787_vm1, %v21179_v14  ;;  %v864_v9 = vsel %vm787_vm1, %v21182_v12, 0  ;;  %v21183_v14 = vld [vmem:[#allocation81_spill] sm:$0xff] }
 0x2b9   : > { %15215 = vmatmul.mubr.msk.bf16.vlgmr.msra.gmra.mrb[16].mxu1 %vm783_vm2, %v19028_v8 }
 0x2ba   : > { %7415 = vmatpush1.bf16.msra.mxu1 %v858_v62  ;;  %7446 = vmatprep.mubr.bf16.mxu1 %v20914_v27  ;;  %v21184_v62 = vld [vmem:[#allocation76_spill] sm:$0xff] }
 0x2bb   : > { %15222 = vmatprep.subr.msk.bf16.mxu1 %vm787_vm1, %v21181_v55  ;;  %v870_v58 = vsel %vm787_vm1, %v21184_v62, 0  ;;  %v21185_v55 = vld [vmem:[#allocation83_spill] sm:$0xff] }
 0x2bc   : > { %15217 = vmatmul.mubr.msk.bf16.vlgmr.msra.gmra.mrb[20].mxu0 %vm783_vm2, %v19028_v8 }
 0x2bd   : > { %7456 = vmatpush1.bf16.msra.mxu0 %v864_v9  ;;  %7487 = vmatprep.mubr.bf16.mxu0 %v20914_v27  ;;  %v21186_v9 = vld [vmem:[#allocation79_spill] sm:$0xff] }
 0x2be   : > { %15224 = vmatprep.subr.msk.bf16.mxu0 %vm787_vm1, %v21183_v14  ;;  %v876_v12 = vsel %vm787_vm1, %v21186_v9, 0  ;;  %v21187_v14 = vld [vmem:[#allocation87_spill] sm:$0xff] }
 0x2c1   : > { %15219 = vmatmul.mubr.msk.bf16.vlgmr.msra.gmra.mrb[20].mxu1 %vm783_vm2, %v19028_v8 }
 0x2c2   : > { %7497 = vmatpush1.bf16.msra.mxu1 %v870_v58  ;;  %7528 = vmatprep.mubr.bf16.mxu1 %v20914_v27  ;;  %v21188_v58 = vld [vmem:[#allocation82_spill] sm:$0xff] }
 0x2c3   : > { %15226 = vmatprep.subr.msk.bf16.mxu1 %vm787_vm1, %v21185_v55  ;;  %v882_v62 = vsel %vm787_vm1, %v21188_v58, 0  ;;  %v21189_v55 = vld [vmem:[#allocation89_spill] sm:$0xff] }
 0x2c4   : > { %15221 = vmatmul.mubr.msk.bf16.vlgmr.msra.gmra.mrb[24].mxu0 %vm783_vm2, %v19028_v8 }
 0x2c5   : > { %7538 = vmatpush1.bf16.msra.mxu0 %v876_v12  ;;  %7569 = vmatprep.mubr.bf16.mxu0 %v20914_v27  ;;  %v21190_v12 = vld [vmem:[#allocation85_spill] sm:$0xff] }
 0x2c6   : > { %15228 = vmatprep.subr.msk.bf16.mxu0 %vm787_vm1, %v21187_v14  ;;  %v888_v9 = vsel %vm787_vm1, %v21190_v12, 0  ;;  %v21191_v14 = vld [vmem:[#allocation93_spill] sm:$0xff] }
 0x2c9   : > { %15223 = vmatmul.mubr.msk.bf16.vlgmr.msra.gmra.mrb[24].mxu1 %vm783_vm2, %v19028_v8 }
 0x2ca   : > { %7579 = vmatpush1.bf16.msra.mxu1 %v882_v62  ;;  %7610 = vmatprep.mubr.bf16.mxu1 %v20914_v27  ;;  %v21192_v62 = vld [vmem:[#allocation88_spill] sm:$0xff] }
 0x2cb   : > { %15230 = vmatprep.subr.msk.bf16.mxu1 %vm787_vm1, %v21189_v55  ;;  %v894_v58 = vsel %vm787_vm1, %v21192_v62, 0  ;;  %v21193_v55 = vld [vmem:[#allocation96_spill] sm:$0xff] }
 0x2cc   : > { %15225 = vmatmul.mubr.msk.bf16.vlgmr.msra.gmra.mrb[28].mxu0 %vm783_vm2, %v19028_v8 }
 0x2cd   : > { %7620 = vmatpush1.bf16.msra.mxu0 %v888_v9  ;;  %7651 = vmatprep.mubr.bf16.mxu0 %v20914_v27  ;;  %v21194_v9 = vld [vmem:[#allocation91_spill] sm:$0xff] }
 0x2ce   : > { %15232 = vmatprep.subr.msk.bf16.mxu0 %vm787_vm1, %v21191_v14  ;;  %v900_v12 = vsel %vm787_vm1, %v21194_v9, 0  ;;  %v21195_v14 = vld [vmem:[#allocation99_spill] sm:$0xff] }
 0x2d1   : > { %15227 = vmatmul.mubr.msk.bf16.vlgmr.msra.gmra.mrb[28].mxu1 %vm783_vm2, %v19028_v8 }
 0x2d2   : > { %7661 = vmatpush1.bf16.msra.mxu1 %v894_v58  ;;  %7692 = vmatprep.mubr.bf16.mxu1 %v20914_v27  ;;  %v21196_v58 = vld [vmem:[#allocation94_spill] sm:$0xff] }
 0x2d3   : > { %15234 = vmatprep.subr.msk.bf16.mxu1 %vm787_vm1, %v21193_v55  ;;  %v906_v62 = vsel %vm787_vm1, %v21196_v58, 0  ;;  %v21197_v55 = vld [vmem:[#allocation102_spill] sm:$0xff] }
 0x2d4   : > { %15229 = vmatmul.mubr.msk.bf16.vlgmr.msra.gmra.mrb[32].mxu0 %vm783_vm2, %v19028_v8 }
 0x2d5   : > { %7702 = vmatpush1.bf16.msra.mxu0 %v900_v12  ;;  %7733 = vmatprep.mubr.bf16.mxu0 %v20914_v27  ;;  %v21198_v12 = vld [vmem:[#allocation97_spill] sm:$0xff] }
 0x2d6   : > { %15236 = vmatprep.subr.msk.bf16.mxu0 %vm787_vm1, %v21195_v14  ;;  %v912_v9 = vsel %vm787_vm1, %v21198_v12, 0  ;;  %v21199_v14 = vld [vmem:[#allocation105_spill] sm:$0xff] }
 0x2d9   : > { %15231 = vmatmul.mubr.msk.bf16.vlgmr.msra.gmra.mrb[32].mxu1 %vm783_vm2, %v19028_v8 }
 0x2da   : > { %7743 = vmatpush1.bf16.msra.mxu1 %v906_v62  ;;  %7774 = vmatprep.mubr.bf16.mxu1 %v20914_v27  ;;  %v21200_v62 = vld [vmem:[#allocation100_spill] sm:$0xff] }
 0x2db   : > { %15238 = vmatprep.subr.msk.bf16.mxu1 %vm787_vm1, %v21197_v55  ;;  %v918_v58 = vsel %vm787_vm1, %v21200_v62, 0  ;;  %v21201_v55 = vld [vmem:[#allocation108_spill] sm:$0xff] }
 0x2dc   : > { %15233 = vmatmul.mubr.msk.bf16.vlgmr.msra.gmra.mrb[36].mxu0 %vm783_vm2, %v19028_v8 }
 0x2dd   : > { %7784 = vmatpush1.bf16.msra.mxu0 %v912_v9  ;;  %7815 = vmatprep.mubr.bf16.mxu0 %v20914_v27  ;;  %v21202_v9 = vld [vmem:[#allocation103_spill] sm:$0xff] }
 0x2de   : > { %15240 = vmatprep.subr.msk.bf16.mxu0 %vm787_vm1, %v21199_v14  ;;  %v924_v12 = vsel %vm787_vm1, %v21202_v9, 0  ;;  %v21203_v14 = vld [vmem:[#allocation111_spill] sm:$0xff] }
 0x2e1   : > { %15235 = vmatmul.mubr.msk.bf16.vlgmr.msra.gmra.mrb[36].mxu1 %vm783_vm2, %v19028_v8 }
 0x2e2   : > { %7825 = vmatpush1.bf16.msra.mxu1 %v918_v58  ;;  %7856 = vmatprep.mubr.bf16.mxu1 %v20914_v27  ;;  %v21204_v58 = vld [vmem:[#allocation106_spill] sm:$0xff] }
 0x2e3   : > { %15242 = vmatprep.subr.msk.bf16.mxu1 %vm787_vm1, %v21201_v55  ;;  %v930_v62 = vsel %vm787_vm1, %v21204_v58, 0  ;;  %v21205_v55 = vld [vmem:[#allocation114_spill] sm:$0xff] }
 0x2e4   : > { %15237 = vmatmul.mubr.msk.bf16.vlgmr.msra.gmra.mrb[40].mxu0 %vm783_vm2, %v19028_v8 }
 0x2e5   : > { %7866 = vmatpush1.bf16.msra.mxu0 %v924_v12  ;;  %7897 = vmatprep.mubr.bf16.mxu0 %v20914_v27  ;;  %v21206_v12 = vld [vmem:[#allocation109_spill] sm:$0xff] }
 0x2e6   : > { %15244 = vmatprep.subr.msk.bf16.mxu0 %vm787_vm1, %v21203_v14  ;;  %v936_v9 = vsel %vm787_vm1, %v21206_v12, 0  ;;  %v21207_v14 = vld [vmem:[#allocation117_spill] sm:$0xff] }
 0x2e9   : > { %15239 = vmatmul.mubr.msk.bf16.vlgmr.msra.gmra.mrb[40].mxu1 %vm783_vm2, %v19028_v8 }
 0x2ea   : > { %7907 = vmatpush1.bf16.msra.mxu1 %v930_v62  ;;  %7938 = vmatprep.mubr.bf16.mxu1 %v20914_v27  ;;  %v21208_v62 = vld [vmem:[#allocation112_spill] sm:$0xff] }
 0x2eb   : > { %15246 = vmatprep.subr.msk.bf16.mxu1 %vm787_vm1, %v21205_v55  ;;  %v942_v58 = vsel %vm787_vm1, %v21208_v62, 0  ;;  %v21209_v55 = vld [vmem:[#allocation120_spill] sm:$0xff] }
 0x2ec   : > { %15241 = vmatmul.mubr.msk.bf16.vlgmr.msra.gmra.mrb[44].mxu0 %vm783_vm2, %v19028_v8 }
 0x2ed   : > { %7948 = vmatpush1.bf16.msra.mxu0 %v936_v9  ;;  %7979 = vmatprep.mubr.bf16.mxu0 %v20914_v27  ;;  %v21210_v9 = vld [vmem:[#allocation115_spill] sm:$0xff] }
 0x2ee   : > { %15248 = vmatprep.subr.msk.bf16.mxu0 %vm787_vm1, %v21207_v14  ;;  %v948_v12 = vsel %vm787_vm1, %v21210_v9, 0  ;;  %v21211_v14 = vld [vmem:[#allocation123_spill] sm:$0xff] }
 0x2f1   : > { %15243 = vmatmul.mubr.msk.bf16.vlgmr.msra.gmra.mrb[44].mxu1 %vm783_vm2, %v19028_v8 }
 0x2f2   : > { %7989 = vmatpush1.bf16.msra.mxu1 %v942_v58  ;;  %8020 = vmatprep.mubr.bf16.mxu1 %v20914_v27  ;;  %v21212_v58 = vld [vmem:[#allocation118_spill] sm:$0xff] }
 0x2f3   : > { %15250 = vmatprep.subr.msk.bf16.mxu1 %vm787_vm1, %v21209_v55  ;;  %v954_v62 = vsel %vm787_vm1, %v21212_v58, 0  ;;  %v21213_v55 = vld [vmem:[#allocation126_spill] sm:$0xff] }
 0x2f4   : > { %15245 = vmatmul.mubr.msk.bf16.vlgmr.msra.gmra.mrb[48].mxu0 %vm783_vm2, %v19028_v8  ;;  %v21217_v58 = vld [vmem:[#allocation130_spill] sm:$0xff] }
 0x2f5   : > { %8030 = vmatpush1.bf16.msra.mxu0 %v948_v12  ;;  %8061 = vmatprep.mubr.bf16.mxu0 %v20914_v27  ;;  %v21214_v12 = vld [vmem:[#allocation121_spill] sm:$0xff]  ;;  %v19231_v32 = vsel %vm718_vm0, %v21217_v58, %v19222_v57  ;;  %v21220_v58 = vld [vmem:[#allocation131_spill] sm:$0xff] }
 0x2f6   : > { %15252 = vmatprep.subr.msk.bf16.mxu0 %vm787_vm1, %v21211_v14  ;;  %v960_v9 = vsel %vm787_vm1, %v21214_v12, 0  ;;  %v21215_v14 = vld [vmem:[#allocation129_spill] sm:$0xff]  ;;  %21218 = vst [vmem:[#allocation3_spill] sm:$0xff] %v19231_v32 }
 0x2f9   : > { %15247 = vmatmul.mubr.msk.bf16.vlgmr.msra.gmra.mrb[48].mxu1 %vm783_vm2, %v19028_v8 }
 0x2fa   : > { %8071 = vmatpush1.bf16.msra.mxu1 %v954_v62  ;;  %8102 = vmatprep.mubr.bf16.mxu1 %v20914_v27  ;;  %v21216_v62 = vld [vmem:[#allocation124_spill] sm:$0xff] }
 0x2fb   : > { %15254 = vmatprep.subr.msk.bf16.mxu1 %vm787_vm1, %v21213_v55  ;;  %v966_v55 = vsel %vm787_vm1, %v21216_v62, 0 }
 0x2fc   : > { %15249 = vmatmul.mubr.msk.bf16.vlgmr.msra.gmra.mrb[52].mxu0 %vm783_vm2, %v19028_v8 }
 0x2fd   : > { %8112 = vmatpush1.bf16.msra.mxu0 %v960_v9  ;;  %8143 = vmatprep.mubr.bf16.mxu0 %v20914_v27  ;;  %v21219_v9 = vld [vmem:[#allocation127_spill] sm:$0xff] }
 0x2fe   : > { %15256 = vmatprep.subr.msk.bf16.mxu0 %vm787_vm1, %v21215_v14  ;;  %v972_v14 = vsel %vm787_vm1, %v21219_v9, 0 }
 0x301   : > { %15251 = vmatmul.mubr.msk.bf16.vlgmr.msra.gmra.mrb[52].mxu1 %vm783_vm2, %v19028_v8 }
 0x302   : > { %8153 = vmatpush1.bf16.msra.mxu1 %v966_v55  ;;  %8184 = vmatprep.mubr.bf16.mxu1 %v20914_v27  ;;  %v978_v55 = vsel %vm787_vm1, %v21220_v58, 0 }
 0x303   : > { %15258 = vmatprep.subr.msk.bf16.mxu1 %vm787_vm1, %v19231_v32  ;;  %v21221_v32 = vld [vmem:[#allocation162_spill] sm:$0xff] }
 0x304   : > { %15253 = vmatmul.mubr.msk.bf16.vlgmr.msra.gmra.mrb[56].mxu0 %vm783_vm2, %v19028_v8 }
 0x305   : > { %8194 = vmatpush1.bf16.msra.mxu0 %v972_v14  ;;  %8225 = vmatprep.mubr.bf16.mxu0 %v20914_v27  ;;  %v4003_v14 = vsel %vm787_vm1, %v21221_v32, 0  ;;  %v21223_v32 = vld [vmem:[#allocation171_spill] sm:$0xff] }
 0x306   : > { %15261 = vmatprep.subr.msk.bf16.mxu0 %vm787_vm1, %v18174_v45  ;;  %v21222_v45 = vld [vmem:[#allocation164_spill] sm:$0xff] }
 0x309   : > { %15255 = vmatmul.mubr.msk.bf16.vlgmr.msra.gmra.mrb[56].mxu1 %vm783_vm2, %v19028_v8 }
 0x30a   : > { %8235 = vmatpush1.bf16.msra.mxu1 %v978_v55  ;;  %8266 = vmatprep.mubr.bf16.mxu1 %v20914_v27  ;;  %v4009_v55 = vsel %vm787_vm1, %v21222_v45, 0 }
 0x30b   : > { %15263 = vmatprep.subr.msk.bf16.mxu1 %vm787_vm1, %v18190_v5  ;;  %v19264_v5 = vld [vmem:[%s20537_s0 + $0x14] sm:$0xf] }
 0x30c   : > { %15257 = vmatmul.mubr.msk.bf16.vlgmr.msra.gmra.mrb[60].mxu0 %vm783_vm2, %v19028_v8 }
 0x30d   : > { %8351 = vmatpush1.bf16.msra.mxu0 %v4003_v14  ;;  %8382 = vmatprep.mubr.bf16.mxu0 %v20914_v27  ;;  %v21225_v14 = vld [vmem:[#allocation167_spill] sm:$0xff] }
 0x30e   : > { %15265 = vmatprep.subr.msk.bf16.mxu0 %vm787_vm1, %v18224_v63  ;;  %v21224_v63 = vld [vmem:[#allocation165_spill] sm:$0xff] }
 0x311   : > { %15259 = vmatmul.mubr.msk.bf16.vlgmr.msra.gmra.mrb[60].mxu1 %vm783_vm2, %v19028_v8  ;;  %v4015_v8 = vsel %vm787_vm1, %v21224_v63, 0 }
 0x312   : > { %8392 = vmatpush1.bf16.msra.mxu1 %v4009_v55  ;;  %8423 = vmatprep.mubr.bf16.mxu1 %v20914_v27  ;;  %v4021_v55 = vsel %vm787_vm1, %v21225_v14, 0 }
 0x313   : > { %15267 = vmatprep.subr.msk.bf16.mxu1 %vm787_vm1, %v21223_v32  ;;  %v21226_v32 = vld [vmem:[#allocation169_spill] sm:$0xff] }
 0x314   : > { %15262 = vmatmul.mubr.msk.bf16.vlgmr.msra.gmra.mrb[0].mxu0 %vm783_vm2, %v19264_v5 }
 0x315   : > { %8433 = vmatpush1.bf16.msra.mxu0 %v4015_v8  ;;  %8464 = vmatprep.mubr.bf16.mxu0 %v20914_v27  ;;  %v4027_v8 = vsel %vm787_vm1, %v21226_v32, 0 }
 0x316   : > { %15269 = vmatprep.subr.msk.bf16.mxu0 %vm787_vm1, %v18268_v4  ;;  %v21227_v4 = vld [vmem:[#allocation179_spill] sm:$0xff] }
 0x319   : > { %15264 = vmatmul.mubr.msk.bf16.vlgmr.msra.gmra.mrb[0].mxu1 %vm783_vm2, %v19264_v5 }
 0x31a   : > { %8474 = vmatpush1.bf16.msra.mxu1 %v4021_v55  ;;  %8505 = vmatprep.mubr.bf16.mxu1 %v20914_v27  ;;  %v21228_v55 = vld [vmem:[#allocation172_spill] sm:$0xff] }
 0x31b   : > { %15271 = vmatprep.subr.msk.bf16.mxu1 %vm787_vm1, %v18287_v7  ;;  %v4033_v14 = vsel %vm787_vm1, %v21228_v55, 0  ;;  %v21229_v7 = vld [vmem:[#allocation174_spill] sm:$0xff] }
 0x31c   : > { %15266 = vmatmul.mubr.msk.bf16.vlgmr.msra.gmra.mrb[4].mxu0 %vm783_vm2, %v19264_v5 }
 0x31d   : > { %8515 = vmatpush1.bf16.msra.mxu0 %v4027_v8  ;;  %8546 = vmatprep.mubr.bf16.mxu0 %v20914_v27  ;;  %v4039_v8 = vsel %vm787_vm1, %v21229_v7, 0 }
 0x31e   : > { %15273 = vmatprep.subr.msk.bf16.mxu0 %vm787_vm1, %v21227_v4 }
 0x321   : > { %15268 = vmatmul.mubr.msk.bf16.vlgmr.msra.gmra.mrb[4].mxu1 %vm783_vm2, %v19264_v5 }
 0x322   : > { %8556 = vmatpush1.bf16.msra.mxu1 %v4033_v14  ;;  %8587 = vmatprep.mubr.bf16.mxu1 %v20914_v27  ;;  %v21230_v14 = vld [vmem:[#allocation176_spill] sm:$0xff] }
 0x323   : > { %15275 = vmatprep.subr.msk.bf16.mxu1 %vm787_vm1, %v18331_v61  ;;  %v4045_v4 = vsel %vm787_vm1, %v21230_v14, 0  ;;  %v21231_v61 = vld [vmem:[#allocation185_spill] sm:$0xff] }
 0x324   : > { %15270 = vmatmul.mubr.msk.bf16.vlgmr.msra.gmra.mrb[8].mxu0 %vm783_vm2, %v19264_v5 }
 0x325   : > { %8597 = vmatpush1.bf16.msra.mxu0 %v4039_v8  ;;  %8628 = vmatprep.mubr.bf16.mxu0 %v20914_v27  ;;  %v21232_v8 = vld [vmem:[#allocation178_spill] sm:$0xff] }
 0x326   : > { %15277 = vmatprep.subr.msk.bf16.mxu0 %vm787_vm1, %v18360_v0  ;;  %v4051_v7 = vsel %vm787_vm1, %v21232_v8, 0  ;;  %v21233_v0 = vld [vmem:[#allocation181_spill] sm:$0xff] }
 0x329   : > { %15272 = vmatmul.mubr.msk.bf16.vlgmr.msra.gmra.mrb[8].mxu1 %vm783_vm2, %v19264_v5 }
 0x32a   : > { %8638 = vmatpush1.bf16.msra.mxu1 %v4045_v4  ;;  %8669 = vmatprep.mubr.bf16.mxu1 %v20914_v27  ;;  %v4057_v4 = vsel %vm787_vm1, %v21233_v0, 0 }
 0x32b   : > { %15279 = vmatprep.subr.msk.bf16.mxu1 %vm787_vm1, %v21231_v61 }
 0x32c   : > { %15274 = vmatmul.mubr.msk.bf16.vlgmr.msra.gmra.mrb[12].mxu0 %vm783_vm2, %v19264_v5 }
 0x32d   : > { %8679 = vmatpush1.bf16.msra.mxu0 %v4051_v7  ;;  %8710 = vmatprep.mubr.bf16.mxu0 %v20914_v27  ;;  %v21234_v7 = vld [vmem:[#allocation183_spill] sm:$0xff] }
 0x32e   : > { %15281 = vmatprep.subr.msk.bf16.mxu0 %vm787_vm1, %v18404_v18  ;;  %v4063_v61 = vsel %vm787_vm1, %v21234_v7, 0  ;;  %v21235_v18 = vld [vmem:[#allocation193_spill] sm:$0xff] }
 0x331   : > { %15276 = vmatmul.mubr.msk.bf16.vlgmr.msra.gmra.mrb[12].mxu1 %vm783_vm2, %v19264_v5 }
 0x332   : > { %8720 = vmatpush1.bf16.msra.mxu1 %v4057_v4  ;;  %8751 = vmatprep.mubr.bf16.mxu1 %v20914_v27  ;;  %v21236_v4 = vld [vmem:[#allocation186_spill] sm:$0xff] }
 0x333   : > { %15283 = vmatprep.subr.msk.bf16.mxu1 %vm787_vm1, %v18421_v6  ;;  %v4069_v0 = vsel %vm787_vm1, %v21236_v4, 0  ;;  %v21237_v6 = vld [vmem:[#allocation188_spill] sm:$0xff] }
 0x334   : > { %15278 = vmatmul.mubr.msk.bf16.vlgmr.msra.gmra.mrb[16].mxu0 %vm783_vm2, %v19264_v5 }
 0x335   : > { %8761 = vmatpush1.bf16.msra.mxu0 %v4063_v61  ;;  %8792 = vmatprep.mubr.bf16.mxu0 %v20914_v27  ;;  %v4075_v61 = vsel %vm787_vm1, %v21237_v6, 0 }
 0x336   : > { %15285 = vmatprep.subr.msk.bf16.mxu0 %vm787_vm1, %v21235_v18 }
 0x339   : > { %15280 = vmatmul.mubr.msk.bf16.vlgmr.msra.gmra.mrb[16].mxu1 %vm783_vm2, %v19264_v5 }
 0x33a   : > { %8802 = vmatpush1.bf16.msra.mxu1 %v4069_v0  ;;  %8833 = vmatprep.mubr.bf16.mxu1 %v20914_v27  ;;  %v21238_v0 = vld [vmem:[#allocation190_spill] sm:$0xff] }
 0x33b   : > { %15287 = vmatprep.subr.msk.bf16.mxu1 %vm787_vm1, %v18463_v3  ;;  %v4081_v18 = vsel %vm787_vm1, %v21238_v0, 0  ;;  %v21239_v3 = vld [vmem:[#allocation199_spill] sm:$0xff] }
 0x33c   : > { %15282 = vmatmul.mubr.msk.bf16.vlgmr.msra.gmra.mrb[20].mxu0 %vm783_vm2, %v19264_v5 }
 0x33d   : > { %8843 = vmatpush1.bf16.msra.mxu0 %v4075_v61  ;;  %8874 = vmatprep.mubr.bf16.mxu0 %v20914_v27  ;;  %v21240_v61 = vld [vmem:[#allocation192_spill] sm:$0xff] }
 0x33e   : > { %15289 = vmatprep.subr.msk.bf16.mxu0 %vm787_vm1, %v18490_v51  ;;  %v4087_v6 = vsel %vm787_vm1, %v21240_v61, 0  ;;  %v21241_v51 = vld [vmem:[#allocation195_spill] sm:$0xff] }
 0x341   : > { %15284 = vmatmul.mubr.msk.bf16.vlgmr.msra.gmra.mrb[20].mxu1 %vm783_vm2, %v19264_v5 }
 0x342   : > { %8884 = vmatpush1.bf16.msra.mxu1 %v4081_v18  ;;  %8915 = vmatprep.mubr.bf16.mxu1 %v20914_v27  ;;  %v4093_v18 = vsel %vm787_vm1, %v21241_v51, 0 }
 0x343   : > { %15291 = vmatprep.subr.msk.bf16.mxu1 %vm787_vm1, %v21239_v3  ;;  %v21242_v3 = vld [vmem:[#allocation204_spill] sm:$0xff] }
 0x344   : > { %15286 = vmatmul.mubr.msk.bf16.vlgmr.msra.gmra.mrb[24].mxu0 %vm783_vm2, %v19264_v5 }
 0x345   : > { %8925 = vmatpush1.bf16.msra.mxu0 %v4087_v6  ;;  %8956 = vmatprep.mubr.bf16.mxu0 %v20914_v27  ;;  %v21243_v6 = vld [vmem:[#allocation197_spill] sm:$0xff] }
 0x346   : > { %15293 = vmatprep.subr.msk.bf16.mxu0 %vm787_vm1, %v18530_v49  ;;  %v4099_v61 = vsel %vm787_vm1, %v21243_v6, 0  ;;  %v21244_v49 = vld [vmem:[#allocation200_spill] sm:$0xff] }
 0x349   : > { %15288 = vmatmul.mubr.msk.bf16.vlgmr.msra.gmra.mrb[24].mxu1 %vm783_vm2, %v19264_v5 }
 0x34a   : > { %8966 = vmatpush1.bf16.msra.mxu1 %v4093_v18  ;;  %8997 = vmatprep.mubr.bf16.mxu1 %v20914_v27  ;;  %v4105_v18 = vsel %vm787_vm1, %v21244_v49, 0 }
 0x34b   : > { %15295 = vmatprep.subr.msk.bf16.mxu1 %vm787_vm1, %v21242_v3  ;;  %v21245_v3 = vld [vmem:[#allocation209_spill] sm:$0xff] }
 0x34c   : > { %15290 = vmatmul.mubr.msk.bf16.vlgmr.msra.gmra.mrb[28].mxu0 %vm783_vm2, %v19264_v5 }
 0x34d   : > { %9007 = vmatpush1.bf16.msra.mxu0 %v4099_v61  ;;  %9038 = vmatprep.mubr.bf16.mxu0 %v20914_v27  ;;  %v21246_v61 = vld [vmem:[#allocation202_spill] sm:$0xff] }
 0x34e   : > { %15297 = vmatprep.subr.msk.bf16.mxu0 %vm787_vm1, %v18567_v36  ;;  %v4111_v6 = vsel %vm787_vm1, %v21246_v61, 0  ;;  %v21247_v36 = vld [vmem:[#allocation205_spill] sm:$0xff] }
 0x351   : > { %15292 = vmatmul.mubr.msk.bf16.vlgmr.msra.gmra.mrb[28].mxu1 %vm783_vm2, %v19264_v5 }
 0x352   : > { %9048 = vmatpush1.bf16.msra.mxu1 %v4105_v18  ;;  %9079 = vmatprep.mubr.bf16.mxu1 %v20914_v27  ;;  %v4117_v18 = vsel %vm787_vm1, %v21247_v36, 0 }
 0x353   : > { %15299 = vmatprep.subr.msk.bf16.mxu1 %vm787_vm1, %v21245_v3  ;;  %v21248_v3 = vld [vmem:[#allocation214_spill] sm:$0xff] }
 0x354   : > { %15294 = vmatmul.mubr.msk.bf16.vlgmr.msra.gmra.mrb[32].mxu0 %vm783_vm2, %v19264_v5 }
 0x355   : > { %9089 = vmatpush1.bf16.msra.mxu0 %v4111_v6  ;;  %9120 = vmatprep.mubr.bf16.mxu0 %v20914_v27  ;;  %v21249_v6 = vld [vmem:[#allocation207_spill] sm:$0xff] }
 0x356   : > { %15301 = vmatprep.subr.msk.bf16.mxu0 %vm787_vm1, %v18602_v30  ;;  %v4123_v61 = vsel %vm787_vm1, %v21249_v6, 0  ;;  %v21250_v30 = vld [vmem:[#allocation210_spill] sm:$0xff] }
 0x359   : > { %15296 = vmatmul.mubr.msk.bf16.vlgmr.msra.gmra.mrb[32].mxu1 %vm783_vm2, %v19264_v5 }
 0x35a   : > { %9130 = vmatpush1.bf16.msra.mxu1 %v4117_v18  ;;  %9161 = vmatprep.mubr.bf16.mxu1 %v20914_v27  ;;  %v4129_v18 = vsel %vm787_vm1, %v21250_v30, 0 }
 0x35b   : > { %15303 = vmatprep.subr.msk.bf16.mxu1 %vm787_vm1, %v21248_v3 }
 0x35c   : > { %15298 = vmatmul.mubr.msk.bf16.vlgmr.msra.gmra.mrb[36].mxu0 %vm783_vm2, %v19264_v5 }
 0x35d   : > { %9171 = vmatpush1.bf16.msra.mxu0 %v4123_v61  ;;  %9202 = vmatprep.mubr.bf16.mxu0 %v20914_v27  ;;  %v21251_v61 = vld [vmem:[#allocation212_spill] sm:$0xff] }
 0x35e   : > { %15305 = vmatprep.subr.msk.bf16.mxu0 %vm787_vm1, %v18635_v2  ;;  %v4135_v3 = vsel %vm787_vm1, %v21251_v61, 0  ;;  %v21252_v2 = vld [vmem:[#allocation215_spill] sm:$0xff] }
 0x361   : > { %15300 = vmatmul.mubr.msk.bf16.vlgmr.msra.gmra.mrb[36].mxu1 %vm783_vm2, %v19264_v5 }
 0x362   : > { %9212 = vmatpush1.bf16.msra.mxu1 %v4129_v18  ;;  %9243 = vmatprep.mubr.bf16.mxu1 %v20914_v27  ;;  %v4141_v18 = vsel %vm787_vm1, %v21252_v2, 0 }
 0x363   : > { %15307 = vmatprep.subr.msk.bf16.mxu1 %vm787_vm1, %v18648_v1  ;;  %v21253_v1 = vld [vmem:[#allocation223_spill] sm:$0xff] }
 0x364   : > { %15302 = vmatmul.mubr.msk.bf16.vlgmr.msra.gmra.mrb[40].mxu0 %vm783_vm2, %v19264_v5 }
 0x365   : > { %9253 = vmatpush1.bf16.msra.mxu0 %v4135_v3  ;;  %9284 = vmatprep.mubr.bf16.mxu0 %v20914_v27  ;;  %v21254_v3 = vld [vmem:[#allocation217_spill] sm:$0xff] }
 0x366   : > { %15309 = vmatprep.subr.msk.bf16.mxu0 %vm787_vm1, %v18667_v52  ;;  %v4147_v61 = vsel %vm787_vm1, %v21254_v3, 0  ;;  %v21255_v52 = vld [vmem:[#allocation219_spill] sm:$0xff] }
 0x369   : > { %15304 = vmatmul.mubr.msk.bf16.vlgmr.msra.gmra.mrb[40].mxu1 %vm783_vm2, %v19264_v5 }
 0x36a   : > { %9294 = vmatpush1.bf16.msra.mxu1 %v4141_v18  ;;  %9325 = vmatprep.mubr.bf16.mxu1 %v20914_v27  ;;  %v4153_v18 = vsel %vm787_vm1, %v21255_v52, 0 }
 0x36b   : > { %15311 = vmatprep.subr.msk.bf16.mxu1 %vm787_vm1, %v21253_v1 }
 0x36c   : > { %15306 = vmatmul.mubr.msk.bf16.vlgmr.msra.gmra.mrb[44].mxu0 %vm783_vm2, %v19264_v5 }
 0x36d   : > { %9335 = vmatpush1.bf16.msra.mxu0 %v4147_v61  ;;  %9366 = vmatprep.mubr.bf16.mxu0 %v20914_v27  ;;  %v21256_v61 = vld [vmem:[#allocation221_spill] sm:$0xff] }
 0x36e   : > { %15313 = vmatprep.subr.msk.bf16.mxu0 %vm787_vm1, %v18699_v33  ;;  %v4159_v1 = vsel %vm787_vm1, %v21256_v61, 0  ;;  %v21257_v33 = vld [vmem:[#allocation224_spill] sm:$0xff] }
 0x371   : > { %15308 = vmatmul.mubr.msk.bf16.vlgmr.msra.gmra.mrb[44].mxu1 %vm783_vm2, %v19264_v5 }
 0x372   : > { %9376 = vmatpush1.bf16.msra.mxu1 %v4153_v18  ;;  %9407 = vmatprep.mubr.bf16.mxu1 %v20914_v27  ;;  %v4165_v18 = vsel %vm787_vm1, %v21257_v33, 0 }
 0x373   : > { %15315 = vmatprep.subr.msk.bf16.mxu1 %vm787_vm1, %v18712_v56  ;;  %v21258_v56 = vld [vmem:[#allocation226_spill] sm:$0xff] }
 0x374   : > { %15310 = vmatmul.mubr.msk.bf16.vlgmr.msra.gmra.mrb[48].mxu0 %vm783_vm2, %v19264_v5 }
 0x375   : > { %9417 = vmatpush1.bf16.msra.mxu0 %v4159_v1  ;;  %9448 = vmatprep.mubr.bf16.mxu0 %v20914_v27  ;;  %v4171_v1 = vsel %vm787_vm1, %v21258_v56, 0 }
 0x376   : > { %15317 = vmatprep.subr.msk.bf16.mxu0 %vm787_vm1, %v18731_v39  ;;  %v19458_v39 = vpop.permute.xlu1 %8341 }
 0x377   : > { %v19467_v33 = vsel %vm3931_vm3, %v18737_v15, %v19458_v39  ;;  %v4189_v15 = vsel %vm787_vm1, %v18750_v24, 0 }
 0x379   : > { %15312 = vmatmul.mubr.msk.bf16.vlgmr.msra.gmra.mrb[48].mxu1 %vm783_vm2, %v19264_v5 }
 0x37a   : > { %9458 = vmatpush1.bf16.msra.mxu1 %v4165_v18  ;;  %9489 = vmatprep.mubr.bf16.mxu1 %v20914_v27  ;;  %v21259_v18 = vld [vmem:[#allocation228_spill] sm:$0xff] }
 0x37b   : > { %15319 = vmatprep.subr.msk.bf16.mxu1 %vm787_vm1, %v18746_v60  ;;  %v4177_v60 = vsel %vm787_vm1, %v21259_v18, 0 }
 0x37c   : > { %15314 = vmatmul.mubr.msk.bf16.vlgmr.msra.gmra.mrb[52].mxu0 %vm783_vm2, %v19264_v5 }
 0x37d   : > { %9499 = vmatpush1.bf16.msra.mxu0 %v4171_v1  ;;  %9530 = vmatprep.mubr.bf16.mxu0 %v20914_v27  ;;  %v21260_v1 = vld [vmem:[#allocation133_spill] sm:$0xff] }
 0x37e   : > { %15321 = vmatprep.subr.msk.bf16.mxu0 %vm787_vm1, %v18763_v21  ;;  %v4183_v21 = vsel %vm787_vm1, %v18728_v10, 0 }
 0x381   : > { %15316 = vmatmul.mubr.msk.bf16.vlgmr.msra.gmra.mrb[52].mxu1 %vm783_vm2, %v19264_v5 }
 0x382   : > { %9540 = vmatpush1.bf16.msra.mxu1 %v4177_v60  ;;  %9571 = vmatprep.mubr.bf16.mxu1 %v20914_v27  ;;  %v21261_v60 = vld [vmem:[#allocation31_spill] sm:$0xff] }
 0x383   : > { %15323 = vmatprep.subr.msk.bf16.mxu1 %vm787_vm1, %v19467_v33 }
 0x384   : > { %15318 = vmatmul.mubr.msk.bf16.vlgmr.msra.gmra.mrb[56].mxu0 %vm783_vm2, %v19264_v5 }
 0x385   : > { %9581 = vmatpush1.bf16.msra.mxu0 %v4183_v21  ;;  %9612 = vmatprep.mubr.bf16.mxu0 %v20914_v27  ;;  %v21290_v21 = vld [vmem:[#allocation39_spill] sm:$0xff] }
 0x386   : > { %15326 = vmatprep.subr.msk.bf16.mxu0 %vm787_vm1, %v16773_v13  ;;  %v19497_v13 = vld [vmem:[%s20537_s0 + $0x18] sm:$0xf] }
 0x389   : > { %15320 = vmatmul.mubr.msk.bf16.vlgmr.msra.gmra.mrb[56].mxu1 %vm783_vm2, %v19264_v5 }
 0x38a   : > { %9622 = vmatpush1.bf16.msra.mxu1 %v4189_v15  ;;  %9653 = vmatprep.mubr.bf16.mxu1 %v20914_v27  ;;  %v21292_v15 = vld [vmem:[#allocation135_spill] sm:$0xff] }
 0x38b   : > { %15328 = vmatprep.subr.msk.bf16.mxu1 %vm787_vm1, %v16784_v16  ;;  %v21262_v16 = vld [vmem:[#allocation134_spill] sm:$0xff] }
 0x38c   : > { %15322 = vmatmul.mubr.msk.bf16.vlgmr.msra.gmra.mrb[60].mxu0 %vm783_vm2, %v19264_v5 }
 0x38d   : > { %9735 = vmatpush1.bf16.msra.mxu0 %v21260_v1  ;;  %9766 = vmatprep.mubr.bf16.mxu0 %v20914_v27  ;;  %v21293_v1 = vld [vmem:[#allocation163_spill] sm:$0xff] }
 0x38e   : > { %15330 = vmatprep.subr.msk.bf16.mxu0 %vm787_vm1, %v16796_v19  ;;  %v21263_v19 = vld [vmem:[#allocation136_spill] sm:$0xff] }
 0x391   : > { %15324 = vmatmul.mubr.msk.bf16.vlgmr.msra.gmra.mrb[60].mxu1 %vm783_vm2, %v19264_v5  ;;  %v21288_v5 = vld [vmem:[#allocation34_spill] sm:$0xff] }
 0x392   : > { %9776 = vmatpush1.bf16.msra.mxu1 %v21261_v60  ;;  %9807 = vmatprep.mubr.bf16.mxu1 %v20914_v27  ;;  %v21294_v60 = vld [vmem:[#allocation40_spill] sm:$0xff] }
 0x393   : > { %15332 = vmatprep.subr.msk.bf16.mxu1 %vm787_vm1, %v16807_v22  ;;  %v21264_v22 = vld [vmem:[#allocation137_spill] sm:$0xff] }
 0x394   : > { %15327 = vmatmul.mubr.msk.bf16.vlgmr.msra.gmra.mrb[0].mxu0 %vm783_vm2, %v19497_v13 }
 0x395   : > { %9817 = vmatpush1.bf16.msra.mxu0 %v21262_v16  ;;  %9848 = vmatprep.mubr.bf16.mxu0 %v20914_v27  ;;  %v21295_v16 = vld [vmem:[#allocation37_spill] sm:$0xff] }
 0x396   : > { %15334 = vmatprep.subr.msk.bf16.mxu0 %vm787_vm1, %v16819_v25  ;;  %v21265_v25 = vld [vmem:[#allocation138_spill] sm:$0xff] }
 0x399   : > { %15329 = vmatmul.mubr.msk.bf16.vlgmr.msra.gmra.mrb[0].mxu1 %vm783_vm2, %v19497_v13 }
 0x39a   : > { %9858 = vmatpush1.bf16.msra.mxu1 %v21263_v19  ;;  %9889 = vmatprep.mubr.bf16.mxu1 %v20914_v27  ;;  %v5573_v19 = vsel %vm787_vm1, %v21295_v16, 0  ;;  %v21327_v16 = vld [vmem:[#allocation86_spill] sm:$0xff] }
 0x39b   : > { %15336 = vmatprep.subr.msk.bf16.mxu1 %vm787_vm1, %v16830_v28  ;;  %v21266_v28 = vld [vmem:[#allocation139_spill] sm:$0xff] }
 0x39c   : > { %15331 = vmatmul.mubr.msk.bf16.vlgmr.msra.gmra.mrb[4].mxu0 %vm783_vm2, %v19497_v13 }
 0x39d   : > { %9899 = vmatpush1.bf16.msra.mxu0 %v21264_v22  ;;  %9930 = vmatprep.mubr.bf16.mxu0 %v20914_v27  ;;  %v21296_v22 = vld [vmem:[#allocation43_spill] sm:$0xff] }
 0x39e   : > { %15338 = vmatprep.subr.msk.bf16.mxu0 %vm787_vm1, %v16842_v31  ;;  %v21267_v31 = vld [vmem:[#allocation140_spill] sm:$0xff] }
 0x3a1   : > { %15333 = vmatmul.mubr.msk.bf16.vlgmr.msra.gmra.mrb[4].mxu1 %vm783_vm2, %v19497_v13 }
 0x3a2   : > { %9940 = vmatpush1.bf16.msra.mxu1 %v21265_v25  ;;  %9971 = vmatprep.mubr.bf16.mxu1 %v20914_v27  ;;  %v21297_v25 = vld [vmem:[#allocation42_spill] sm:$0xff] }
 0x3a3   : > { %15340 = vmatprep.subr.msk.bf16.mxu1 %vm787_vm1, %v16853_v34  ;;  %v21268_v34 = vld [vmem:[#allocation141_spill] sm:$0xff] }
 0x3a4   : > { %15335 = vmatmul.mubr.msk.bf16.vlgmr.msra.gmra.mrb[8].mxu0 %vm783_vm2, %v19497_v13 }
 0x3a5   : > { %9981 = vmatpush1.bf16.msra.mxu0 %v21266_v28  ;;  %10012 = vmatprep.mubr.bf16.mxu0 %v20914_v27  ;;  %v21298_v28 = vld [vmem:[#allocation46_spill] sm:$0xff] }
 0x3a6   : > { %15342 = vmatprep.subr.msk.bf16.mxu0 %vm787_vm1, %v16865_v37  ;;  %v21269_v37 = vld [vmem:[#allocation142_spill] sm:$0xff] }
 0x3a9   : > { %15337 = vmatmul.mubr.msk.bf16.vlgmr.msra.gmra.mrb[8].mxu1 %vm783_vm2, %v19497_v13 }
 0x3aa   : > { %10022 = vmatpush1.bf16.msra.mxu1 %v21267_v31  ;;  %10053 = vmatprep.mubr.bf16.mxu1 %v20914_v27  ;;  %v19695_v31 = vld [vmem:[%s20537_s0 + $0x1c] sm:$0xf] }
 0x3ab   : > { %15344 = vmatprep.subr.msk.bf16.mxu1 %vm787_vm1, %v16876_v40  ;;  %v21270_v40 = vld [vmem:[#allocation143_spill] sm:$0xff] }
 0x3ac   : > { %15339 = vmatmul.mubr.msk.bf16.vlgmr.msra.gmra.mrb[12].mxu0 %vm783_vm2, %v19497_v13 }
 0x3ad   : > { %10063 = vmatpush1.bf16.msra.mxu0 %v21268_v34  ;;  %10094 = vmatprep.mubr.bf16.mxu0 %v20914_v27  ;;  %v21299_v34 = vld [vmem:[#allocation44_spill] sm:$0xff] }
 0x3ae   : > { %15346 = vmatprep.subr.msk.bf16.mxu0 %vm787_vm1, %v16888_v43  ;;  %v21271_v43 = vld [vmem:[#allocation144_spill] sm:$0xff] }
 0x3b1   : > { %15341 = vmatmul.mubr.msk.bf16.vlgmr.msra.gmra.mrb[12].mxu1 %vm783_vm2, %v19497_v13 }
 0x3b2   : > { %10104 = vmatpush1.bf16.msra.mxu1 %v21269_v37  ;;  %10135 = vmatprep.mubr.bf16.mxu1 %v20914_v27  ;;  %v21300_v37 = vld [vmem:[#allocation49_spill] sm:$0xff] }
 0x3b3   : > { %15348 = vmatprep.subr.msk.bf16.mxu1 %vm787_vm1, %v16899_v46  ;;  %v21272_v46 = vld [vmem:[#allocation145_spill] sm:$0xff] }
 0x3b4   : > { %15343 = vmatmul.mubr.msk.bf16.vlgmr.msra.gmra.mrb[16].mxu0 %vm783_vm2, %v19497_v13 }
 0x3b5   : > { %10145 = vmatpush1.bf16.msra.mxu0 %v21270_v40  ;;  %10176 = vmatprep.mubr.bf16.mxu0 %v20914_v27  ;;  %v21301_v40 = vld [vmem:[#allocation48_spill] sm:$0xff] }
 0x3b6   : > { %15350 = vmatprep.subr.msk.bf16.mxu0 %vm787_vm1, %v21124_v47  ;;  %v21273_v47 = vld [vmem:[#allocation146_spill] sm:$0xff] }
 0x3b9   : > { %15345 = vmatmul.mubr.msk.bf16.vlgmr.msra.gmra.mrb[16].mxu1 %vm783_vm2, %v19497_v13 }
 0x3ba   : > { %10186 = vmatpush1.bf16.msra.mxu1 %v21271_v43  ;;  %10217 = vmatprep.mubr.bf16.mxu1 %v20914_v27  ;;  %v21303_v43 = vld [vmem:[#allocation50_spill] sm:$0xff] }
 0x3bb   : > { %15352 = vmatprep.subr.msk.bf16.mxu1 %vm787_vm1, %v21125_v17  ;;  %v21274_v17 = vld [vmem:[#allocation147_spill] sm:$0xff] }
 0x3bc   : > { %15347 = vmatmul.mubr.msk.bf16.vlgmr.msra.gmra.mrb[20].mxu0 %vm783_vm2, %v19497_v13 }
 0x3bd   : > { %10227 = vmatpush1.bf16.msra.mxu0 %v21272_v46  ;;  %10258 = vmatprep.mubr.bf16.mxu0 %v20914_v27  ;;  %v21304_v46 = vld [vmem:[#allocation55_spill] sm:$0xff] }
 0x3be   : > { %15354 = vmatprep.subr.msk.bf16.mxu0 %vm787_vm1, %v21127_v53  ;;  %v21275_v53 = vld [vmem:[#allocation148_spill] sm:$0xff] }
 0x3c1   : > { %15349 = vmatmul.mubr.msk.bf16.vlgmr.msra.gmra.mrb[20].mxu1 %vm783_vm2, %v19497_v13 }
 0x3c2   : > { %10268 = vmatpush1.bf16.msra.mxu1 %v21273_v47  ;;  %10299 = vmatprep.mubr.bf16.mxu1 %v20914_v27  ;;  %v21305_v47 = vld [vmem:[#allocation54_spill] sm:$0xff] }
 0x3c3   : > { %15356 = vmatprep.subr.msk.bf16.mxu1 %vm787_vm1, %v21128_v48  ;;  %v21276_v48 = vld [vmem:[#allocation149_spill] sm:$0xff] }
 0x3c4   : > { %15351 = vmatmul.mubr.msk.bf16.vlgmr.msra.gmra.mrb[24].mxu0 %vm783_vm2, %v19497_v13 }
 0x3c5   : > { %10309 = vmatpush1.bf16.msra.mxu0 %v21274_v17  ;;  %10340 = vmatprep.mubr.bf16.mxu0 %v20914_v27  ;;  %v21306_v17 = vld [vmem:[#allocation58_spill] sm:$0xff] }
 0x3c6   : > { %15358 = vmatprep.subr.msk.bf16.mxu0 %vm787_vm1, %v21130_v20  ;;  %v21277_v20 = vld [vmem:[#allocation150_spill] sm:$0xff] }
 0x3c9   : > { %15353 = vmatmul.mubr.msk.bf16.vlgmr.msra.gmra.mrb[24].mxu1 %vm783_vm2, %v19497_v13 }
 0x3ca   : > { %10350 = vmatpush1.bf16.msra.mxu1 %v21275_v53  ;;  %10381 = vmatprep.mubr.bf16.mxu1 %v20914_v27  ;;  %v21307_v53 = vld [vmem:[#allocation56_spill] sm:$0xff] }
 0x3cb   : > { %15360 = vmatprep.subr.msk.bf16.mxu1 %vm787_vm1, %v21131_v26  ;;  %v21278_v26 = vld [vmem:[#allocation151_spill] sm:$0xff] }
 0x3cc   : > { %15355 = vmatmul.mubr.msk.bf16.vlgmr.msra.gmra.mrb[28].mxu0 %vm783_vm2, %v19497_v13 }
 0x3cd   : > { %10391 = vmatpush1.bf16.msra.mxu0 %v21276_v48  ;;  %10422 = vmatprep.mubr.bf16.mxu0 %v20914_v27  ;;  %v21308_v48 = vld [vmem:[#allocation61_spill] sm:$0xff] }
 0x3ce   : > { %15362 = vmatprep.subr.msk.bf16.mxu0 %vm787_vm1, %v21134_v35  ;;  %v21279_v35 = vld [vmem:[#allocation152_spill] sm:$0xff] }
 0x3d1   : > { %15357 = vmatmul.mubr.msk.bf16.vlgmr.msra.gmra.mrb[28].mxu1 %vm783_vm2, %v19497_v13 }
 0x3d2   : > { %10432 = vmatpush1.bf16.msra.mxu1 %v21277_v20  ;;  %10463 = vmatprep.mubr.bf16.mxu1 %v20914_v27  ;;  %v21309_v20 = vld [vmem:[#allocation60_spill] sm:$0xff] }
 0x3d3   : > { %15364 = vmatprep.subr.msk.bf16.mxu1 %vm787_vm1, %v21135_v41  ;;  %v21280_v41 = vld [vmem:[#allocation153_spill] sm:$0xff] }
 0x3d4   : > { %15359 = vmatmul.mubr.msk.bf16.vlgmr.msra.gmra.mrb[32].mxu0 %vm783_vm2, %v19497_v13 }
 0x3d5   : > { %10473 = vmatpush1.bf16.msra.mxu0 %v21278_v26  ;;  %10504 = vmatprep.mubr.bf16.mxu0 %v20914_v27  ;;  %v21310_v26 = vld [vmem:[#allocation64_spill] sm:$0xff] }
 0x3d6   : > { %15366 = vmatprep.subr.msk.bf16.mxu0 %vm787_vm1, %v21138_v54  ;;  %v21281_v54 = vld [vmem:[#allocation154_spill] sm:$0xff] }
 0x3d9   : > { %15361 = vmatmul.mubr.msk.bf16.vlgmr.msra.gmra.mrb[32].mxu1 %vm783_vm2, %v19497_v13 }
 0x3da   : > { %10514 = vmatpush1.bf16.msra.mxu1 %v21279_v35  ;;  %10545 = vmatprep.mubr.bf16.mxu1 %v20914_v27  ;;  %v21311_v35 = vld [vmem:[#allocation62_spill] sm:$0xff] }
 0x3db   : > { %15368 = vmatprep.subr.msk.bf16.mxu1 %vm787_vm1, %v21139_v11  ;;  %v21282_v11 = vld [vmem:[#allocation155_spill] sm:$0xff] }
 0x3dc   : > { %15363 = vmatmul.mubr.msk.bf16.vlgmr.msra.gmra.mrb[36].mxu0 %vm783_vm2, %v19497_v13 }
 0x3dd   : > { %10555 = vmatpush1.bf16.msra.mxu0 %v21280_v41  ;;  %10586 = vmatprep.mubr.bf16.mxu0 %v20914_v27  ;;  %v21312_v41 = vld [vmem:[#allocation67_spill] sm:$0xff] }
 0x3de   : > { %15370 = vmatprep.subr.msk.bf16.mxu0 %vm787_vm1, %v21142_v29  ;;  %v21283_v29 = vld [vmem:[#allocation156_spill] sm:$0xff] }
 0x3e1   : > { %15365 = vmatmul.mubr.msk.bf16.vlgmr.msra.gmra.mrb[36].mxu1 %vm783_vm2, %v19497_v13 }
 0x3e2   : > { %10596 = vmatpush1.bf16.msra.mxu1 %v21281_v54  ;;  %10627 = vmatprep.mubr.bf16.mxu1 %v20914_v27  ;;  %v21313_v54 = vld [vmem:[#allocation66_spill] sm:$0xff] }
 0x3e3   : > { %15372 = vmatprep.subr.msk.bf16.mxu1 %vm787_vm1, %v21143_v38  ;;  %v21284_v38 = vld [vmem:[#allocation157_spill] sm:$0xff] }
 0x3e4   : > { %15367 = vmatmul.mubr.msk.bf16.vlgmr.msra.gmra.mrb[40].mxu0 %vm783_vm2, %v19497_v13 }
 0x3e5   : > { %10637 = vmatpush1.bf16.msra.mxu0 %v21282_v11  ;;  %10668 = vmatprep.mubr.bf16.mxu0 %v20914_v27  ;;  %v21314_v11 = vld [vmem:[#allocation70_spill] sm:$0xff] }
 0x3e6   : > { %15374 = vmatprep.subr.msk.bf16.mxu0 %vm787_vm1, %v21145_v50  ;;  %v21285_v50 = vld [vmem:[#allocation158_spill] sm:$0xff] }
 0x3e9   : > { %15369 = vmatmul.mubr.msk.bf16.vlgmr.msra.gmra.mrb[40].mxu1 %vm783_vm2, %v19497_v13 }
 0x3ea   : > { %10678 = vmatpush1.bf16.msra.mxu1 %v21283_v29  ;;  %10709 = vmatprep.mubr.bf16.mxu1 %v20914_v27  ;;  %v21315_v29 = vld [vmem:[#allocation68_spill] sm:$0xff] }
 0x3eb   : > { %15376 = vmatprep.subr.msk.bf16.mxu1 %vm787_vm1, %v21146_v59  ;;  %v21286_v59 = vld [vmem:[#allocation27_spill] sm:$0xff] }
 0x3ec   : > { %15371 = vmatmul.mubr.msk.bf16.vlgmr.msra.gmra.mrb[44].mxu0 %vm783_vm2, %v19497_v13 }
 0x3ed   : > { %10719 = vmatpush1.bf16.msra.mxu0 %v21284_v38  ;;  %10750 = vmatprep.mubr.bf16.mxu0 %v20914_v27  ;;  %v21316_v38 = vld [vmem:[#allocation73_spill] sm:$0xff] }
 0x3ee   : > { %15378 = vmatprep.subr.msk.bf16.mxu0 %vm787_vm1, %v21148_v42  ;;  %v21287_v42 = vld [vmem:[#allocation159_spill] sm:$0xff] }
 0x3f1   : > { %15373 = vmatmul.mubr.msk.bf16.vlgmr.msra.gmra.mrb[44].mxu1 %vm783_vm2, %v19497_v13 }
 0x3f2   : > { %10760 = vmatpush1.bf16.msra.mxu1 %v21285_v50  ;;  %10791 = vmatprep.mubr.bf16.mxu1 %v20914_v27  ;;  %v21317_v50 = vld [vmem:[#allocation72_spill] sm:$0xff] }
 0x3f3   : > { %15380 = vmatprep.subr.msk.bf16.mxu1 %vm787_vm1, %v21149_v44  ;;  %v21289_v44 = vld [vmem:[#allocation160_spill] sm:$0xff] }
 0x3f4   : > { %15375 = vmatmul.mubr.msk.bf16.vlgmr.msra.gmra.mrb[48].mxu0 %vm783_vm2, %v19497_v13 }
 0x3f5   : > { %10801 = vmatpush1.bf16.msra.mxu0 %v21286_v59  ;;  %10832 = vmatprep.mubr.bf16.mxu0 %v20914_v27  ;;  %v21318_v59 = vld [vmem:[#allocation76_spill] sm:$0xff] }
 0x3f6   : > { %15382 = vmatprep.subr.msk.bf16.mxu0 %vm787_vm1, %v21152_v23  ;;  %v21291_v23 = vld [vmem:[#allocation161_spill] sm:$0xff] }
 0x3f9   : > { %15377 = vmatmul.mubr.msk.bf16.vlgmr.msra.gmra.mrb[48].mxu1 %vm783_vm2, %v19497_v13 }
 0x3fa   : > { %10842 = vmatpush1.bf16.msra.mxu1 %v21287_v42  ;;  %10873 = vmatprep.mubr.bf16.mxu1 %v20914_v27  ;;  %v21319_v42 = vld [vmem:[#allocation74_spill] sm:$0xff] }
 0x3fb   : > { %15384 = vmatprep.subr.msk.bf16.mxu1 %vm787_vm1, %v21288_v5  ;;  %v21320_v5 = vld [vmem:[#allocation79_spill] sm:$0xff] }
 0x3fc   : > { %15379 = vmatmul.mubr.msk.bf16.vlgmr.msra.gmra.mrb[52].mxu0 %vm783_vm2, %v19497_v13 }
 0x3fd   : > { %10883 = vmatpush1.bf16.msra.mxu0 %v21289_v44  ;;  %10914 = vmatprep.mubr.bf16.mxu0 %v20914_v27  ;;  %v21321_v44 = vld [vmem:[#allocation78_spill] sm:$0xff] }
 0x3fe   : > { %15386 = vmatprep.subr.msk.bf16.mxu0 %vm787_vm1, %v21290_v21  ;;  %v21322_v21 = vld [vmem:[#allocation82_spill] sm:$0xff] }
 0x401   : > { %15381 = vmatmul.mubr.msk.bf16.vlgmr.msra.gmra.mrb[52].mxu1 %vm783_vm2, %v19497_v13 }
 0x402   : > { %10924 = vmatpush1.bf16.msra.mxu1 %v21291_v23  ;;  %10955 = vmatprep.mubr.bf16.mxu1 %v20914_v27  ;;  %v21323_v23 = vld [vmem:[#allocation80_spill] sm:$0xff] }
 0x403   : > { %15388 = vmatprep.subr.msk.bf16.mxu1 %vm787_vm1, %v21292_v15  ;;  %v21324_v15 = vld [vmem:[#allocation85_spill] sm:$0xff] }
 0x404   : > { %15383 = vmatmul.mubr.msk.bf16.vlgmr.msra.gmra.mrb[56].mxu0 %vm783_vm2, %v19497_v13 }
 0x405   : > { %10965 = vmatpush1.bf16.msra.mxu0 %v21293_v1  ;;  %10996 = vmatprep.mubr.bf16.mxu0 %v20914_v27  ;;  %v21325_v1 = vld [vmem:[#allocation84_spill] sm:$0xff] }
 0x406   : > { %15391 = vmatprep.subr.msk.bf16.mxu0 %vm787_vm1, %v21294_v60  ;;  %v21326_v60 = vld [vmem:[#allocation88_spill] sm:$0xff] }
 0x409   : > { %15385 = vmatmul.mubr.msk.bf16.vlgmr.msra.gmra.mrb[56].mxu1 %vm783_vm2, %v19497_v13 }
 0x40a   : > { %11006 = vmatpush1.bf16.msra.mxu1 %v5573_v19  ;;  %11037 = vmatprep.mubr.bf16.mxu1 %v20914_v27  ;;  %v21328_v19 = vld [vmem:[#allocation91_spill] sm:$0xff] }
 0x40b   : > { %15393 = vmatprep.subr.msk.bf16.mxu1 %vm787_vm1, %v21296_v22  ;;  %v21329_v22 = vld [vmem:[#allocation90_spill] sm:$0xff] }
 0x40c   : > { %15387 = vmatmul.mubr.msk.bf16.vlgmr.msra.gmra.mrb[60].mxu0 %vm783_vm2, %v19497_v13 }
 0x40d   : > { %11130 = vmatpush1.bf16.msra.mxu0 %v21297_v25  ;;  %11161 = vmatprep.mubr.bf16.mxu0 %v20914_v27  ;;  %v21330_v25 = vld [vmem:[#allocation94_spill] sm:$0xff] }
 0x40e   : > { %15395 = vmatprep.subr.msk.bf16.mxu0 %vm787_vm1, %v21298_v28  ;;  %v21331_v28 = vld [vmem:[#allocation92_spill] sm:$0xff] }
 0x411   : > { %15389 = vmatmul.mubr.msk.bf16.vlgmr.msra.gmra.mrb[60].mxu1 %vm783_vm2, %v19497_v13  ;;  %v21302_v13 = vld [vmem:[#allocation52_spill] sm:$0xff] }
 0x412   : > { %11171 = vmatpush1.bf16.msra.mxu1 %v21299_v34  ;;  %11202 = vmatprep.mubr.bf16.mxu1 %v20914_v27  ;;  %v21332_v34 = vld [vmem:[#allocation97_spill] sm:$0xff] }
 0x413   : > { %15397 = vmatprep.subr.msk.bf16.mxu1 %vm787_vm1, %v21300_v37  ;;  %v21333_v37 = vld [vmem:[#allocation95_spill] sm:$0xff] }
 0x414   : > { %15392 = vmatmul.mubr.msk.bf16.vlgmr.msra.gmra.mrb[0].mxu0 %vm783_vm2, %v19695_v31 }
 0x415   : > { %11212 = vmatpush1.bf16.msra.mxu0 %v21301_v40  ;;  %11243 = vmatprep.mubr.bf16.mxu0 %v20914_v27  ;;  %v21334_v40 = vld [vmem:[#allocation100_spill] sm:$0xff] }
 0x416   : > { %15399 = vmatprep.subr.msk.bf16.mxu0 %vm787_vm1, %v21302_v13  ;;  %v21335_v13 = vld [vmem:[#allocation98_spill] sm:$0xff] }
 0x419   : > { %15394 = vmatmul.mubr.msk.bf16.vlgmr.msra.gmra.mrb[0].mxu1 %vm783_vm2, %v19695_v31 }
 0x41a   : > { %11253 = vmatpush1.bf16.msra.mxu1 %v21303_v43  ;;  %11284 = vmatprep.mubr.bf16.mxu1 %v20914_v27  ;;  %v21336_v43 = vld [vmem:[#allocation103_spill] sm:$0xff] }
 0x41b   : > { %15401 = vmatprep.subr.msk.bf16.mxu1 %vm787_vm1, %v21304_v46  ;;  %v21337_v46 = vld [vmem:[#allocation101_spill] sm:$0xff] }
 0x41c   : > { %15396 = vmatmul.mubr.msk.bf16.vlgmr.msra.gmra.mrb[4].mxu0 %vm783_vm2, %v19695_v31 }
 0x41d   : > { %11294 = vmatpush1.bf16.msra.mxu0 %v21305_v47  ;;  %11325 = vmatprep.mubr.bf16.mxu0 %v20914_v27  ;;  %v21338_v47 = vld [vmem:[#allocation106_spill] sm:$0xff] }
 0x41e   : > { %15403 = vmatprep.subr.msk.bf16.mxu0 %vm787_vm1, %v21306_v17  ;;  %v21339_v17 = vld [vmem:[#allocation104_spill] sm:$0xff] }
 0x421   : > { %15398 = vmatmul.mubr.msk.bf16.vlgmr.msra.gmra.mrb[4].mxu1 %vm783_vm2, %v19695_v31 }
 0x422   : > { %11335 = vmatpush1.bf16.msra.mxu1 %v21307_v53  ;;  %11366 = vmatprep.mubr.bf16.mxu1 %v20914_v27  ;;  %v21340_v53 = vld [vmem:[#allocation109_spill] sm:$0xff] }
 0x423   : > { %15405 = vmatprep.subr.msk.bf16.mxu1 %vm787_vm1, %v21308_v48  ;;  %v21341_v48 = vld [vmem:[#allocation107_spill] sm:$0xff] }
 0x424   : > { %15400 = vmatmul.mubr.msk.bf16.vlgmr.msra.gmra.mrb[8].mxu0 %vm783_vm2, %v19695_v31 }
 0x425   : > { %11376 = vmatpush1.bf16.msra.mxu0 %v21309_v20  ;;  %11407 = vmatprep.mubr.bf16.mxu0 %v20914_v27  ;;  %v21342_v20 = vld [vmem:[#allocation112_spill] sm:$0xff] }
 0x426   : > { %15407 = vmatprep.subr.msk.bf16.mxu0 %vm787_vm1, %v21310_v26  ;;  %v21343_v26 = vld [vmem:[#allocation110_spill] sm:$0xff] }
 0x429   : > { %15402 = vmatmul.mubr.msk.bf16.vlgmr.msra.gmra.mrb[8].mxu1 %vm783_vm2, %v19695_v31 }
 0x42a   : > { %11417 = vmatpush1.bf16.msra.mxu1 %v21311_v35  ;;  %11448 = vmatprep.mubr.bf16.mxu1 %v20914_v27  ;;  %v21344_v35 = vld [vmem:[#allocation115_spill] sm:$0xff] }
 0x42b   : > { %15409 = vmatprep.subr.msk.bf16.mxu1 %vm787_vm1, %v21312_v41  ;;  %v21345_v41 = vld [vmem:[#allocation113_spill] sm:$0xff] }
 0x42c   : > { %15404 = vmatmul.mubr.msk.bf16.vlgmr.msra.gmra.mrb[12].mxu0 %vm783_vm2, %v19695_v31 }
 0x42d   : > { %11458 = vmatpush1.bf16.msra.mxu0 %v21313_v54  ;;  %11489 = vmatprep.mubr.bf16.mxu0 %v20914_v27  ;;  %v21346_v54 = vld [vmem:[#allocation118_spill] sm:$0xff] }
 0x42e   : > { %15411 = vmatprep.subr.msk.bf16.mxu0 %vm787_vm1, %v21314_v11  ;;  %v21347_v11 = vld [vmem:[#allocation116_spill] sm:$0xff] }
 0x431   : > { %15406 = vmatmul.mubr.msk.bf16.vlgmr.msra.gmra.mrb[12].mxu1 %vm783_vm2, %v19695_v31 }
 0x432   : > { %11499 = vmatpush1.bf16.msra.mxu1 %v21315_v29  ;;  %11530 = vmatprep.mubr.bf16.mxu1 %v20914_v27  ;;  %v21348_v29 = vld [vmem:[#allocation119_spill] sm:$0xff] }
 0x433   : > { %15413 = vmatprep.subr.msk.bf16.mxu1 %vm787_vm1, %v21316_v38  ;;  %v21349_v38 = vld [vmem:[#allocation122_spill] sm:$0xff] }
 0x434   : > { %15408 = vmatmul.mubr.msk.bf16.vlgmr.msra.gmra.mrb[16].mxu0 %vm783_vm2, %v19695_v31 }
 0x435   : > { %11540 = vmatpush1.bf16.msra.mxu0 %v21317_v50  ;;  %11571 = vmatprep.mubr.bf16.mxu0 %v20914_v27 }
 0x436   : > { %15415 = vmatprep.subr.msk.bf16.mxu0 %vm787_vm1, %v21318_v59  ;;  %v21351_v59 = vld [vmem:[#allocation128_spill] sm:$0xff] }
 0x439   : > { %15410 = vmatmul.mubr.msk.bf16.vlgmr.msra.gmra.mrb[16].mxu1 %vm783_vm2, %v19695_v31 }
 0x43a   : > { %11581 = vmatpush1.bf16.msra.mxu1 %v21319_v42  ;;  %11612 = vmatprep.mubr.bf16.mxu1 %v20914_v27 }
 0x43b   : > { %15417 = vmatprep.subr.msk.bf16.mxu1 %vm787_vm1, %v21320_v5  ;;  %v19894_v5 = vld [vmem:[%s20537_s0 + $0x20] sm:$0xf] }
 0x43c   : > { %15412 = vmatmul.mubr.msk.bf16.vlgmr.msra.gmra.mrb[20].mxu0 %vm783_vm2, %v19695_v31 }
 0x43d   : > { %11622 = vmatpush1.bf16.msra.mxu0 %v21321_v44  ;;  %11653 = vmatprep.mubr.bf16.mxu0 %v20914_v27  ;;  %v21356_v44 = vld [vmem:[#allocation168_spill] sm:$0xff] }
 0x43e   : > { %15419 = vmatprep.subr.msk.bf16.mxu0 %vm787_vm1, %v21322_v21  ;;  %v21359_v21 = vld [vmem:[#allocation174_spill] sm:$0xff] }
 0x441   : > { %15414 = vmatmul.mubr.msk.bf16.vlgmr.msra.gmra.mrb[20].mxu1 %vm783_vm2, %v19695_v31 }
 0x442   : > { %11663 = vmatpush1.bf16.msra.mxu1 %v21323_v23  ;;  %11694 = vmatprep.mubr.bf16.mxu1 %v20914_v27  ;;  %v21362_v23 = vld [vmem:[#allocation180_spill] sm:$0xff] }
 0x443   : > { %15421 = vmatprep.subr.msk.bf16.mxu1 %vm787_vm1, %v21324_v15  ;;  %v21363_v15 = vld [vmem:[#allocation181_spill] sm:$0xff] }
 0x444   : > { %15416 = vmatmul.mubr.msk.bf16.vlgmr.msra.gmra.mrb[24].mxu0 %vm783_vm2, %v19695_v31 }
 0x445   : > { %11704 = vmatpush1.bf16.msra.mxu0 %v21325_v1  ;;  %11735 = vmatprep.mubr.bf16.mxu0 %v20914_v27  ;;  %v21366_v1 = vld [vmem:[#allocation187_spill] sm:$0xff] }
 0x446   : > { %15423 = vmatprep.subr.msk.bf16.mxu0 %vm787_vm1, %v21326_v60  ;;  %v21367_v60 = vld [vmem:[#allocation188_spill] sm:$0xff] }
 0x449   : > { %15418 = vmatmul.mubr.msk.bf16.vlgmr.msra.gmra.mrb[24].mxu1 %vm783_vm2, %v19695_v31 }
 0x44a   : > { %11745 = vmatpush1.bf16.msra.mxu1 %v21327_v16  ;;  %11776 = vmatprep.mubr.bf16.mxu1 %v20914_v27  ;;  %v21370_v16 = vld [vmem:[#allocation192_spill] sm:$0xff] }
 0x44b   : > { %15425 = vmatprep.subr.msk.bf16.mxu1 %vm787_vm1, %v21328_v19  ;;  %v21371_v19 = vld [vmem:[#allocation194_spill] sm:$0xff] }
 0x44c   : > { %15420 = vmatmul.mubr.msk.bf16.vlgmr.msra.gmra.mrb[28].mxu0 %vm783_vm2, %v19695_v31 }
 0x44d   : > { %11786 = vmatpush1.bf16.msra.mxu0 %v21329_v22  ;;  %11817 = vmatprep.mubr.bf16.mxu0 %v20914_v27  ;;  %v21373_v22 = vld [vmem:[#allocation197_spill] sm:$0xff] }
 0x44e   : > { %15427 = vmatprep.subr.msk.bf16.mxu0 %vm787_vm1, %v21330_v25  ;;  %v21374_v25 = vld [vmem:[#allocation198_spill] sm:$0xff] }
 0x451   : > { %15422 = vmatmul.mubr.msk.bf16.vlgmr.msra.gmra.mrb[28].mxu1 %vm783_vm2, %v19695_v31 }
 0x452   : > { %11827 = vmatpush1.bf16.msra.mxu1 %v21331_v28  ;;  %11858 = vmatprep.mubr.bf16.mxu1 %v20914_v27  ;;  %v21376_v28 = vld [vmem:[#allocation202_spill] sm:$0xff] }
 0x453   : > { %15429 = vmatprep.subr.msk.bf16.mxu1 %vm787_vm1, %v21332_v34  ;;  %v21377_v34 = vld [vmem:[#allocation203_spill] sm:$0xff] }
 0x454   : > { %15424 = vmatmul.mubr.msk.bf16.vlgmr.msra.gmra.mrb[32].mxu0 %vm783_vm2, %v19695_v31 }
 0x455   : > { %11868 = vmatpush1.bf16.msra.mxu0 %v21333_v37  ;;  %11899 = vmatprep.mubr.bf16.mxu0 %v20914_v27  ;;  %v21379_v37 = vld [vmem:[#allocation208_spill] sm:$0xff] }
 0x456   : > { %15431 = vmatprep.subr.msk.bf16.mxu0 %vm787_vm1, %v21334_v40  ;;  %v21381_v40 = vld [vmem:[#allocation212_spill] sm:$0xff] }
 0x459   : > { %15426 = vmatmul.mubr.msk.bf16.vlgmr.msra.gmra.mrb[32].mxu1 %vm783_vm2, %v19695_v31 }
 0x45a   : > { %11909 = vmatpush1.bf16.msra.mxu1 %v21335_v13  ;;  %11940 = vmatprep.mubr.bf16.mxu1 %v20914_v27  ;;  %v21384_v13 = vld [vmem:[#allocation218_spill] sm:$0xff] }
 0x45b   : > { %15433 = vmatprep.subr.msk.bf16.mxu1 %vm787_vm1, %v21336_v43  ;;  %v21387_v43 = vld [vmem:[#allocation224_spill] sm:$0xff] }
 0x45c   : > { %15428 = vmatmul.mubr.msk.bf16.vlgmr.msra.gmra.mrb[36].mxu0 %vm783_vm2, %v19695_v31 }
 0x45d   : > { %11950 = vmatpush1.bf16.msra.mxu0 %v21337_v46  ;;  %11981 = vmatprep.mubr.bf16.mxu0 %v20914_v27  ;;  %v21390_v46 = vld [vmem:[#allocation229_spill] sm:$0xff] }
 0x45e   : > { %15435 = vmatprep.subr.msk.bf16.mxu0 %vm787_vm1, %v21338_v47 }
 0x461   : > { %15430 = vmatmul.mubr.msk.bf16.vlgmr.msra.gmra.mrb[36].mxu1 %vm783_vm2, %v19695_v31 }
 0x462   : > { %11991 = vmatpush1.bf16.msra.mxu1 %v21339_v17  ;;  %12022 = vmatprep.mubr.bf16.mxu1 %v20914_v27  ;;  %v21392_v17 = vld [vmem:[#allocation231_spill] sm:$0xff] }
 0x463   : > { %15437 = vmatprep.subr.msk.bf16.mxu1 %vm787_vm1, %v21340_v53  ;;  %v21394_v53 = vld [vmem:[#allocation2_spill] sm:$0xff] }
 0x464   : > { %15432 = vmatmul.mubr.msk.bf16.vlgmr.msra.gmra.mrb[40].mxu0 %vm783_vm2, %v19695_v31 }
 0x465   : > { %12032 = vmatpush1.bf16.msra.mxu0 %v21341_v48  ;;  %12063 = vmatprep.mubr.bf16.mxu0 %v20914_v27 }
 0x466   : > { %15439 = vmatprep.subr.msk.bf16.mxu0 %vm787_vm1, %v21342_v20  ;;  %v20093_v20 = vsub.s32 1, %v21394_v53 }
 0x469   : > { %15434 = vmatmul.mubr.msk.bf16.vlgmr.msra.gmra.mrb[40].mxu1 %vm783_vm2, %v19695_v31 }
 0x46a   : > { %12073 = vmatpush1.bf16.msra.mxu1 %v21343_v26  ;;  %12104 = vmatprep.mubr.bf16.mxu1 %v20914_v27 }
 0x46b   : > { %15441 = vmatprep.subr.msk.bf16.mxu1 %vm787_vm1, %v21344_v35 }
 0x46c   : > { %15436 = vmatmul.mubr.msk.bf16.vlgmr.msra.gmra.mrb[44].mxu0 %vm783_vm2, %v19695_v31 }
 0x46d   : > { %12114 = vmatpush1.bf16.msra.mxu0 %v21345_v41  ;;  %12145 = vmatprep.mubr.bf16.mxu0 %v20914_v27  ;;  %v20100_v41 = vsub.s32 2, %v21394_v53 }
 0x46e   : > { %15443 = vmatprep.subr.msk.bf16.mxu0 %vm787_vm1, %v21346_v54  ;;  %v20103_v54 = vsub.s32 3, %v21394_v53 }
 0x471   : > { %15438 = vmatmul.mubr.msk.bf16.vlgmr.msra.gmra.mrb[44].mxu1 %vm783_vm2, %v19695_v31 }
 0x472   : > { %12155 = vmatpush1.bf16.msra.mxu1 %v21347_v11  ;;  %12186 = vmatprep.mubr.bf16.mxu1 %v20914_v27  ;;  %v20106_v11 = vsub.s32 4, %v21394_v53 }
 0x473   : > { %15445 = vmatprep.subr.msk.bf16.mxu1 %vm787_vm1, %v21214_v12  ;;  %v21350_v12 = vld [vmem:[#allocation125_spill] sm:$0xff] }
 0x474   : > { %15440 = vmatmul.mubr.msk.bf16.vlgmr.msra.gmra.mrb[48].mxu0 %vm783_vm2, %v19695_v31 }
 0x475   : > { %12196 = vmatpush1.bf16.msra.mxu0 %v21348_v29  ;;  %12227 = vmatprep.mubr.bf16.mxu0 %v20914_v27  ;;  %v20109_v29 = vsub.s32 5, %v21394_v53 }
 0x476   : > { %15447 = vmatprep.subr.msk.bf16.mxu0 %vm787_vm1, %v21216_v62  ;;  %v11121_v62 = vpop.permute.xlu0 %11120 }
 0x477   : > { %v11122_v50 = vsel %vm718_vm0, %v19222_v57, %v11121_v62  ;;  %v21354_v57 = vld [vmem:[#allocation166_spill] sm:$0xff] }
 0x479   : > { %15442 = vmatmul.mubr.msk.bf16.vlgmr.msra.gmra.mrb[48].mxu1 %vm783_vm2, %v19695_v31 }
 0x47a   : > { %12237 = vmatpush1.bf16.msra.mxu1 %v21349_v38  ;;  %12268 = vmatprep.mubr.bf16.mxu1 %v20914_v27 }
 0x47b   : > { %15449 = vmatprep.subr.msk.bf16.mxu1 %vm787_vm1, %v21219_v9  ;;  %v21352_v9 = vld [vmem:[#allocation132_spill] sm:$0xff] }
 0x47c   : > { %15444 = vmatmul.mubr.msk.bf16.vlgmr.msra.gmra.mrb[52].mxu0 %vm783_vm2, %v19695_v31 }
 0x47d   : > { %12278 = vmatpush1.bf16.msra.mxu0 %v21350_v12  ;;  %12309 = vmatprep.mubr.bf16.mxu0 %v20914_v27 }
 0x47e   : > { %15451 = vmatprep.subr.msk.bf16.mxu0 %vm787_vm1, %v21220_v58  ;;  %v21353_v58 = vld [vmem:[#allocation3_spill] sm:$0xff] }
 0x47f   : > { %v6961_v42 = vsel %vm787_vm1, %v21353_v58, 0 }
 0x481   : > { %15446 = vmatmul.mubr.msk.bf16.vlgmr.msra.gmra.mrb[52].mxu1 %vm783_vm2, %v19695_v31 }
 0x482   : > { %12319 = vmatpush1.bf16.msra.mxu1 %v21351_v59  ;;  %12350 = vmatprep.mubr.bf16.mxu1 %v20914_v27 }
 0x483   : > { %15453 = vmatprep.subr.msk.bf16.mxu1 %vm787_vm1, %v11122_v50  ;;  %v14181_v50 = vld [vmem:[%s20539_s2 + $0x8] sm:$0xff] }
 0x484   : > { %15448 = vmatmul.mubr.msk.bf16.vlgmr.msra.gmra.mrb[56].mxu0 %vm783_vm2, %v19695_v31  ;;  %vm14189_vm8 = vcmp.gt.f32.partialorder %v14181_v50, 0.0 }
 0x485   : > { %12360 = vmatpush1.bf16.msra.mxu0 %v21352_v9  ;;  %12391 = vmatprep.mubr.bf16.mxu0 %v20914_v27 }
 0x486   : > { %15456 = vmatprep.subr.msk.bf16.mxu0 %vm787_vm1, %v21222_v45  ;;  %v21355_v45 = vld [vmem:[#allocation167_spill] sm:$0xff] }
 0x489   : > { %15450 = vmatmul.mubr.msk.bf16.vlgmr.msra.gmra.mrb[56].mxu1 %vm783_vm2, %v19695_v31 }
 0x48a   : > { %12401 = vmatpush1.bf16.msra.mxu1 %v6961_v42  ;;  %12432 = vmatprep.mubr.bf16.mxu1 %v20914_v27 }
 0x48b   : > { %15458 = vmatprep.subr.msk.bf16.mxu1 %vm787_vm1, %v21224_v63  ;;  %v21357_v63 = vld [vmem:[#allocation170_spill] sm:$0xff] }
 0x48c   : > { %15452 = vmatmul.mubr.msk.bf16.vlgmr.msra.gmra.mrb[60].mxu0 %vm783_vm2, %v19695_v31 }
 0x48d   : > { %12517 = vmatpush1.bf16.msra.mxu0 %v21354_v57  ;;  %12548 = vmatprep.mubr.bf16.mxu0 %v20914_v27 }
 0x48e   : > { %15460 = vmatprep.subr.msk.bf16.mxu0 %vm787_vm1, %v21355_v45 }
 0x491   : > { %15454 = vmatmul.mubr.msk.bf16.vlgmr.msra.gmra.mrb[60].mxu1 %vm783_vm2, %v19695_v31  ;;  %v21358_v31 = vld [vmem:[#allocation173_spill] sm:$0xff] }
 0x492   : > { %12558 = vmatpush1.bf16.msra.mxu1 %v21356_v44  ;;  %12589 = vmatprep.mubr.bf16.mxu1 %v20914_v27 }
 0x493   : > { %15462 = vmatprep.subr.msk.bf16.mxu1 %vm787_vm1, %v21226_v32  ;;  %v21360_v32 = vld [vmem:[#allocation175_spill] sm:$0xff] }
 0x494   : > { %15457 = vmatmul.mubr.msk.bf16.vlgmr.msra.gmra.mrb[0].mxu0 %vm783_vm2, %v19894_v5 }
 0x495   : > { %12599 = vmatpush1.bf16.msra.mxu0 %v21357_v63  ;;  %12630 = vmatprep.mubr.bf16.mxu0 %v20914_v27  ;;  %v20128_v63 = vsub.s32 6, %v21394_v53 }
 0x496   : > { %15464 = vmatprep.subr.msk.bf16.mxu0 %vm787_vm1, %v21228_v55  ;;  %v21361_v55 = vld [vmem:[#allocation177_spill] sm:$0xff] }
 0x499   : > { %15459 = vmatmul.mubr.msk.bf16.vlgmr.msra.gmra.mrb[0].mxu1 %vm783_vm2, %v19894_v5 }
 0x49a   : > { %12640 = vmatpush1.bf16.msra.mxu1 %v21358_v31  ;;  %12671 = vmatprep.mubr.bf16.mxu1 %v20914_v27 }
 0x49b   : > { %15466 = vmatprep.subr.msk.bf16.mxu1 %vm787_vm1, %v21359_v21 }
 0x49c   : > { %15461 = vmatmul.mubr.msk.bf16.vlgmr.msra.gmra.mrb[4].mxu0 %vm783_vm2, %v19894_v5 }
 0x49d   : > { %12681 = vmatpush1.bf16.msra.mxu0 %v21360_v32  ;;  %12712 = vmatprep.mubr.bf16.mxu0 %v20914_v27 }
 0x49e   : > { %15468 = vmatprep.subr.msk.bf16.mxu0 %vm787_vm1, %v21230_v14  ;;  %v21364_v14 = vld [vmem:[#allocation182_spill] sm:$0xff] }
 0x4a1   : > { %15463 = vmatmul.mubr.msk.bf16.vlgmr.msra.gmra.mrb[4].mxu1 %vm783_vm2, %v19894_v5 }
 0x4a2   : > { %12722 = vmatpush1.bf16.msra.mxu1 %v21361_v55  ;;  %12753 = vmatprep.mubr.bf16.mxu1 %v20914_v27 }
 0x4a3   : > { %15470 = vmatprep.subr.msk.bf16.mxu1 %vm787_vm1, %v21232_v8  ;;  %v21365_v8 = vld [vmem:[#allocation184_spill] sm:$0xff] }
 0x4a4   : > { %15465 = vmatmul.mubr.msk.bf16.vlgmr.msra.gmra.mrb[8].mxu0 %vm783_vm2, %v19894_v5 }
 0x4a5   : > { %12763 = vmatpush1.bf16.msra.mxu0 %v21362_v23  ;;  %12794 = vmatprep.mubr.bf16.mxu0 %v20914_v27  ;;  %v20136_v23 = vsub.s32 7, %v21394_v53 }
 0x4a6   : > { %15472 = vmatprep.subr.msk.bf16.mxu0 %vm787_vm1, %v21363_v15 }
 0x4a9   : > { %15467 = vmatmul.mubr.msk.bf16.vlgmr.msra.gmra.mrb[8].mxu1 %vm783_vm2, %v19894_v5 }
 0x4aa   : > { %12804 = vmatpush1.bf16.msra.mxu1 %v21364_v14  ;;  %12835 = vmatprep.mubr.bf16.mxu1 %v20914_v27 }
 0x4ab   : > { %15474 = vmatprep.subr.msk.bf16.mxu1 %vm787_vm1, %v21234_v7  ;;  %v21368_v7 = vld [vmem:[#allocation189_spill] sm:$0xff] }
 0x4ac   : > { %15469 = vmatmul.mubr.msk.bf16.vlgmr.msra.gmra.mrb[12].mxu0 %vm783_vm2, %v19894_v5 }
 0x4ad   : > { %12845 = vmatpush1.bf16.msra.mxu0 %v21365_v8  ;;  %12876 = vmatprep.mubr.bf16.mxu0 %v20914_v27 }
 0x4ae   : > { %15476 = vmatprep.subr.msk.bf16.mxu0 %vm787_vm1, %v21236_v4  ;;  %v21369_v4 = vld [vmem:[#allocation191_spill] sm:$0xff] }
 0x4b1   : > { %15471 = vmatmul.mubr.msk.bf16.vlgmr.msra.gmra.mrb[12].mxu1 %vm783_vm2, %v19894_v5 }
 0x4b2   : > { %12886 = vmatpush1.bf16.msra.mxu1 %v21366_v1  ;;  %12917 = vmatprep.mubr.bf16.mxu1 %v20914_v27 }
 0x4b3   : > { %15478 = vmatprep.subr.msk.bf16.mxu1 %vm787_vm1, %v21367_v60 }
 0x4b4   : > { %15473 = vmatmul.mubr.msk.bf16.vlgmr.msra.gmra.mrb[16].mxu0 %vm783_vm2, %v19894_v5 }
 0x4b5   : > { %12927 = vmatpush1.bf16.msra.mxu0 %v21368_v7  ;;  %12958 = vmatprep.mubr.bf16.mxu0 %v20914_v27 }
 0x4b6   : > { %15480 = vmatprep.subr.msk.bf16.mxu0 %vm787_vm1, %v21238_v0  ;;  %v21372_v0 = vld [vmem:[#allocation196_spill] sm:$0xff] }
 0x4b9   : > { %15475 = vmatmul.mubr.msk.bf16.vlgmr.msra.gmra.mrb[16].mxu1 %vm783_vm2, %v19894_v5 }
 0x4ba   : > { %12968 = vmatpush1.bf16.msra.mxu1 %v21369_v4  ;;  %12999 = vmatprep.mubr.bf16.mxu1 %v20914_v27 }
 0x4bb   : > { %15482 = vmatprep.subr.msk.bf16.mxu1 %vm787_vm1, %v21370_v16  ;;  %v20150_v16 = vsel %vm14189_vm8, 1, %v20914_v27 }
 0x4bc   : > { %15477 = vmatmul.mubr.msk.bf16.vlgmr.msra.gmra.mrb[20].mxu0 %vm783_vm2, %v19894_v5 }
 0x4bd   : > { %13009 = vmatpush1.bf16.msra.mxu0 %v21371_v19  ;;  %13040 = vmatprep.mubr.bf16.mxu0 %v20914_v27 }
 0x4be   : > { %15484 = vmatprep.subr.msk.bf16.mxu0 %vm787_vm1, %v21241_v51  ;;  %v21375_v51 = vld [vmem:[#allocation201_spill] sm:$0xff] }
 0x4c1   : > { %15479 = vmatmul.mubr.msk.bf16.vlgmr.msra.gmra.mrb[20].mxu1 %vm783_vm2, %v19894_v5 }
 0x4c2   : > { %13050 = vmatpush1.bf16.msra.mxu1 %v21372_v0  ;;  %13081 = vmatprep.mubr.bf16.mxu1 %v20914_v27 }
 0x4c3   : > { %15486 = vmatprep.subr.msk.bf16.mxu1 %vm787_vm1, %v21373_v22 }
 0x4c4   : > { %15481 = vmatmul.mubr.msk.bf16.vlgmr.msra.gmra.mrb[24].mxu0 %vm783_vm2, %v19894_v5 }
 0x4c5   : > { %13091 = vmatpush1.bf16.msra.mxu0 %v21374_v25  ;;  %13122 = vmatprep.mubr.bf16.mxu0 %v20914_v27 }
 0x4c6   : > { %15488 = vmatprep.subr.msk.bf16.mxu0 %vm787_vm1, %v21244_v49  ;;  %v21378_v49 = vld [vmem:[#allocation206_spill] sm:$0xff] }
 0x4c9   : > { %15483 = vmatmul.mubr.msk.bf16.vlgmr.msra.gmra.mrb[24].mxu1 %vm783_vm2, %v19894_v5 }
 0x4ca   : > { %13132 = vmatpush1.bf16.msra.mxu1 %v21375_v51  ;;  %13163 = vmatprep.mubr.bf16.mxu1 %v20914_v27 }
 0x4cb   : > { %15490 = vmatprep.subr.msk.bf16.mxu1 %vm787_vm1, %v21376_v28  ;;  %v16687_v28 = vmov 0.0  }
 0x4cc   : > { %15485 = vmatmul.mubr.msk.bf16.vlgmr.msra.gmra.mrb[28].mxu0 %vm783_vm2, %v19894_v5  ;;  %14593 = vst.msk [vmem:[%s20157_s13] sm:$0xff] %vm14592_vm11, %v16687_v28  ;;  %14594 = vst.msk [vmem:[%s270_s7] sm:$0xff] %vm14592_vm11, %v16687_v28 }
 0x4cd   : > { %13173 = vmatpush1.bf16.msra.mxu0 %v21377_v34  ;;  %13204 = vmatprep.mubr.bf16.mxu0 %v20914_v27 }
 0x4ce   : > { %15492 = vmatprep.subr.msk.bf16.mxu0 %vm787_vm1, %v21247_v36  ;;  %v21380_v36 = vld [vmem:[#allocation211_spill] sm:$0xff] }
 0x4d1   : > { %15487 = vmatmul.mubr.msk.bf16.vlgmr.msra.gmra.mrb[28].mxu1 %vm783_vm2, %v19894_v5 }
 0x4d2   : > { %13214 = vmatpush1.bf16.msra.mxu1 %v21378_v49  ;;  %13245 = vmatprep.mubr.bf16.mxu1 %v20914_v27 }
 0x4d3   : > { %15494 = vmatprep.subr.msk.bf16.mxu1 %vm787_vm1, %v21249_v6  ;;  %v21382_v6 = vld [vmem:[#allocation213_spill] sm:$0xff] }
 0x4d4   : > { %15489 = vmatmul.mubr.msk.bf16.vlgmr.msra.gmra.mrb[32].mxu0 %vm783_vm2, %v19894_v5 }
 0x4d5   : > { %13255 = vmatpush1.bf16.msra.mxu0 %v21379_v37  ;;  %13286 = vmatprep.mubr.bf16.mxu0 %v20914_v27 }
 0x4d6   : > { %15496 = vmatprep.subr.msk.bf16.mxu0 %vm787_vm1, %v21250_v30  ;;  %v21383_v30 = vld [vmem:[#allocation216_spill] sm:$0xff] }
 0x4d9   : > { %15491 = vmatmul.mubr.msk.bf16.vlgmr.msra.gmra.mrb[32].mxu1 %vm783_vm2, %v19894_v5 }
 0x4da   : > { %13296 = vmatpush1.bf16.msra.mxu1 %v21380_v36  ;;  %13327 = vmatprep.mubr.bf16.mxu1 %v20914_v27 }
 0x4db   : > { %15498 = vmatprep.subr.msk.bf16.mxu1 %vm787_vm1, %v21381_v40 }
 0x4dc   : > { %15493 = vmatmul.mubr.msk.bf16.vlgmr.msra.gmra.mrb[36].mxu0 %vm783_vm2, %v19894_v5 }
 0x4dd   : > { %13337 = vmatpush1.bf16.msra.mxu0 %v21382_v6  ;;  %13368 = vmatprep.mubr.bf16.mxu0 %v20914_v27 }
 0x4de   : > { %15500 = vmatprep.subr.msk.bf16.mxu0 %vm787_vm1, %v21252_v2  ;;  %v21385_v2 = vld [vmem:[#allocation220_spill] sm:$0xff] }
 0x4e1   : > { %15495 = vmatmul.mubr.msk.bf16.vlgmr.msra.gmra.mrb[36].mxu1 %vm783_vm2, %v19894_v5 }
 0x4e2   : > { %13378 = vmatpush1.bf16.msra.mxu1 %v21383_v30  ;;  %13409 = vmatprep.mubr.bf16.mxu1 %v20914_v27 }
 0x4e3   : > { %15502 = vmatprep.subr.msk.bf16.mxu1 %vm787_vm1, %v21254_v3  ;;  %v21386_v3 = vld [vmem:[#allocation222_spill] sm:$0xff] }
 0x4e4   : > { %15497 = vmatmul.mubr.msk.bf16.vlgmr.msra.gmra.mrb[40].mxu0 %vm783_vm2, %v19894_v5 }
 0x4e5   : > { %13419 = vmatpush1.bf16.msra.mxu0 %v21384_v13  ;;  %13450 = vmatprep.mubr.bf16.mxu0 %v20914_v27 }
 0x4e6   : > { %15504 = vmatprep.subr.msk.bf16.mxu0 %vm787_vm1, %v21255_v52  ;;  %v21388_v52 = vld [vmem:[#allocation225_spill] sm:$0xff] }
 0x4e9   : > { %15499 = vmatmul.mubr.msk.bf16.vlgmr.msra.gmra.mrb[40].mxu1 %vm783_vm2, %v19894_v5 }
 0x4ea   : > { %13460 = vmatpush1.bf16.msra.mxu1 %v21385_v2  ;;  %13491 = vmatprep.mubr.bf16.mxu1 %v20914_v27 }
 0x4eb   : > { %15506 = vmatprep.subr.msk.bf16.mxu1 %vm787_vm1, %v21256_v61  ;;  %v21389_v61 = vld [vmem:[#allocation227_spill] sm:$0xff] }
 0x4ec   : > { %15501 = vmatmul.mubr.msk.bf16.vlgmr.msra.gmra.mrb[44].mxu0 %vm783_vm2, %v19894_v5 }
 0x4ed   : > { %13501 = vmatpush1.bf16.msra.mxu0 %v21386_v3  ;;  %13532 = vmatprep.mubr.bf16.mxu0 %v20914_v27 }
 0x4ee   : > { %15508 = vmatprep.subr.msk.bf16.mxu0 %vm787_vm1, %v21387_v43 }
 0x4f1   : > { %15503 = vmatmul.mubr.msk.bf16.vlgmr.msra.gmra.mrb[44].mxu1 %vm783_vm2, %v19894_v5 }
 0x4f2   : > { %13542 = vmatpush1.bf16.msra.mxu1 %v21388_v52  ;;  %13573 = vmatprep.mubr.bf16.mxu1 %v20914_v27 }
 0x4f3   : > { %15510 = vmatprep.subr.msk.bf16.mxu1 %vm787_vm1, %v21258_v56  ;;  %v21391_v56 = vld [vmem:[#allocation230_spill] sm:$0xff] }
 0x4f4   : > { %15505 = vmatmul.mubr.msk.bf16.vlgmr.msra.gmra.mrb[48].mxu0 %vm783_vm2, %v19894_v5 }
 0x4f5   : > { %13583 = vmatpush1.bf16.msra.mxu0 %v21389_v61  ;;  %13614 = vmatprep.mubr.bf16.mxu0 %v20914_v27 }
 0x4f6   : > { %15512 = vmatprep.subr.msk.bf16.mxu0 %vm787_vm1, %v21259_v18  ;;  %v12508_v18 = vpop.permute.xlu1 %12507 }
 0x4f7   : > { %v12509_v47 = vsel %vm3931_vm3, %v19458_v39, %v12508_v18  ;;  %v14180_v39 = vld [vmem:[%s20539_s2] sm:$0xff] }
 0x4f8   : > { %vm14188_vm4 = vcmp.gt.f32.partialorder %v14180_v39, 0.0 }
 0x4f9   : > { %15507 = vmatmul.mubr.msk.bf16.vlgmr.msra.gmra.mrb[48].mxu1 %vm783_vm2, %v19894_v5  ;;  %v20090_v48 = vsel %vm14188_vm4, 1, %v20914_v27 }
 0x4fa   : > { %13624 = vmatpush1.bf16.msra.mxu1 %v21390_v46  ;;  %13655 = vmatprep.mubr.bf16.mxu1 %v20914_v27  ;;  %v14211_v35 = vrot.slane %v20090_v48, %v20093_v20  ;;  %v14215_v38 = vrot.slane %v20090_v48, %v20100_v41  ;;  %v14219_v62 = vrot.slane %v20090_v48, %v20103_v54 }
 0x4fb   : > { %15514 = vmatprep.subr.msk.bf16.mxu1 %vm787_vm1, %v18728_v10  ;;  %v21393_v10 = vld [vmem:[#allocation232_spill] sm:$0xff]  ;;  %v14223_v58 = vrot.slane %v20090_v48, %v20106_v11  ;;  %v14227_v42 = vrot.slane %v20090_v48, %v20109_v29  ;;  %v14231_v4 = vrot.slane %v20090_v48, %v20128_v63  ;;  %v14235_v36 = vrot.slane %v20090_v48, %v20136_v23 }
 0x4fc   : > { %15509 = vmatmul.mubr.msk.bf16.vlgmr.msra.gmra.mrb[52].mxu0 %vm783_vm2, %v19894_v5  ;;  %vm14461_vm6 = vcmp.eq.s32.totalorder %v14211_v35, 1  ;;  %vm14462_vm7 = vcmp.eq.s32.totalorder %v14215_v38, 1  ;;  %vm20131_vm9 = vcmp.eq.s32.totalorder %v14219_v62, 1  ;;  %v14243_v46 = vrot.slane %v20150_v16, %v20093_v20 }
 0x4fd   : > { %13665 = vmatpush1.bf16.msra.mxu0 %v21391_v56  ;;  %13696 = vmatprep.mubr.bf16.mxu0 %v20914_v27  ;;  %vm20138_vm10 = vcmp.eq.s32.totalorder %v14223_v58, 1  ;;  %vm20143_vm12 = vcmp.eq.s32.totalorder %v14227_v42, 1  ;;  %vm14466_vm13 = vcmp.eq.s32.totalorder %v14231_v4, 1  ;;  %vm14467_vm14 = vcmp.eq.s32.totalorder %v14235_v36, 1  ;;  %v14182_v58 = vld [vmem:[%s20539_s2 + $0x10] sm:$0xff] }
 0x4fe   : > { %15516 = vmatprep.subr.msk.bf16.mxu0 %vm787_vm1, %v18750_v24  ;;  %v8348_v24 = vsel %vm787_vm1, %v19467_v33, 0  ;;  %v20087_v33 = vsub.s32 0, %v21394_v53  ;;  %vm20180_vm0 = vcmp.eq.s32.totalorder %v14243_v46, 1  ;;  %v14247_v38 = vrot.slane %v20150_v16, %v20100_v41 }
 0x500   : > { %v14207_v26 = vrot.slane %v20090_v48, %v20087_v33  ;;  %v14239_v2 = vrot.slane %v20150_v16, %v20087_v33 }
 0x501   : > { %15511 = vmatmul.mubr.msk.bf16.vlgmr.msra.gmra.mrb[52].mxu1 %vm783_vm2, %v19894_v5 }
 0x502   : > { %13706 = vmatpush1.bf16.msra.mxu1 %v21392_v17  ;;  %13737 = vmatprep.mubr.bf16.mxu1 %v20914_v27  ;;  %vm14460_vm5 = vcmp.eq.s32.totalorder %v14207_v26, 1  ;;  %vm20176_vm15 = vcmp.eq.s32.totalorder %v14239_v2, 1 }
 0x503   : > { %15518 = vmatprep.subr.msk.bf16.mxu1 %vm787_vm1, %v12509_v47  ;;  %vm14190_vm1 = vcmp.gt.f32.partialorder %v14182_v58, 0.0 }
 0x504   : > { %15513 = vmatmul.mubr.msk.bf16.vlgmr.msra.gmra.mrb[56].mxu0 %vm783_vm2, %v19894_v5 }
 0x505   : > { %13747 = vmatpush1.bf16.msra.mxu0 %v21393_v10  ;;  %13778 = vmatprep.mubr.bf16.mxu0 %v20914_v27 }
 0x509   : > { %15515 = vmatmul.mubr.msk.bf16.vlgmr.msra.gmra.mrb[56].mxu1 %vm783_vm2, %v19894_v5 }
 0x50a   : > { %13788 = vmatpush1.bf16.msra.mxu1 %v8348_v24  ;;  %13819 = vmatprep.mubr.bf16.mxu1 %v20914_v27 }
 0x50c   : > { %15517 = vmatmul.mubr.msk.bf16.vlgmr.msra.gmra.mrb[60].mxu0 %vm783_vm2, %v19894_v5 }
 0x511   : > { %15519 = vmatmul.mubr.msk.bf16.vlgmr.msra.gmra.mrb[60].mxu1 %vm783_vm2, %v19894_v5  ;;  %vm14470_vm2 = vcmp.eq.s32.totalorder %v14247_v38, 1 }
 0x567   : > { %v12550_v12 = vpop.f32.mrb[0].mxu0 }
 0x568   : > { %v14524_v59 = vsel %vm14460_vm5, %v12550_v12, 0.0  ;;  %v12552_v9 = vpop.f32.mrb[1].mxu0 }
 0x569   : > { %v14665_v57 = vmul.f32 %v14524_v59, %v14524_v59  ;;  %v15554_v45 = vpack.c.bf16 %v12552_v9, %v12550_v12  ;;  %v14525_v5 = vsel %vm14461_vm6, %v12552_v9, 0.0  ;;  %v12554_v44 = vpop.f32.mrb[2].mxu0 }
 0x56a   : > { %v14596_v31 = vadd.f32 %v14525_v5, %v14524_v59  ;;  %v14666_v21 = vmul.f32 %v14525_v5, %v14525_v5  ;;  %v12555_v32 = vpop.f32.mrb[3].mxu0  ;;  %v14251_v5 = vrot.slane %v20150_v16, %v20103_v54  ;;  %v14255_v44 = vrot.slane %v20150_v16, %v20106_v11 }
 0x56b   : > { %14148 = vst [vmem:[%s20121_s9] sm:$0xff] %v15554_v45 }
 0x56c   : > { %v14729_v15 = vadd.f32 %v14666_v21, %v14665_v57  ;;  %v12591_v14 = vpop.f32.mrb[0].mxu1  ;;  %vm14471_vm3 = vcmp.eq.s32.totalorder %v14251_v5, 1  ;;  %vm20204_vm4 = vcmp.eq.s32.totalorder %v14255_v44, 1 }
 0x56d   : > { %v14526_v1 = vsel %vm14462_vm7, %v12591_v14, 0.0  ;;  %v12593_v60 = vpop.f32.mrb[1].mxu1 }
 0x56e   : > { %v14597_v19 = vadd.f32 %v14596_v31, %v14526_v1  ;;  %v14667_v0 = vmul.f32 %v14526_v1, %v14526_v1  ;;  %v15555_v22 = vpack.c.bf16 %v12593_v60, %v12591_v14  ;;  %v14527_v25 = vsel %vm20131_vm9, %v12593_v60, 0.0  ;;  %v12595_v51 = vpop.f32.mrb[2].mxu1 }
 0x56f   : > { %v14668_v34 = vmul.f32 %v14527_v25, %v14527_v25  ;;  %v12596_v49 = vpop.f32.mrb[3].mxu1  ;;  %v12632_v37 = vpop.f32.mrb[4].mxu0  ;;  %v14259_v31 = vrot.slane %v20150_v16, %v20109_v29 }
 0x570   : > { %v14730_v40 = vadd.f32 %v14729_v15, %v14667_v0  ;;  %14149 = vst [vmem:[%s20121_s9 + $0x8] sm:$0xff] %v15555_v22  ;;  %v14598_v6 = vadd.f32 %v14597_v19, %v14527_v25  ;;  %v14528_v30 = vsel %vm20138_vm10, %v12632_v37, 0.0  ;;  %v12634_v13 = vpop.f32.mrb[5].mxu0  ;;  %v20202_v49 = vsel %vm14190_vm1, 1, %v20914_v27 }
 0x571   : > { %v14669_v3 = vmul.f32 %v14528_v30, %v14528_v30  ;;  %v15556_v43 = vpack.c.bf16 %v12634_v13, %v12632_v37  ;;  %v14529_v52 = vsel %vm20143_vm12, %v12634_v13, 0.0  ;;  %v12636_v61 = vpop.f32.mrb[6].mxu0  ;;  %vm20208_vm5 = vcmp.eq.s32.totalorder %v14259_v31, 1 }
 0x572   : > { %v14731_v56 = vadd.f32 %v14730_v40, %v14668_v34  ;;  %v14599_v18 = vadd.f32 %v14598_v6, %v14528_v30  ;;  %v14670_v47 = vmul.f32 %v14529_v52, %v14529_v52  ;;  %v12637_v17 = vpop.f32.mrb[7].mxu0  ;;  %v14263_v30 = vrot.slane %v20150_v16, %v20128_v63 }
 0x573   : > { %14150 = vst [vmem:[%s20121_s9 + $0x10] sm:$0xff] %v15556_v43  ;;  %v14279_v31 = vrot.slane %v20202_v49, %v20100_v41 }
 0x574   : > { %v14732_v10 = vadd.f32 %v14731_v56, %v14669_v3  ;;  %v14600_v24 = vadd.f32 %v14599_v18, %v14529_v52  ;;  %v12673_v39 = vpop.f32.mrb[4].mxu1  ;;  %v14267_v18 = vrot.slane %v20150_v16, %v20136_v23  ;;  %v14275_v16 = vrot.slane %v20202_v49, %v20093_v20 }
 0x575   : > { %v14530_v53 = vsel %vm14466_vm13, %v12673_v39, 0.0  ;;  %v12675_v48 = vpop.f32.mrb[5].mxu1  ;;  %vm14474_vm6 = vcmp.eq.s32.totalorder %v14263_v30, 1  ;;  %vm14478_vm12 = vcmp.eq.s32.totalorder %v14279_v31, 1 }
 0x576   : > { %v14733_v12 = vadd.f32 %v14732_v10, %v14670_v47  ;;  %v14601_v62 = vadd.f32 %v14600_v24, %v14530_v53  ;;  %v14671_v50 = vmul.f32 %v14530_v53, %v14530_v53  ;;  %v15557_v59 = vpack.c.bf16 %v12675_v48, %v12673_v39  ;;  %v12677_v9 = vpop.f32.mrb[6].mxu1 }
 0x577   : > { %v14531_v42 = vsel %vm14467_vm14, %v12675_v48, 0.0  ;;  %v12678_v57 = vpop.f32.mrb[7].mxu1  ;;  %v12714_v45 = vpop.f32.mrb[8].mxu0  ;;  %v14271_v47 = vrot.slane %v20202_v49, %v20087_v33  ;;  %vm14475_vm7 = vcmp.eq.s32.totalorder %v14267_v18, 1  ;;  %vm20230_vm9 = vcmp.eq.s32.totalorder %v14275_v16, 1 }
 0x578   : > { %v14734_v21 = vadd.f32 %v14733_v12, %v14671_v50  ;;  %14151 = vst [vmem:[%s20121_s9 + $0x18] sm:$0xff] %v15557_v59  ;;  %v14602_v32 = vadd.f32 %v14601_v62, %v14531_v42  ;;  %v14672_v55 = vmul.f32 %v14531_v42, %v14531_v42  ;;  %v14532_v15 = vsel %vm20176_vm15, %v12714_v45, 0.0  ;;  %v12716_v14 = vpop.f32.mrb[9].mxu0 }
 0x579   : > { %v14673_v8 = vmul.f32 %v14532_v15, %v14532_v15  ;;  %v15558_v1 = vpack.c.bf16 %v12716_v14, %v12714_v45  ;;  %v14533_v60 = vsel %vm20180_vm0, %v12716_v14, 0.0  ;;  %v12718_v7 = vpop.f32.mrb[10].mxu0  ;;  %vm20226_vm8 = vcmp.eq.s32.totalorder %v14271_v47, 1 }
 0x57a   : > { %v14735_v4 = vadd.f32 %v14734_v21, %v14672_v55  ;;  %v14603_v19 = vadd.f32 %v14602_v32, %v14532_v15  ;;  %v14674_v0 = vmul.f32 %v14533_v60, %v14533_v60  ;;  %v12719_v22 = vpop.f32.mrb[11].mxu0 }
 0x57b   : > { %14152 = vst [vmem:[%s20121_s9 + $0x20] sm:$0xff] %v15558_v1 }
 0x57c   : > { %v14736_v25 = vadd.f32 %v14735_v4, %v14673_v8  ;;  %v14604_v51 = vadd.f32 %v14603_v19, %v14533_v60  ;;  %v12755_v34 = vpop.f32.mrb[8].mxu1  ;;  %v14183_v8 = vld [vmem:[%s20539_s2 + $0x18] sm:$0xff]  ;;  %v14283_v4 = vrot.slane %v20202_v49, %v20103_v54  ;;  %v14287_v19 = vrot.slane %v20202_v49, %v20106_v11 }
 0x57d   : > { %v14534_v37 = vsel %vm14470_vm2, %v12755_v34, 0.0  ;;  %v12757_v36 = vpop.f32.mrb[9].mxu1  ;;  %vm14191_vm10 = vcmp.gt.f32.partialorder %v14183_v8, 0.0 }
 0x57e   : > { %v14737_v13 = vadd.f32 %v14736_v25, %v14674_v0  ;;  %v14605_v2 = vadd.f32 %v14604_v51, %v14534_v37  ;;  %v14675_v3 = vmul.f32 %v14534_v37, %v14534_v37  ;;  %v15559_v43 = vpack.c.bf16 %v12757_v36, %v12755_v34  ;;  %v12759_v52 = vpop.f32.mrb[10].mxu1 }
 0x57f   : > { %v14535_v61 = vsel %vm14471_vm3, %v12757_v36, 0.0  ;;  %v12760_v46 = vpop.f32.mrb[11].mxu1  ;;  %v12796_v56 = vpop.f32.mrb[12].mxu0  ;;  %v14291_v0 = vrot.slane %v20202_v49, %v20109_v29  ;;  %vm14479_vm13 = vcmp.eq.s32.totalorder %v14283_v4, 1  ;;  %vm20254_vm14 = vcmp.eq.s32.totalorder %v14287_v19, 1 }
 0x580   : > { %v14738_v17 = vadd.f32 %v14737_v13, %v14675_v3  ;;  %14153 = vst [vmem:[%s20121_s9 + $0x28] sm:$0xff] %v15559_v43  ;;  %v14606_v10 = vadd.f32 %v14605_v2, %v14535_v61  ;;  %v14676_v24 = vmul.f32 %v14535_v61, %v14535_v61  ;;  %v14536_v39 = vsel %vm20204_vm4, %v12796_v56, 0.0  ;;  %v12798_v53 = vpop.f32.mrb[13].mxu0 }
 0x581   : > { %v14677_v48 = vmul.f32 %v14536_v39, %v14536_v39  ;;  %v15560_v26 = vpack.c.bf16 %v12798_v53, %v12796_v56  ;;  %v14537_v35 = vsel %vm20208_vm5, %v12798_v53, 0.0  ;;  %v12800_v38 = vpop.f32.mrb[14].mxu0  ;;  %v20252_v56 = vsel %vm14191_vm10, 1, %v20914_v27 }
 0x582   : > { %v14739_v12 = vadd.f32 %v14738_v17, %v14676_v24  ;;  %v14607_v62 = vadd.f32 %v14606_v10, %v14536_v39  ;;  %v14678_v50 = vmul.f32 %v14537_v35, %v14537_v35  ;;  %v12801_v59 = vpop.f32.mrb[15].mxu0  ;;  %vm20258_vm15 = vcmp.eq.s32.totalorder %v14291_v0, 1 }
 0x583   : > { %14154 = vst [vmem:[%s20121_s9 + $0x30] sm:$0xff] %v15560_v26  ;;  %v14295_v24 = vrot.slane %v20202_v49, %v20128_v63  ;;  %v14311_v0 = vrot.slane %v20252_v56, %v20100_v41 }
 0x584   : > { %v14740_v9 = vadd.f32 %v14739_v12, %v14677_v48  ;;  %v14608_v58 = vadd.f32 %v14607_v62, %v14537_v35  ;;  %v12837_v42 = vpop.f32.mrb[12].mxu1  ;;  %v14299_v62 = vrot.slane %v20202_v49, %v20136_v23  ;;  %v14307_v49 = vrot.slane %v20252_v56, %v20093_v20 }
 0x585   : > { %v14538_v57 = vsel %vm14474_vm6, %v12837_v42, 0.0  ;;  %v12839_v45 = vpop.f32.mrb[13].mxu1  ;;  %vm14482_vm0 = vcmp.eq.s32.totalorder %v14295_v24, 1  ;;  %vm14486_vm5 = vcmp.eq.s32.totalorder %v14311_v0, 1 }
 0x586   : > { %v14741_v21 = vadd.f32 %v14740_v9, %v14678_v50  ;;  %v14609_v32 = vadd.f32 %v14608_v58, %v14538_v57  ;;  %v14679_v55 = vmul.f32 %v14538_v57, %v14538_v57  ;;  %v15561_v15 = vpack.c.bf16 %v12839_v45, %v12837_v42  ;;  %v12841_v14 = vpop.f32.mrb[14].mxu1 }
 0x587   : > { %v14539_v1 = vsel %vm14475_vm7, %v12839_v45, 0.0  ;;  %v12842_v60 = vpop.f32.mrb[15].mxu1  ;;  %v12878_v7 = vpop.f32.mrb[16].mxu0  ;;  %v14303_v50 = vrot.slane %v20252_v56, %v20087_v33  ;;  %vm14483_vm1 = vcmp.eq.s32.totalorder %v14299_v62, 1  ;;  %vm20280_vm3 = vcmp.eq.s32.totalorder %v14307_v49, 1 }
 0x588   : > { %v14742_v22 = vadd.f32 %v14741_v21, %v14679_v55  ;;  %14155 = vst [vmem:[%s20121_s9 + $0x38] sm:$0xff] %v15561_v15  ;;  %v14610_v25 = vadd.f32 %v14609_v32, %v14539_v1  ;;  %v14680_v51 = vmul.f32 %v14539_v1, %v14539_v1  ;;  %v14540_v34 = vsel %vm20226_vm8, %v12878_v7, 0.0  ;;  %v12880_v37 = vpop.f32.mrb[17].mxu0 }
 0x589   : > { %v14681_v36 = vmul.f32 %v14540_v34, %v14540_v34  ;;  %v15562_v40 = vpack.c.bf16 %v12880_v37, %v12878_v7  ;;  %v14541_v6 = vsel %vm20230_vm9, %v12880_v37, 0.0  ;;  %v12882_v30 = vpop.f32.mrb[18].mxu0  ;;  %vm20276_vm2 = vcmp.eq.s32.totalorder %v14303_v50, 1 }
 0x58a   : > { %v14743_v13 = vadd.f32 %v14742_v22, %v14680_v51  ;;  %v14611_v2 = vadd.f32 %v14610_v25, %v14540_v34  ;;  %v14682_v3 = vmul.f32 %v14541_v6, %v14541_v6  ;;  %v12883_v43 = vpop.f32.mrb[19].mxu0 }
 0x58b   : > { %14156 = vst [vmem:[%s20121_s9 + $0x40] sm:$0xff] %v15562_v40 }
 0x58c   : > { %v14744_v52 = vadd.f32 %v14743_v13, %v14681_v36  ;;  %v14612_v61 = vadd.f32 %v14611_v2, %v14541_v6  ;;  %v12919_v46 = vpop.f32.mrb[16].mxu1  ;;  %v14184_v36 = vld [vmem:[%s20539_s2 + $0x20] sm:$0xff]  ;;  %v14315_v13 = vrot.slane %v20252_v56, %v20103_v54  ;;  %v14319_v2 = vrot.slane %v20252_v56, %v20106_v11 }
 0x58d   : > { %v14542_v18 = vsel %vm14478_vm12, %v12919_v46, 0.0  ;;  %v12921_v47 = vpop.f32.mrb[17].mxu1  ;;  %vm14192_vm4 = vcmp.gt.f32.partialorder %v14184_v36, 0.0 }
 0x58e   : > { %v14745_v39 = vadd.f32 %v14744_v52, %v14682_v3  ;;  %v14613_v53 = vadd.f32 %v14612_v61, %v14542_v18  ;;  %v14683_v48 = vmul.f32 %v14542_v18, %v14542_v18  ;;  %v15563_v26 = vpack.c.bf16 %v12921_v47, %v12919_v46  ;;  %v12923_v35 = vpop.f32.mrb[18].mxu1 }
 0x58f   : > { %v14543_v38 = vsel %vm14479_vm13, %v12921_v47, 0.0  ;;  %v12924_v16 = vpop.f32.mrb[19].mxu1  ;;  %v12960_v12 = vpop.f32.mrb[20].mxu0  ;;  %v14323_v3 = vrot.slane %v20252_v56, %v20109_v29  ;;  %vm14487_vm6 = vcmp.eq.s32.totalorder %v14315_v13, 1  ;;  %vm20304_vm7 = vcmp.eq.s32.totalorder %v14319_v2, 1 }
 0x590   : > { %v14746_v59 = vadd.f32 %v14745_v39, %v14683_v48  ;;  %14157 = vst [vmem:[%s20121_s9 + $0x48] sm:$0xff] %v15563_v26  ;;  %v14614_v9 = vadd.f32 %v14613_v53, %v14543_v38  ;;  %v14684_v58 = vmul.f32 %v14543_v38, %v14543_v38  ;;  %v14544_v42 = vsel %vm20254_vm14, %v12960_v12, 0.0  ;;  %v12962_v57 = vpop.f32.mrb[21].mxu0 }
 0x591   : > { %v14685_v45 = vmul.f32 %v14544_v42, %v14544_v42  ;;  %v15564_v5 = vpack.c.bf16 %v12962_v57, %v12960_v12  ;;  %v14545_v44 = vsel %vm20258_vm15, %v12962_v57, 0.0  ;;  %v12964_v31 = vpop.f32.mrb[22].mxu0  ;;  %v20302_v12 = vsel %vm14192_vm4, 1, %v20914_v27 }
 0x592   : > { %v14747_v21 = vadd.f32 %v14746_v59, %v14684_v58  ;;  %v14615_v32 = vadd.f32 %v14614_v9, %v14544_v42  ;;  %v14686_v55 = vmul.f32 %v14545_v44, %v14545_v44  ;;  %v12965_v15 = vpop.f32.mrb[23].mxu0  ;;  %vm20308_vm8 = vcmp.eq.s32.totalorder %v14323_v3, 1 }
 0x593   : > { %14158 = vst [vmem:[%s20121_s9 + $0x50] sm:$0xff] %v15564_v5  ;;  %v14327_v58 = vrot.slane %v20252_v56, %v20128_v63  ;;  %v14343_v3 = vrot.slane %v20302_v12, %v20100_v41 }
 0x594   : > { %v14748_v14 = vadd.f32 %v14747_v21, %v14685_v45  ;;  %v14616_v8 = vadd.f32 %v14615_v32, %v14545_v44  ;;  %v13001_v1 = vpop.f32.mrb[20].mxu1  ;;  %v14331_v32 = vrot.slane %v20252_v56, %v20136_v23  ;;  %v14339_v56 = vrot.slane %v20302_v12, %v20093_v20 }
 0x595   : > { %v14546_v60 = vsel %vm14482_vm0, %v13001_v1, 0.0  ;;  %v13003_v7 = vpop.f32.mrb[21].mxu1  ;;  %vm14490_vm9 = vcmp.eq.s32.totalorder %v14327_v58, 1  ;;  %vm14494_vm15 = vcmp.eq.s32.totalorder %v14343_v3, 1 }
 0x596   : > { %v14749_v22 = vadd.f32 %v14748_v14, %v14686_v55  ;;  %v14617_v25 = vadd.f32 %v14616_v8, %v14546_v60  ;;  %v14687_v51 = vmul.f32 %v14546_v60, %v14546_v60  ;;  %v15565_v34 = vpack.c.bf16 %v13003_v7, %v13001_v1  ;;  %v13005_v37 = vpop.f32.mrb[22].mxu1 }
 0x597   : > { %v14547_v40 = vsel %vm14483_vm1, %v13003_v7, 0.0  ;;  %v13006_v6 = vpop.f32.mrb[23].mxu1  ;;  %v13042_v30 = vpop.f32.mrb[24].mxu0  ;;  %v14335_v55 = vrot.slane %v20302_v12, %v20087_v33  ;;  %vm14491_vm10 = vcmp.eq.s32.totalorder %v14331_v32, 1  ;;  %vm20330_vm13 = vcmp.eq.s32.totalorder %v14339_v56, 1 }
 0x598   : > { %v14750_v43 = vadd.f32 %v14749_v22, %v14687_v51  ;;  %14159 = vst [vmem:[%s20121_s9 + $0x58] sm:$0xff] %v15565_v34  ;;  %v14618_v52 = vadd.f32 %v14617_v25, %v14547_v40  ;;  %v14688_v61 = vmul.f32 %v14547_v40, %v14547_v40  ;;  %v14548_v46 = vsel %vm20276_vm2, %v13042_v30, 0.0  ;;  %v13044_v18 = vpop.f32.mrb[25].mxu0 }
 0x599   : > { %v14689_v47 = vmul.f32 %v14548_v46, %v14548_v46  ;;  %v15566_v17 = vpack.c.bf16 %v13044_v18, %v13042_v30  ;;  %v14549_v10 = vsel %vm20280_vm3, %v13044_v18, 0.0  ;;  %v13046_v24 = vpop.f32.mrb[26].mxu0  ;;  %vm20326_vm12 = vcmp.eq.s32.totalorder %v14335_v55, 1 }
 0x59a   : > { %v14751_v39 = vadd.f32 %v14750_v43, %v14688_v61  ;;  %v14619_v53 = vadd.f32 %v14618_v52, %v14548_v46  ;;  %v14690_v48 = vmul.f32 %v14549_v10, %v14549_v10  ;;  %v13047_v26 = vpop.f32.mrb[27].mxu0 }
 0x59b   : > { %14160 = vst [vmem:[%s20121_s9 + $0x60] sm:$0xff] %v15566_v17 }
 0x59c   : > { %v14752_v35 = vadd.f32 %v14751_v39, %v14689_v47  ;;  %v14620_v38 = vadd.f32 %v14619_v53, %v14549_v10  ;;  %v13083_v16 = vpop.f32.mrb[24].mxu1  ;;  %v14185_v47 = vld [vmem:[%s20539_s2 + $0x28] sm:$0xff]  ;;  %v14347_v39 = vrot.slane %v20302_v12, %v20103_v54  ;;  %v14351_v53 = vrot.slane %v20302_v12, %v20106_v11 }
 0x59d   : > { %v14550_v62 = vsel %vm14486_vm5, %v13083_v16, 0.0  ;;  %v13085_v50 = vpop.f32.mrb[25].mxu1  ;;  %vm14193_vm14 = vcmp.gt.f32.partialorder %v14185_v47, 0.0 }
 0x59e   : > { %v14753_v42 = vadd.f32 %v14752_v35, %v14690_v48  ;;  %v14621_v57 = vadd.f32 %v14620_v38, %v14550_v62  ;;  %v14691_v45 = vmul.f32 %v14550_v62, %v14550_v62  ;;  %v15567_v5 = vpack.c.bf16 %v13085_v50, %v13083_v16  ;;  %v13087_v44 = vpop.f32.mrb[26].mxu1 }
 0x59f   : > { %v14551_v31 = vsel %vm14487_vm6, %v13085_v50, 0.0  ;;  %v13088_v49 = vpop.f32.mrb[27].mxu1  ;;  %v13124_v21 = vpop.f32.mrb[28].mxu0  ;;  %v14355_v48 = vrot.slane %v20302_v12, %v20109_v29  ;;  %vm14495_vm0 = vcmp.eq.s32.totalorder %v14347_v39, 1  ;;  %vm20354_vm1 = vcmp.eq.s32.totalorder %v14351_v53, 1 }
 0x5a0   : > { %v14754_v15 = vadd.f32 %v14753_v42, %v14691_v45  ;;  %14161 = vst [vmem:[%s20121_s9 + $0x68] sm:$0xff] %v15567_v5  ;;  %v14622_v14 = vadd.f32 %v14621_v57, %v14551_v31  ;;  %v14692_v8 = vmul.f32 %v14551_v31, %v14551_v31  ;;  %v14552_v1 = vsel %vm20304_vm7, %v13124_v21, 0.0  ;;  %v13126_v60 = vpop.f32.mrb[29].mxu0 }
 0x5a1   : > { %v14693_v7 = vmul.f32 %v14552_v1, %v14552_v1  ;;  %v15568_v4 = vpack.c.bf16 %v13126_v60, %v13124_v21  ;;  %v14553_v19 = vsel %vm20308_vm8, %v13126_v60, 0.0  ;;  %v13128_v0 = vpop.f32.mrb[30].mxu0  ;;  %v20352_v21 = vsel %vm14193_vm14, 1, %v20914_v27 }
 0x5a2   : > { %v14755_v22 = vadd.f32 %v14754_v15, %v14692_v8  ;;  %v14623_v25 = vadd.f32 %v14622_v14, %v14552_v1  ;;  %v14694_v51 = vmul.f32 %v14553_v19, %v14553_v19  ;;  %v13129_v34 = vpop.f32.mrb[31].mxu0  ;;  %vm20358_vm2 = vcmp.eq.s32.totalorder %v14355_v48, 1 }
 0x5a3   : > { %14162 = vst [vmem:[%s20121_s9 + $0x70] sm:$0xff] %v15568_v4  ;;  %v14359_v8 = vrot.slane %v20302_v12, %v20128_v63  ;;  %v14375_v48 = vrot.slane %v20352_v21, %v20100_v41 }
 0x5a4   : > { %v14756_v37 = vadd.f32 %v14755_v22, %v14693_v7  ;;  %v14624_v36 = vadd.f32 %v14623_v25, %v14553_v19  ;;  %v13165_v40 = vpop.f32.mrb[28].mxu1  ;;  %v14363_v25 = vrot.slane %v20302_v12, %v20136_v23  ;;  %v14371_v12 = vrot.slane %v20352_v21, %v20093_v20 }
 0x5a5   : > { %v14554_v6 = vsel %vm14490_vm9, %v13165_v40, 0.0  ;;  %v13167_v30 = vpop.f32.mrb[29].mxu1  ;;  %vm14498_vm3 = vcmp.eq.s32.totalorder %v14359_v8, 1  ;;  %vm14502_vm8 = vcmp.eq.s32.totalorder %v14375_v48, 1 }
 0x5a6   : > { %v14757_v43 = vadd.f32 %v14756_v37, %v14694_v51  ;;  %v14625_v52 = vadd.f32 %v14624_v36, %v14554_v6  ;;  %v14695_v61 = vmul.f32 %v14554_v6, %v14554_v6  ;;  %v15569_v46 = vpack.c.bf16 %v13167_v30, %v13165_v40  ;;  %v13169_v18 = vpop.f32.mrb[30].mxu1 }
 0x5a7   : > { %v14555_v17 = vsel %vm14491_vm10, %v13167_v30, 0.0  ;;  %v13170_v10 = vpop.f32.mrb[31].mxu1  ;;  %v13206_v24 = vpop.f32.mrb[32].mxu0  ;;  %v14367_v51 = vrot.slane %v20352_v21, %v20087_v33  ;;  %vm14499_vm4 = vcmp.eq.s32.totalorder %v14363_v25, 1  ;;  %vm20380_vm6 = vcmp.eq.s32.totalorder %v14371_v12, 1 }
 0x5a8   : > { %v14758_v26 = vadd.f32 %v14757_v43, %v14695_v61  ;;  %14163 = vst [vmem:[%s20121_s9 + $0x78] sm:$0xff] %v15569_v46  ;;  %v14626_v35 = vadd.f32 %v14625_v52, %v14555_v17  ;;  %v14696_v38 = vmul.f32 %v14555_v17, %v14555_v17  ;;  %v14556_v16 = vsel %vm20326_vm12, %v13206_v24, 0.0  ;;  %v13208_v62 = vpop.f32.mrb[33].mxu0 }
 0x5a9   : > { %v14697_v50 = vmul.f32 %v14556_v16, %v14556_v16  ;;  %v15570_v59 = vpack.c.bf16 %v13208_v62, %v13206_v24  ;;  %v14557_v9 = vsel %vm20330_vm13, %v13208_v62, 0.0  ;;  %v13210_v58 = vpop.f32.mrb[34].mxu0  ;;  %vm20376_vm5 = vcmp.eq.s32.totalorder %v14367_v51, 1 }
 0x5aa   : > { %v14759_v42 = vadd.f32 %v14758_v26, %v14696_v38  ;;  %v14627_v57 = vadd.f32 %v14626_v35, %v14556_v16  ;;  %v14698_v45 = vmul.f32 %v14557_v9, %v14557_v9  ;;  %v13211_v5 = vpop.f32.mrb[35].mxu0 }
 0x5ab   : > { %14164 = vst [vmem:[%s20121_s9 + $0x80] sm:$0xff] %v15570_v59 }
 0x5ac   : > { %v14760_v44 = vadd.f32 %v14759_v42, %v14697_v50  ;;  %v14628_v31 = vadd.f32 %v14627_v57, %v14557_v9  ;;  %v13247_v49 = vpop.f32.mrb[32].mxu1  ;;  %v14186_v50 = vld [vmem:[%s20539_s2 + $0x30] sm:$0xff]  ;;  %v14379_v42 = vrot.slane %v20352_v21, %v20103_v54  ;;  %v14383_v57 = vrot.slane %v20352_v21, %v20106_v11 }
 0x5ad   : > { %v14558_v32 = vsel %vm14494_vm15, %v13247_v49, 0.0  ;;  %v13249_v55 = vpop.f32.mrb[33].mxu1  ;;  %vm14194_vm7 = vcmp.gt.f32.partialorder %v14186_v50, 0.0 }
 0x5ae   : > { %v14761_v1 = vadd.f32 %v14760_v44, %v14698_v45  ;;  %v14629_v60 = vadd.f32 %v14628_v31, %v14558_v32  ;;  %v14699_v7 = vmul.f32 %v14558_v32, %v14558_v32  ;;  %v15571_v4 = vpack.c.bf16 %v13249_v55, %v13247_v49  ;;  %v13251_v19 = vpop.f32.mrb[34].mxu1 }
 0x5af   : > { %v14559_v0 = vsel %vm14495_vm0, %v13249_v55, 0.0  ;;  %v13252_v56 = vpop.f32.mrb[35].mxu1  ;;  %v13288_v22 = vpop.f32.mrb[36].mxu0  ;;  %v14387_v45 = vrot.slane %v20352_v21, %v20109_v29  ;;  %vm14503_vm9 = vcmp.eq.s32.totalorder %v14379_v42, 1  ;;  %vm20404_vm10 = vcmp.eq.s32.totalorder %v14383_v57, 1 }
 0x5b0   : > { %v14762_v34 = vadd.f32 %v14761_v1, %v14699_v7  ;;  %14165 = vst [vmem:[%s20121_s9 + $0x88] sm:$0xff] %v15571_v4  ;;  %v14630_v37 = vadd.f32 %v14629_v60, %v14559_v0  ;;  %v14700_v36 = vmul.f32 %v14559_v0, %v14559_v0  ;;  %v14560_v40 = vsel %vm20354_vm1, %v13288_v22, 0.0  ;;  %v13290_v6 = vpop.f32.mrb[37].mxu0 }
 0x5b1   : > { %v14701_v30 = vmul.f32 %v14560_v40, %v14560_v40  ;;  %v15572_v13 = vpack.c.bf16 %v13290_v6, %v13288_v22  ;;  %v14561_v2 = vsel %vm20358_vm2, %v13290_v6, 0.0  ;;  %v13292_v3 = vpop.f32.mrb[38].mxu0  ;;  %v20402_v22 = vsel %vm14194_vm7, 1, %v20914_v27 }
 0x5b2   : > { %v14763_v43 = vadd.f32 %v14762_v34, %v14700_v36  ;;  %v14631_v52 = vadd.f32 %v14630_v37, %v14560_v40  ;;  %v14702_v61 = vmul.f32 %v14561_v2, %v14561_v2  ;;  %v13293_v46 = vpop.f32.mrb[39].mxu0  ;;  %vm20408_vm12 = vcmp.eq.s32.totalorder %v14387_v45, 1 }
 0x5b3   : > { %14166 = vst [vmem:[%s20121_s9 + $0x90] sm:$0xff] %v15572_v13  ;;  %v14391_v36 = vrot.slane %v20352_v21, %v20128_v63  ;;  %v14407_v45 = vrot.slane %v20402_v22, %v20100_v41 }
 0x5b4   : > { %v14764_v18 = vadd.f32 %v14763_v43, %v14701_v30  ;;  %v14632_v47 = vadd.f32 %v14631_v52, %v14561_v2  ;;  %v13329_v17 = vpop.f32.mrb[36].mxu1  ;;  %v14395_v52 = vrot.slane %v20352_v21, %v20136_v23  ;;  %v14403_v21 = vrot.slane %v20402_v22, %v20093_v20 }
 0x5b5   : > { %v14562_v10 = vsel %vm14498_vm3, %v13329_v17, 0.0  ;;  %v13331_v24 = vpop.f32.mrb[37].mxu1  ;;  %vm14506_vm13 = vcmp.eq.s32.totalorder %v14391_v36, 1  ;;  %vm14510_vm2 = vcmp.eq.s32.totalorder %v14407_v45, 1 }
 0x5b6   : > { %v14765_v26 = vadd.f32 %v14764_v18, %v14702_v61  ;;  %v14633_v35 = vadd.f32 %v14632_v47, %v14562_v10  ;;  %v14703_v38 = vmul.f32 %v14562_v10, %v14562_v10  ;;  %v15573_v16 = vpack.c.bf16 %v13331_v24, %v13329_v17  ;;  %v13333_v62 = vpop.f32.mrb[38].mxu1 }
 0x5b7   : > { %v14563_v59 = vsel %vm14499_vm4, %v13331_v24, 0.0  ;;  %v13334_v9 = vpop.f32.mrb[39].mxu1  ;;  %v13370_v58 = vpop.f32.mrb[40].mxu0  ;;  %v14399_v61 = vrot.slane %v20402_v22, %v20087_v33  ;;  %vm14507_vm14 = vcmp.eq.s32.totalorder %v14395_v52, 1  ;;  %vm20430_vm0 = vcmp.eq.s32.totalorder %v14403_v21, 1 }
 0x5b8   : > { %v14766_v5 = vadd.f32 %v14765_v26, %v14703_v38  ;;  %14167 = vst [vmem:[%s20121_s9 + $0x98] sm:$0xff] %v15573_v16  ;;  %v14634_v44 = vadd.f32 %v14633_v35, %v14563_v59  ;;  %v14704_v31 = vmul.f32 %v14563_v59, %v14563_v59  ;;  %v14564_v49 = vsel %vm20376_vm5, %v13370_v58, 0.0  ;;  %v13372_v32 = vpop.f32.mrb[41].mxu0 }
 0x5b9   : > { %v14705_v55 = vmul.f32 %v14564_v49, %v14564_v49  ;;  %v15574_v15 = vpack.c.bf16 %v13372_v32, %v13370_v58  ;;  %v14565_v14 = vsel %vm20380_vm6, %v13372_v32, 0.0  ;;  %v13374_v8 = vpop.f32.mrb[42].mxu0  ;;  %vm20426_vm15 = vcmp.eq.s32.totalorder %v14399_v61, 1 }
 0x5ba   : > { %v14767_v1 = vadd.f32 %v14766_v5, %v14704_v31  ;;  %v14635_v60 = vadd.f32 %v14634_v44, %v14564_v49  ;;  %v14706_v7 = vmul.f32 %v14565_v14, %v14565_v14  ;;  %v13375_v4 = vpop.f32.mrb[43].mxu0 }
 0x5bb   : > { %14168 = vst [vmem:[%s20121_s9 + $0xa0] sm:$0xff] %v15574_v15 }
 0x5bc   : > { %v14768_v19 = vadd.f32 %v14767_v1, %v14705_v55  ;;  %v14636_v0 = vadd.f32 %v14635_v60, %v14565_v14  ;;  %v13411_v56 = vpop.f32.mrb[40].mxu1  ;;  %v14187_v55 = vld [vmem:[%s20539_s2 + $0x38] sm:$0xff]  ;;  %v14411_v1 = vrot.slane %v20402_v22, %v20103_v54  ;;  %v14415_v60 = vrot.slane %v20402_v22, %v20106_v11 }
 0x5bd   : > { %v14566_v25 = vsel %vm14502_vm8, %v13411_v56, 0.0  ;;  %v13413_v51 = vpop.f32.mrb[41].mxu1  ;;  %vm14195_vm1 = vcmp.gt.f32.partialorder %v14187_v55, 0.0 }
 0x5be   : > { %v14769_v40 = vadd.f32 %v14768_v19, %v14706_v7  ;;  %v14637_v6 = vadd.f32 %v14636_v0, %v14566_v25  ;;  %v14707_v30 = vmul.f32 %v14566_v25, %v14566_v25  ;;  %v15575_v13 = vpack.c.bf16 %v13413_v51, %v13411_v56  ;;  %v13415_v2 = vpop.f32.mrb[42].mxu1 }
 0x5bf   : > { %v14567_v3 = vsel %vm14503_vm9, %v13413_v51, 0.0  ;;  %v13416_v12 = vpop.f32.mrb[43].mxu1  ;;  %v13452_v43 = vpop.f32.mrb[44].mxu0  ;;  %v14419_v7 = vrot.slane %v20402_v22, %v20109_v29  ;;  %vm14511_vm3 = vcmp.eq.s32.totalorder %v14411_v1, 1  ;;  %vm20454_vm4 = vcmp.eq.s32.totalorder %v14415_v60, 1 }
 0x5c0   : > { %v14770_v46 = vadd.f32 %v14769_v40, %v14707_v30  ;;  %14169 = vst [vmem:[%s20121_s9 + $0xa8] sm:$0xff] %v15575_v13  ;;  %v14638_v18 = vadd.f32 %v14637_v6, %v14567_v3  ;;  %v14708_v47 = vmul.f32 %v14567_v3, %v14567_v3  ;;  %v14568_v17 = vsel %vm20404_vm10, %v13452_v43, 0.0  ;;  %v13454_v10 = vpop.f32.mrb[45].mxu0 }
 0x5c1   : > { %v14709_v24 = vmul.f32 %v14568_v17, %v14568_v17  ;;  %v15576_v39 = vpack.c.bf16 %v13454_v10, %v13452_v43  ;;  %v14569_v53 = vsel %vm20408_vm12, %v13454_v10, 0.0  ;;  %v13456_v48 = vpop.f32.mrb[46].mxu0  ;;  %v20452_v43 = vsel %vm14195_vm1, 1, %v20914_v27 }
 0x5c2   : > { %v14771_v26 = vadd.f32 %v14770_v46, %v14708_v47  ;;  %v14639_v35 = vadd.f32 %v14638_v18, %v14568_v17  ;;  %v14710_v38 = vmul.f32 %v14569_v53, %v14569_v53  ;;  %v13457_v16 = vpop.f32.mrb[47].mxu0  ;;  %vm20458_vm5 = vcmp.eq.s32.totalorder %v14419_v7, 1 }
 0x5c3   : > { %14170 = vst [vmem:[%s20121_s9 + $0xb0] sm:$0xff] %v15576_v39  ;;  %v14423_v47 = vrot.slane %v20402_v22, %v20128_v63 }
 0x5c4   : > { %v14772_v62 = vadd.f32 %v14771_v26, %v14709_v24  ;;  %v14640_v50 = vadd.f32 %v14639_v35, %v14569_v53  ;;  %v13493_v59 = vpop.f32.mrb[44].mxu1  ;;  %v14427_v26 = vrot.slane %v20402_v22, %v20136_v23  ;;  %v14431_v35 = vrot.slane %v20452_v43, %v20087_v33 }
 0x5c5   : > { %v14570_v9 = vsel %vm14506_vm13, %v13493_v59, 0.0  ;;  %v13495_v58 = vpop.f32.mrb[45].mxu1  ;;  %v14435_v22 = vrot.slane %v20452_v43, %v20093_v20  ;;  %vm14514_vm6 = vcmp.eq.s32.totalorder %v14423_v47, 1  ;;  %v14439_v20 = vrot.slane %v20452_v43, %v20100_v41 }
 0x5c6   : > { %v14773_v5 = vadd.f32 %v14772_v62, %v14710_v38  ;;  %v14641_v44 = vadd.f32 %v14640_v50, %v14570_v9  ;;  %v14711_v31 = vmul.f32 %v14570_v9, %v14570_v9  ;;  %v15577_v49 = vpack.c.bf16 %v13495_v58, %v13493_v59  ;;  %v13497_v32 = vpop.f32.mrb[46].mxu1 }
 0x5c7   : > { %v14571_v15 = vsel %vm14507_vm14, %v13495_v58, 0.0  ;;  %v13498_v14 = vpop.f32.mrb[47].mxu1  ;;  %v13534_v8 = vpop.f32.mrb[48].mxu0  ;;  %vm14515_vm7 = vcmp.eq.s32.totalorder %v14427_v26, 1  ;;  %vm20476_vm8 = vcmp.eq.s32.totalorder %v14431_v35, 1  ;;  %vm20480_vm9 = vcmp.eq.s32.totalorder %v14435_v22, 1 }
 0x5c8   : > { %v14774_v4 = vadd.f32 %v14773_v5, %v14711_v31  ;;  %14171 = vst [vmem:[%s20121_s9 + $0xb8] sm:$0xff] %v15577_v49  ;;  %v14642_v19 = vadd.f32 %v14641_v44, %v14571_v15  ;;  %v14712_v0 = vmul.f32 %v14571_v15, %v14571_v15  ;;  %v14572_v56 = vsel %vm20426_vm15, %v13534_v8, 0.0  ;;  %v13536_v25 = vpop.f32.mrb[49].mxu0 }
 0x5c9   : > { %v14713_v51 = vmul.f32 %v14572_v56, %v14572_v56  ;;  %v15578_v34 = vpack.c.bf16 %v13536_v25, %v13534_v8  ;;  %v14573_v37 = vsel %vm20430_vm0, %v13536_v25, 0.0  ;;  %v13538_v36 = vpop.f32.mrb[50].mxu0  ;;  %vm14518_vm10 = vcmp.eq.s32.totalorder %v14439_v20, 1 }
 0x5ca   : > { %v14775_v40 = vadd.f32 %v14774_v4, %v14712_v0  ;;  %v14643_v6 = vadd.f32 %v14642_v19, %v14572_v56  ;;  %v14714_v30 = vmul.f32 %v14573_v37, %v14573_v37  ;;  %v13539_v13 = vpop.f32.mrb[51].mxu0 }
 0x5cb   : > { %14172 = vst [vmem:[%s20121_s9 + $0xc0] sm:$0xff] %v15578_v34  ;;  %v14447_v34 = vrot.slane %v20452_v43, %v20106_v11 }
 0x5cc   : > { %v14776_v2 = vadd.f32 %v14775_v40, %v14713_v51  ;;  %v14644_v3 = vadd.f32 %v14643_v6, %v14573_v37  ;;  %v13575_v12 = vpop.f32.mrb[48].mxu1  ;;  %v14443_v51 = vrot.slane %v20452_v43, %v20103_v54  ;;  %v14451_v54 = vrot.slane %v20452_v43, %v20109_v29 }
 0x5cd   : > { %v14574_v52 = vsel %vm14510_vm2, %v13575_v12, 0.0  ;;  %v13577_v61 = vpop.f32.mrb[49].mxu1  ;;  %vm20498_vm13 = vcmp.eq.s32.totalorder %v14447_v34, 1  ;;  %v14455_v29 = vrot.slane %v20452_v43, %v20128_v63  ;;  %v14664_v34 = vld [vmem:[%s270_s7] sm:$0xff] }
 0x5ce   : > { %v14777_v17 = vadd.f32 %v14776_v2, %v14714_v30  ;;  %v14645_v10 = vadd.f32 %v14644_v3, %v14574_v52  ;;  %v14715_v24 = vmul.f32 %v14574_v52, %v14574_v52  ;;  %v15579_v39 = vpack.c.bf16 %v13577_v61, %v13575_v12  ;;  %v13579_v27 = vpop.f32.mrb[50].mxu1 }
 0x5cf   : > { %v14575_v53 = vsel %vm14511_vm3, %v13577_v61, 0.0  ;;  %v13580_v48 = vpop.f32.mrb[51].mxu1  ;;  %v13616_v21 = vpop.f32.mrb[52].mxu0  ;;  %vm14519_vm12 = vcmp.eq.s32.totalorder %v14443_v51, 1  ;;  %vm20502_vm14 = vcmp.eq.s32.totalorder %v14451_v54, 1  ;;  %vm14522_vm15 = vcmp.eq.s32.totalorder %v14455_v29, 1 }
 0x5d0   : > { %v14778_v38 = vadd.f32 %v14777_v17, %v14715_v24  ;;  %14173 = vst [vmem:[%s20121_s9 + $0xc8] sm:$0xff] %v15579_v39  ;;  %v14646_v16 = vadd.f32 %v14645_v10, %v14575_v53  ;;  %v14716_v62 = vmul.f32 %v14575_v53, %v14575_v53  ;;  %v14576_v50 = vsel %vm20454_vm4, %v13616_v21, 0.0  ;;  %v13618_v59 = vpop.f32.mrb[53].mxu0 }
 0x5d1   : > { %v14717_v9 = vmul.f32 %v14576_v50, %v14576_v50  ;;  %v15580_v58 = vpack.c.bf16 %v13618_v59, %v13616_v21  ;;  %v14577_v42 = vsel %vm20458_vm5, %v13618_v59, 0.0  ;;  %v13620_v57 = vpop.f32.mrb[54].mxu0 }
 0x5d2   : > { %v14779_v45 = vadd.f32 %v14778_v38, %v14716_v62  ;;  %v14647_v33 = vadd.f32 %v14646_v16, %v14576_v50  ;;  %v14718_v5 = vmul.f32 %v14577_v42, %v14577_v42  ;;  %v13621_v44 = vpop.f32.mrb[55].mxu0  ;;  %v14459_v62 = vrot.slane %v20452_v43, %v20136_v23 }
 0x5d3   : > { %14174 = vst [vmem:[%s20121_s9 + $0xd0] sm:$0xff] %v15580_v58 }
 0x5d4   : > { %v14780_v31 = vadd.f32 %v14779_v45, %v14717_v9  ;;  %v14648_v49 = vadd.f32 %v14647_v33, %v14577_v42  ;;  %v13657_v32 = vpop.f32.mrb[52].mxu1  ;;  %vm14523_vm0 = vcmp.eq.s32.totalorder %v14459_v62, 1 }
 0x5d5   : > { %v14578_v55 = vsel %vm14514_vm6, %v13657_v32, 0.0  ;;  %v13659_v15 = vpop.f32.mrb[53].mxu1 }
 0x5d6   : > { %v14781_v1 = vadd.f32 %v14780_v31, %v14718_v5  ;;  %v14649_v60 = vadd.f32 %v14648_v49, %v14578_v55  ;;  %v14719_v7 = vmul.f32 %v14578_v55, %v14578_v55  ;;  %v15581_v4 = vpack.c.bf16 %v13659_v15, %v13657_v32  ;;  %v13661_v19 = vpop.f32.mrb[54].mxu1 }
 0x5d7   : > { %v14579_v0 = vsel %vm14515_vm7, %v13659_v15, 0.0  ;;  %v13662_v56 = vpop.f32.mrb[55].mxu1  ;;  %v13698_v25 = vpop.f32.mrb[56].mxu0 }
 0x5d8   : > { %v14782_v37 = vadd.f32 %v14781_v1, %v14719_v7  ;;  %14175 = vst [vmem:[%s20121_s9 + $0xd8] sm:$0xff] %v15581_v4  ;;  %v14650_v36 = vadd.f32 %v14649_v60, %v14579_v0  ;;  %v14720_v40 = vmul.f32 %v14579_v0, %v14579_v0  ;;  %v14580_v41 = vsel %vm20476_vm8, %v13698_v25, 0.0  ;;  %v13700_v6 = vpop.f32.mrb[57].mxu0 }
 0x5d9   : > { %v14721_v30 = vmul.f32 %v14580_v41, %v14580_v41  ;;  %v15582_v13 = vpack.c.bf16 %v13700_v6, %v13698_v25  ;;  %v14581_v2 = vsel %vm20480_vm9, %v13700_v6, 0.0  ;;  %v13702_v3 = vpop.f32.mrb[58].mxu0  ;;  %v14595_v25 = vld [vmem:[%s20157_s13] sm:$0xff] }
 0x5da   : > { %v14783_v12 = vadd.f32 %v14782_v37, %v14720_v40  ;;  %v14651_v11 = vadd.f32 %v14650_v36, %v14580_v41  ;;  %v14722_v52 = vmul.f32 %v14581_v2, %v14581_v2  ;;  %v13703_v61 = vpop.f32.mrb[59].mxu0 }
 0x5db   : > { %14176 = vst [vmem:[%s20121_s9 + $0xe0] sm:$0xff] %v15582_v13 }
 0x5dc   : > { %v14784_v46 = vadd.f32 %v14783_v12, %v14721_v30  ;;  %v14652_v18 = vadd.f32 %v14651_v11, %v14581_v2  ;;  %v13739_v47 = vpop.f32.mrb[56].mxu1 }
 0x5dd   : > { %v14582_v17 = vsel %vm14518_vm10, %v13739_v47, 0.0  ;;  %v13741_v10 = vpop.f32.mrb[57].mxu1 }
 0x5de   : > { %v14785_v27 = vadd.f32 %v14784_v46, %v14722_v52  ;;  %v14653_v53 = vadd.f32 %v14652_v18, %v14582_v17  ;;  %v14723_v48 = vmul.f32 %v14582_v17, %v14582_v17  ;;  %v15583_v21 = vpack.c.bf16 %v13741_v10, %v13739_v47  ;;  %v13743_v26 = vpop.f32.mrb[58].mxu1 }
 0x5df   : > { %v14583_v35 = vsel %vm14519_vm12, %v13741_v10, 0.0  ;;  %v13744_v38 = vpop.f32.mrb[59].mxu1  ;;  %v13780_v16 = vpop.f32.mrb[60].mxu0 }
 0x5e0   : > { %v14786_v50 = vadd.f32 %v14785_v27, %v14723_v48  ;;  %14177 = vst [vmem:[%s20121_s9 + $0xe8] sm:$0xff] %v15583_v21  ;;  %v14654_v59 = vadd.f32 %v14653_v53, %v14583_v35  ;;  %v14724_v9 = vmul.f32 %v14583_v35, %v14583_v35  ;;  %v14584_v58 = vsel %vm20498_vm13, %v13780_v16, 0.0  ;;  %v13782_v63 = vpop.f32.mrb[61].mxu0 }
 0x5e1   : > { %v14725_v42 = vmul.f32 %v14584_v58, %v14584_v58  ;;  %v15584_v57 = vpack.c.bf16 %v13782_v63, %v13780_v16  ;;  %v14585_v22 = vsel %vm20502_vm14, %v13782_v63, 0.0  ;;  %v13784_v45 = vpop.f32.mrb[62].mxu0 }
 0x5e2   : > { %v14787_v33 = vadd.f32 %v14786_v50, %v14724_v9  ;;  %v14655_v5 = vadd.f32 %v14654_v59, %v14584_v58  ;;  %v14726_v44 = vmul.f32 %v14585_v22, %v14585_v22  ;;  %v13785_v31 = vpop.f32.mrb[63].mxu0 }
 0x5e3   : > { %14178 = vst [vmem:[%s20121_s9 + $0xf0] sm:$0xff] %v15584_v57 }
 0x5e4   : > { %v14788_v23 = vadd.f32 %v14787_v33, %v14725_v42  ;;  %v14656_v43 = vadd.f32 %v14655_v5, %v14585_v22  ;;  %v13821_v49 = vpop.f32.mrb[60].mxu1 }
 0x5e5   : > { %v14586_v32 = vsel %vm14522_vm15, %v13821_v49, 0.0  ;;  %v13823_v55 = vpop.f32.mrb[61].mxu1 }
 0x5e6   : > { %v14789_v15 = vadd.f32 %v14788_v23, %v14726_v44  ;;  %v14657_v14 = vadd.f32 %v14656_v43, %v14586_v32  ;;  %v14727_v8 = vmul.f32 %v14586_v32, %v14586_v32  ;;  %v15585_v20 = vpack.c.bf16 %v13823_v55, %v13821_v49  ;;  %v13825_v1 = vpop.f32.mrb[62].mxu1 }
 0x5e7   : > { %v14587_v60 = vsel %vm14523_vm0, %v13823_v55, 0.0  ;;  %v13826_v7 = vpop.f32.mrb[63].mxu1 }
 0x5e8   : > { %v14790_v4 = vadd.f32 %v14789_v15, %v14727_v8  ;;  %14179 = vst [vmem:[%s20121_s9 + $0xf8] sm:$0xff] %v15585_v20  ;;  %v14658_v19 = vadd.f32 %v14657_v14, %v14587_v60  ;;  %v14728_v0 = vmul.f32 %v14587_v60, %v14587_v60 }
 0x5ea   : > { %14659 = vadd.xlane.f32.xlu0 %v14658_v19  ;;  %v14791_v56 = vadd.f32 %v14790_v4, %v14728_v0 }
 0x5ec   : > { %14792 = vadd.xlane.f32.xlu1 %v14791_v56 }
 0x677   : > { %v14660_v51 = vpop.xlane.xlu0 %14659 }
 0x678   : > { %v14661_v37 = vadd.f32 %v14660_v51, %v14595_v25 }
 0x679   : > { %v14793_v36 = vpop.xlane.xlu1 %14792 }
 0x67a   : > { %14663 = vst.msk [vmem:[%s20157_s13] sm:$0xff] %vm14592_vm11, %v14661_v37  ;;  %v14794_v40 = vadd.f32 %v14793_v36, %v14664_v34 }
 0x67c   : > { %14795 = vst.msk [vmem:[%s270_s7] sm:$0xff] %vm14592_vm11, %v14794_v40 }
 0x67d PF: > { %s16_s20 = sadd.s32 1, %s16681_s20   ;;  %s21457_s18 = smov %s16677_s19 }
 0x67e   : > { %p13_p6 = scmp.ge.s32.totalorder %s16_s20, 4   ;;  %s21458_s19 = smov %s21460_s21 }
 0x680   :  { %15 = sbr.rel (!%p13_p6) target bundleno = 2 (0x2), region = 98 }

</bundles_post_ra>
